<compile_context>
chip_gen: v5e
topology: v5e:2x2
jax: 0.10.0
libtpu: 0.0.40
codegen_flags: <defaults>
</compile_context>

<pallas_src>
import functools

import jax
import jax.numpy as jnp
from jax.experimental import pallas as pl
from jax.experimental.pallas import tpu as pltpu

# Logical (PyTorch) layer sizes: (in_features, out_features); W stored as (in, out).
DIMS = [(1025, 256), (256, 128), (128, 64), (64, 128), (128, 256), (256, 1025)]

F_RAW = 1025   # raw feature width
F_PAD = 1152   # 9 * 128 -> lane-dense
C_RAW = 64     # raw code width
C_PAD = 128    # lane-dense code width

# ~0.35 us fixed per-grid-step overhead expressed in "equivalent HBM rows"
# (bf16 in + bf16 out ~ 4.9 KB/row ~ 3.5 ns/row on v6e).
_STEP_COST_ROWS = 96


def _round_up(x, m):
    return (x + m - 1) // m * m


def _choose_batch_tile(B, tb_max=512):
    """Pick a batch tile (multiple of 16) balancing step overhead, batch-pad
    waste, and keeping >=2 tiles so v7x's second TensorCore isn't idle."""
    B16 = _round_up(max(B, 16), 16)
    if B16 <= 32:
        return B16
    tb_max = min(tb_max, B16)
    best_tb, best_score = None, None
    for tb in range(16, tb_max + 1, 16):
        bp = _round_up(B, tb)
        ntiles = bp // tb
        waste = bp - B
        score = ntiles * _STEP_COST_ROWS + waste
        if ntiles < 2:          # mild penalty: prefer giving both v7x TCs work
            score += 2 * _STEP_COST_ROWS
        if best_score is None or score < best_score:
            best_score, best_tb = score, tb
    return best_tb


def autoencoder_kernel(x_ref,
                       w1, b1, w2, b2, w3, b3, w4, b4, w5, b5, w6, b6,
                       codes_ref, decoded_ref):
    """One batch tile of the fused 6-layer autoencoder.

    x_ref: (TB, F_PAD) bf16. Weights bf16 (in, out), biases f32 (1, out).
    codes_ref: (TB, C_PAD) bf16, decoded_ref: (TB, F_PAD) bf16.
    """
    def layer(a, w_ref, b_ref):
        # bf16 MXU inputs, f32 accumulation, f32 bias/activation epilogue.
        return jnp.dot(a.astype(jnp.bfloat16), w_ref[...],
                       preferred_element_type=jnp.float32) + b_ref[...]

    x = x_ref[...]

    # --- Encoder ---
    h = jnp.tanh(layer(x, w1, b1))
    h = jnp.tanh(layer(h, w2, b2))
    codes = jnp.tanh(layer(h, w3, b3))        # padded code lanes are tanh(0)=0
    codes_ref[...] = codes.astype(codes_ref.dtype)

    # --- Decoder ---
    d = jnp.tanh(layer(codes, w4, b4))
    d = jnp.tanh(layer(d, w5, b5))
    decoded_ref[...] = jax.nn.sigmoid(layer(d, w6, b6)).astype(decoded_ref.dtype)


def prepare_params(params):
    """Pad to lane-dense shapes and cast weights to bf16 (call once, reuse).

    params: list of 6 (W, b) with W shaped (in, out) f32.
    Returns flat [w1, b1, ..., w6, b6] ready for the kernel.
    """
    flat = []
    for w, b in params:
        w = jnp.asarray(w, jnp.float32)
        b = jnp.asarray(b, jnp.float32).reshape(1, -1)
        fin, fout = w.shape
        if fin == F_RAW:                      # layer 1: K 1025 -> 1152 (zero rows)
            w = jnp.pad(w, ((0, F_PAD - F_RAW), (0, 0)))
        if fin == C_RAW:                      # layer 4: K 64 -> 128 (zero rows)
            w = jnp.pad(w, ((0, C_PAD - C_RAW), (0, 0)))
        if fout == C_RAW:                     # layer 3: N 64 -> 128 (zero cols/bias)
            w = jnp.pad(w, ((0, 0), (0, C_PAD - C_RAW)))
            b = jnp.pad(b, ((0, 0), (0, C_PAD - C_RAW)))
        if fout == F_RAW:                     # layer 6: N 1025 -> 1152 (sliced off)
            w = jnp.pad(w, ((0, 0), (0, F_PAD - F_RAW)))
            b = jnp.pad(b, ((0, 0), (0, F_PAD - F_RAW)))
        flat.extend([w.astype(jnp.bfloat16), b])
    return flat


@functools.partial(jax.jit, static_argnames=("tb_max", "unpad"))
def autoencoder_forward(x, flat_params, *, tb_max=512, unpad=True):
    """x: (B, 1025) float. flat_params: output of prepare_params().

    Returns (codes, decoded) as bf16. With unpad=True they are sliced to
    (B, 64) / (B, 1025); with unpad=False the padded (bp, 128) / (bp, 1152)
    kernel outputs are returned (rows >= B and padded lanes must be ignored
    by the consumer) to avoid any post-kernel copy.
    """
    B = x.shape[0]
    assert x.shape[1] == F_RAW

    tb = _choose_batch_tile(B, tb_max)
    bp = _round_up(B, tb)              # padded batch
    grid = (bp // tb,)

    # Zero-pad batch + feature dims directly in bf16 (no f32 intermediate).
    x_pad = (jnp.zeros((bp, F_PAD), jnp.bfloat16)
             .at[:B, :F_RAW].set(jnp.asarray(x, jnp.bfloat16)))

    flat = list(flat_params)

    # Weights/biases: full block, constant index_map -> resident across grid steps.
    weight_spec = lambda a: pl.BlockSpec(a.shape, lambda i: (0,) * a.ndim)
    in_specs = ([pl.BlockSpec((tb, F_PAD), lambda i: (i, 0))]
                + [weight_spec(a) for a in flat])
    out_specs = (
        pl.BlockSpec((tb, C_PAD), lambda i: (i, 0)),
        pl.BlockSpec((tb, F_PAD), lambda i: (i, 0)),
    )
    out_shapes = (
        jax.ShapeDtypeStruct((bp, C_PAD), jnp.bfloat16),
        jax.ShapeDtypeStruct((bp, F_PAD), jnp.bfloat16),
    )

    # Advisory cost hint for XLA scheduling around the custom call.
    layer_dims = [(F_PAD, 256), (256, 128), (128, C_PAD),
                  (C_PAD, 128), (128, 256), (256, F_PAD)]
    flops = 2 * bp * sum(k * n for k, n in layer_dims)
    transcendentals = bp * sum(n for _, n in layer_dims)
    bytes_accessed = (sum(a.size * a.dtype.itemsize for a in flat)
                      + x_pad.size * 2 + bp * C_PAD * 2 + bp * F_PAD * 2)

    codes_pad, decoded_pad = pl.pallas_call(
        autoencoder_kernel,
        out_shape=out_shapes,
        grid=grid,
        in_specs=in_specs,
        out_specs=out_specs,
        compiler_params=pltpu.CompilerParams(
            dimension_semantics=("parallel",),   # megacore sharding on v7x
            vmem_limit_bytes=48 << 20,           # headroom for tb_max up to ~1024
        ),
        cost_estimate=pl.CostEstimate(
            flops=flops,
            transcendentals=transcendentals,
            bytes_accessed=bytes_accessed,
        ),
    )(x_pad, *flat)

    if not unpad:
        return codes_pad, decoded_pad
    # Slices stay inside this jit so XLA can fuse them with the pad/copy.
    return codes_pad[:B, :C_RAW], decoded_pad[:B, :F_RAW]


def init_linear(key, fan_in, fan_out):
    """Mirror nn.Linear's U(-1/sqrt(fan_in), 1/sqrt(fan_in)); W is (in, out)."""
    kw, kb = jax.random.split(key)
    bound = 1.0 / jnp.sqrt(fan_in)
    w = jax.random.uniform(kw, (fan_in, fan_out), jnp.float32, -bound, bound)
    b = jax.random.uniform(kb, (fan_out,), jnp.float32, -bound, bound)
    return w, b


if __name__ == "__main__":
    key = jax.random.PRNGKey(0)
    keys = jax.random.split(key, 7)

    params = [init_linear(keys[i], fi, fo) for i, (fi, fo) in enumerate(DIMS)]
    flat_params = prepare_params(params)            # pad/cast once, reuse

    B = 8
    x = jax.random.normal(keys[6], (B, F_RAW), jnp.float32)

    codes, decoded = autoencoder_forward(x, flat_params)
    jax.block_until_ready((codes, decoded))

    # Reference in plain f32 JAX.
    h = x
    for w, b in params[:3]:
        h = jnp.tanh(h @ w + b)
    codes_ref = h
    d = codes_ref
    for w, b in params[3:5]:
        d = jnp.tanh(d @ w + b)
    decoded_ref = jax.nn.sigmoid(d @ params[5][0] + params[5][1])

    assert codes.shape == (B, C_RAW) and decoded.shape == (B, F_RAW)
    codes_f32 = codes.astype(jnp.float32)
    decoded_f32 = decoded.astype(jnp.float32)
    # bf16 matmul inputs + bf16 outputs with f32 accumulation -> loose tolerance.
    assert jnp.allclose(codes_f32, codes_ref, atol=3e-2, rtol=3e-2), \
        float(jnp.max(jnp.abs(codes_f32 - codes_ref)))
    assert jnp.allclose(decoded_f32, decoded_ref, atol=3e-2, rtol=3e-2), \
        float(jnp.max(jnp.abs(decoded_f32 - decoded_ref)))

    print("KERNEL_OK")
</pallas_src>

<mosaic_0001>
module attributes {stable_mosaic.version = 11 : i64} {
  func.func @autoencoder_kernel(%arg0: i32, %arg1: memref<16x1152xbf16, #tpu.memory_space<vmem>>, %arg2: memref<1152x256xbf16, #tpu.memory_space<vmem>>, %arg3: memref<1x256xf32, #tpu.memory_space<vmem>>, %arg4: memref<256x128xbf16, #tpu.memory_space<vmem>>, %arg5: memref<1x128xf32, #tpu.memory_space<vmem>>, %arg6: memref<128x128xbf16, #tpu.memory_space<vmem>>, %arg7: memref<1x128xf32, #tpu.memory_space<vmem>>, %arg8: memref<128x128xbf16, #tpu.memory_space<vmem>>, %arg9: memref<1x128xf32, #tpu.memory_space<vmem>>, %arg10: memref<128x256xbf16, #tpu.memory_space<vmem>>, %arg11: memref<1x256xf32, #tpu.memory_space<vmem>>, %arg12: memref<256x1152xbf16, #tpu.memory_space<vmem>>, %arg13: memref<1x1152xf32, #tpu.memory_space<vmem>>, %arg14: memref<16x128xbf16, #tpu.memory_space<vmem>>, %arg15: memref<16x1152xbf16, #tpu.memory_space<vmem>>) attributes {dimension_semantics = [#tpu.dimension_semantics<parallel>], iteration_bounds = array<i64: 1>, scalar_prefetch = 0 : i64, scratch_operands = 0 : i64, tpu.core_type = #tpu.core_type<tc>, window_params = [{transform_indices = @transform_0, window_bounds = array<i64: 16, 1152>}, {pipeline_mode = #tpu.pipeline_mode<synchronous>, transform_indices = @transform_1, window_bounds = array<i64: 1152, 256>}, {pipeline_mode = #tpu.pipeline_mode<synchronous>, transform_indices = @transform_2, window_bounds = array<i64: 1, 256>}, {pipeline_mode = #tpu.pipeline_mode<synchronous>, transform_indices = @transform_3, window_bounds = array<i64: 256, 128>}, {pipeline_mode = #tpu.pipeline_mode<synchronous>, transform_indices = @transform_4, window_bounds = array<i64: 1, 128>}, {pipeline_mode = #tpu.pipeline_mode<synchronous>, transform_indices = @transform_5, window_bounds = array<i64: 128, 128>}, {pipeline_mode = #tpu.pipeline_mode<synchronous>, transform_indices = @transform_6, window_bounds = array<i64: 1, 128>}, {pipeline_mode = #tpu.pipeline_mode<synchronous>, transform_indices = @transform_7, window_bounds = array<i64: 128, 128>}, {pipeline_mode = #tpu.pipeline_mode<synchronous>, transform_indices = @transform_8, window_bounds = array<i64: 1, 128>}, {pipeline_mode = #tpu.pipeline_mode<synchronous>, transform_indices = @transform_9, window_bounds = array<i64: 128, 256>}, {pipeline_mode = #tpu.pipeline_mode<synchronous>, transform_indices = @transform_10, window_bounds = array<i64: 1, 256>}, {pipeline_mode = #tpu.pipeline_mode<synchronous>, transform_indices = @transform_11, window_bounds = array<i64: 256, 1152>}, {pipeline_mode = #tpu.pipeline_mode<synchronous>, transform_indices = @transform_12, window_bounds = array<i64: 1, 1152>}, {transform_indices = @transform_13, window_bounds = array<i64: 16, 128>}, {transform_indices = @transform_14, window_bounds = array<i64: 16, 1152>}]} {
    %c0 = arith.constant 0 : index
    %c0_0 = arith.constant 0 : index
    %0 = vector.load %arg1[%c0, %c0_0] : memref<16x1152xbf16, #tpu.memory_space<vmem>>, vector<16x1152xbf16>
    %c0_1 = arith.constant 0 : index
    %c0_2 = arith.constant 0 : index
    %1 = vector.load %arg2[%c0_1, %c0_2] : memref<1152x256xbf16, #tpu.memory_space<vmem>>, vector<1152x256xbf16>
    %cst = arith.constant dense<0.000000e+00> : vector<16x256xf32>
    %2 = tpu.matmul %0, %1, %cst {dimension_numbers = #tpu.dot_dimension_numbers<[1], [0], [0], [1], [0, 0, 1, 1], [], []>} : vector<16x1152xbf16>, vector<1152x256xbf16>, vector<16x256xf32> -> vector<16x256xf32>
    %c0_3 = arith.constant 0 : index
    %c0_4 = arith.constant 0 : index
    %3 = vector.load %arg3[%c0_3, %c0_4] : memref<1x256xf32, #tpu.memory_space<vmem>>, vector<1x256xf32>
    %4 = vector.broadcast %3 : vector<1x256xf32> to vector<16x256xf32>
    %5 = arith.addf %2, %4 : vector<16x256xf32>
    %6 = math.tanh %5 : vector<16x256xf32>
    %7 = arith.truncf %6 : vector<16x256xf32> to vector<16x256xbf16>
    %c0_5 = arith.constant 0 : index
    %c0_6 = arith.constant 0 : index
    %8 = vector.load %arg4[%c0_5, %c0_6] : memref<256x128xbf16, #tpu.memory_space<vmem>>, vector<256x128xbf16>
    %cst_7 = arith.constant dense<0.000000e+00> : vector<16x128xf32>
    %9 = tpu.matmul %7, %8, %cst_7 {dimension_numbers = #tpu.dot_dimension_numbers<[1], [0], [0], [1], [0, 0, 1, 1], [], []>} : vector<16x256xbf16>, vector<256x128xbf16>, vector<16x128xf32> -> vector<16x128xf32>
    %c0_8 = arith.constant 0 : index
    %c0_9 = arith.constant 0 : index
    %10 = vector.load %arg5[%c0_8, %c0_9] : memref<1x128xf32, #tpu.memory_space<vmem>>, vector<1x128xf32>
    %11 = vector.broadcast %10 : vector<1x128xf32> to vector<16x128xf32>
    %12 = arith.addf %9, %11 : vector<16x128xf32>
    %13 = math.tanh %12 : vector<16x128xf32>
    %14 = arith.truncf %13 : vector<16x128xf32> to vector<16x128xbf16>
    %c0_10 = arith.constant 0 : index
    %c0_11 = arith.constant 0 : index
    %15 = vector.load %arg6[%c0_10, %c0_11] : memref<128x128xbf16, #tpu.memory_space<vmem>>, vector<128x128xbf16>
    %cst_12 = arith.constant dense<0.000000e+00> : vector<16x128xf32>
    %16 = tpu.matmul %14, %15, %cst_12 {dimension_numbers = #tpu.dot_dimension_numbers<[1], [0], [0], [1], [0, 0, 1, 1], [], []>} : vector<16x128xbf16>, vector<128x128xbf16>, vector<16x128xf32> -> vector<16x128xf32>
    %c0_13 = arith.constant 0 : index
    %c0_14 = arith.constant 0 : index
    %17 = vector.load %arg7[%c0_13, %c0_14] : memref<1x128xf32, #tpu.memory_space<vmem>>, vector<1x128xf32>
    %18 = vector.broadcast %17 : vector<1x128xf32> to vector<16x128xf32>
    %19 = arith.addf %16, %18 : vector<16x128xf32>
    %20 = math.tanh %19 : vector<16x128xf32>
    %21 = arith.truncf %20 : vector<16x128xf32> to vector<16x128xbf16>
    %c0_15 = arith.constant 0 : index
    %c0_16 = arith.constant 0 : index
    %22 = vector.load %arg14[%c0_15, %c0_16] : memref<16x128xbf16, #tpu.memory_space<vmem>>, vector<16x128xbf16>
    tpu.vector_store %arg14[%c0_15, %c0_16], %21 {strides = array<i32>} : memref<16x128xbf16, #tpu.memory_space<vmem>>, vector<16x128xbf16>,
    %23 = arith.truncf %20 : vector<16x128xf32> to vector<16x128xbf16>
    %c0_17 = arith.constant 0 : index
    %c0_18 = arith.constant 0 : index
    %24 = vector.load %arg8[%c0_17, %c0_18] : memref<128x128xbf16, #tpu.memory_space<vmem>>, vector<128x128xbf16>
    %cst_19 = arith.constant dense<0.000000e+00> : vector<16x128xf32>
    %25 = tpu.matmul %23, %24, %cst_19 {dimension_numbers = #tpu.dot_dimension_numbers<[1], [0], [0], [1], [0, 0, 1, 1], [], []>} : vector<16x128xbf16>, vector<128x128xbf16>, vector<16x128xf32> -> vector<16x128xf32>
    %c0_20 = arith.constant 0 : index
    %c0_21 = arith.constant 0 : index
    %26 = vector.load %arg9[%c0_20, %c0_21] : memref<1x128xf32, #tpu.memory_space<vmem>>, vector<1x128xf32>
    %27 = vector.broadcast %26 : vector<1x128xf32> to vector<16x128xf32>
    %28 = arith.addf %25, %27 : vector<16x128xf32>
    %29 = math.tanh %28 : vector<16x128xf32>
    %30 = arith.truncf %29 : vector<16x128xf32> to vector<16x128xbf16>
    %c0_22 = arith.constant 0 : index
    %c0_23 = arith.constant 0 : index
    %31 = vector.load %arg10[%c0_22, %c0_23] : memref<128x256xbf16, #tpu.memory_space<vmem>>, vector<128x256xbf16>
    %cst_24 = arith.constant dense<0.000000e+00> : vector<16x256xf32>
    %32 = tpu.matmul %30, %31, %cst_24 {dimension_numbers = #tpu.dot_dimension_numbers<[1], [0], [0], [1], [0, 0, 1, 1], [], []>} : vector<16x128xbf16>, vector<128x256xbf16>, vector<16x256xf32> -> vector<16x256xf32>
    %c0_25 = arith.constant 0 : index
    %c0_26 = arith.constant 0 : index
    %33 = vector.load %arg11[%c0_25, %c0_26] : memref<1x256xf32, #tpu.memory_space<vmem>>, vector<1x256xf32>
    %34 = vector.broadcast %33 : vector<1x256xf32> to vector<16x256xf32>
    %35 = arith.addf %32, %34 : vector<16x256xf32>
    %36 = math.tanh %35 : vector<16x256xf32>
    %37 = arith.truncf %36 : vector<16x256xf32> to vector<16x256xbf16>
    %c0_27 = arith.constant 0 : index
    %c0_28 = arith.constant 0 : index
    %38 = vector.load %arg12[%c0_27, %c0_28] : memref<256x1152xbf16, #tpu.memory_space<vmem>>, vector<256x1152xbf16>
    %cst_29 = arith.constant dense<0.000000e+00> : vector<16x1152xf32>
    %39 = tpu.matmul %37, %38, %cst_29 {dimension_numbers = #tpu.dot_dimension_numbers<[1], [0], [0], [1], [0, 0, 1, 1], [], []>} : vector<16x256xbf16>, vector<256x1152xbf16>, vector<16x1152xf32> -> vector<16x1152xf32>
    %c0_30 = arith.constant 0 : index
    %c0_31 = arith.constant 0 : index
    %40 = vector.load %arg13[%c0_30, %c0_31] : memref<1x1152xf32, #tpu.memory_space<vmem>>, vector<1x1152xf32>
    %41 = vector.broadcast %40 : vector<1x1152xf32> to vector<16x1152xf32>
    %42 = arith.addf %39, %41 : vector<16x1152xf32>
    %43 = arith.negf %42 : vector<16x1152xf32>
    %44 = math.exp %43 : vector<16x1152xf32>
    %cst_32 = arith.constant 1.000000e+00 : f32
    %45 = vector.broadcast %cst_32 : f32 to vector<16x1152xf32>
    %46 = arith.addf %45, %44 : vector<16x1152xf32>
    %47 = arith.divf %45, %46 : vector<16x1152xf32>
    %48 = arith.truncf %47 : vector<16x1152xf32> to vector<16x1152xbf16>
    %c0_33 = arith.constant 0 : index
    %c0_34 = arith.constant 0 : index
    %49 = vector.load %arg15[%c0_33, %c0_34] : memref<16x1152xbf16, #tpu.memory_space<vmem>>, vector<16x1152xbf16>
    tpu.vector_store %arg15[%c0_33, %c0_34], %48 {strides = array<i32>} : memref<16x1152xbf16, #tpu.memory_space<vmem>>, vector<16x1152xbf16>,
    return
  }
  func.func @transform_0(%arg0: i32) -> (i32, i32) {
    %c0_i32 = arith.constant 0 : i32
    %c0_i32_0 = arith.constant 0 : i32
    return %arg0, %c0_i32 : i32, i32
  }
  func.func @transform_1(%arg0: i32) -> (i32, i32) {
    %c0_i32 = arith.constant 0 : i32
    %c0_i32_0 = arith.constant 0 : i32
    %c0_i32_1 = arith.constant 0 : i32
    return %c0_i32, %c0_i32_0 : i32, i32
  }
  func.func @transform_2(%arg0: i32) -> (i32, i32) {
    %c0_i32 = arith.constant 0 : i32
    %c0_i32_0 = arith.constant 0 : i32
    %c0_i32_1 = arith.constant 0 : i32
    return %c0_i32, %c0_i32_0 : i32, i32
  }
  func.func @transform_3(%arg0: i32) -> (i32, i32) {
    %c0_i32 = arith.constant 0 : i32
    %c0_i32_0 = arith.constant 0 : i32
    %c0_i32_1 = arith.constant 0 : i32
    return %c0_i32, %c0_i32_0 : i32, i32
  }
  func.func @transform_4(%arg0: i32) -> (i32, i32) {
    %c0_i32 = arith.constant 0 : i32
    %c0_i32_0 = arith.constant 0 : i32
    %c0_i32_1 = arith.constant 0 : i32
    return %c0_i32, %c0_i32_0 : i32, i32
  }
  func.func @transform_5(%arg0: i32) -> (i32, i32) {
    %c0_i32 = arith.constant 0 : i32
    %c0_i32_0 = arith.constant 0 : i32
    %c0_i32_1 = arith.constant 0 : i32
    return %c0_i32, %c0_i32_0 : i32, i32
  }
  func.func @transform_6(%arg0: i32) -> (i32, i32) {
    %c0_i32 = arith.constant 0 : i32
    %c0_i32_0 = arith.constant 0 : i32
    %c0_i32_1 = arith.constant 0 : i32
    return %c0_i32, %c0_i32_0 : i32, i32
  }
  func.func @transform_7(%arg0: i32) -> (i32, i32) {
    %c0_i32 = arith.constant 0 : i32
    %c0_i32_0 = arith.constant 0 : i32
    %c0_i32_1 = arith.constant 0 : i32
    return %c0_i32, %c0_i32_0 : i32, i32
  }
  func.func @transform_8(%arg0: i32) -> (i32, i32) {
    %c0_i32 = arith.constant 0 : i32
    %c0_i32_0 = arith.constant 0 : i32
    %c0_i32_1 = arith.constant 0 : i32
    return %c0_i32, %c0_i32_0 : i32, i32
  }
  func.func @transform_9(%arg0: i32) -> (i32, i32) {
    %c0_i32 = arith.constant 0 : i32
    %c0_i32_0 = arith.constant 0 : i32
    %c0_i32_1 = arith.constant 0 : i32
    return %c0_i32, %c0_i32_0 : i32, i32
  }
  func.func @transform_10(%arg0: i32) -> (i32, i32) {
    %c0_i32 = arith.constant 0 : i32
    %c0_i32_0 = arith.constant 0 : i32
    %c0_i32_1 = arith.constant 0 : i32
    return %c0_i32, %c0_i32_0 : i32, i32
  }
  func.func @transform_11(%arg0: i32) -> (i32, i32) {
    %c0_i32 = arith.constant 0 : i32
    %c0_i32_0 = arith.constant 0 : i32
    %c0_i32_1 = arith.constant 0 : i32
    return %c0_i32, %c0_i32_0 : i32, i32
  }
  func.func @transform_12(%arg0: i32) -> (i32, i32) {
    %c0_i32 = arith.constant 0 : i32
    %c0_i32_0 = arith.constant 0 : i32
    %c0_i32_1 = arith.constant 0 : i32
    return %c0_i32, %c0_i32_0 : i32, i32
  }
  func.func @transform_13(%arg0: i32) -> (i32, i32) {
    %c0_i32 = arith.constant 0 : i32
    %c0_i32_0 = arith.constant 0 : i32
    return %arg0, %c0_i32 : i32, i32
  }
  func.func @transform_14(%arg0: i32) -> (i32, i32) {
    %c0_i32 = arith.constant 0 : i32
    %c0_i32_0 = arith.constant 0 : i32
    return %arg0, %c0_i32 : i32, i32
  }
}

</mosaic_0001>

<bundles_post_ra>
// kernel: autoencoder_forward.1
= control target key start
LH: loop header
LB: loop body
LE: loop exit
PB: predicated region body
PF: predicated region fallthrough
CT: control target
= control target key end

     0   :  { %20 = vsyncpa [#allocation3], 0  ;;  %s5867_s0 = inlined_call_operand.vmem [shape: bf16[16,1152], index: 0, kind: input, shape index: {}]   ;;  %s5868_s1 = inlined_call_operand.hbm [shape: bf16[1152,256], index: 1, kind: input, shape index: {}]   ;;  %s5869_s2 = inlined_call_operand.vmem [shape: f32[1,256], index: 2, kind: input, shape index: {}]   ;;  %s5870_s3 = inlined_call_operand.vmem [shape: bf16[256,128], index: 3, kind: input, shape index: {}]   ;;  %s5871_s4 = inlined_call_operand.vmem [shape: f32[1,128], index: 4, kind: input, shape index: {}]   ;;  %s5872_s5 = inlined_call_operand.vmem [shape: bf16[128,128], index: 5, kind: input, shape index: {}]   ;;  %s5873_s6 = inlined_call_operand.vmem [shape: f32[1,128], index: 6, kind: input, shape index: {}]   ;;  %s5874_s7 = inlined_call_operand.hbm [shape: bf16[128,128], index: 7, kind: input, shape index: {}]   ;;  %s5875_s8 = inlined_call_operand.vmem [shape: f32[1,128], index: 8, kind: input, shape index: {}]   ;;  %s5876_s9 = inlined_call_operand.hbm [shape: bf16[128,256], index: 9, kind: input, shape index: {}]   ;;  %s5877_s10 = inlined_call_operand.vmem [shape: f32[1,256], index: 10, kind: input, shape index: {}]   ;;  %s5878_s11 = inlined_call_operand.hbm [shape: bf16[256,1152], index: 11, kind: input, shape index: {}]   ;;  %s5879_s12 = inlined_call_operand.vmem [shape: f32[1,1152], index: 12, kind: input, shape index: {}]   ;;  %s5880_s13 = inlined_call_operand.vmem [shape: bf16[16,128], index: 13, kind: output, shape index: {0}]   ;;  %s5881_s14 = inlined_call_operand.vmem [shape: bf16[16,1152], index: 14, kind: output, shape index: {1}]  }
   0x1   :  { %21 = vsyncpa [#allocation5], 0  ;;  %s52_s15 = sshll.u32 %s5874_s7, 4  ;;  %s53_s15 = int_to_ptr.hbm [resolvable:$true] %s52_s15 }
   0x2   :  { %22 = vsyncpa [#allocation8], 0  ;;  %s5278_s16 = smov [#allocation4]   ;;  %s29_s20 = sshll.u32 %s5868_s1, 4  ;;  %s30_s20 = int_to_ptr.hbm [resolvable:$true] %s29_s20 }
   0x3   :  { %s54_s17 = sshll.u32 %s5278_s16, 4  ;;  %s5279_s21 = smov 64   ;;  %s55_s17 = int_to_ptr.vmem [resolvable:$true] %s54_s17 }
   0x4   :  { %s5280_s22 = smov 4   ;;  %s5281_s23 = smov [#allocation2]  }
   0x5   :  { %60 = dma.hbm_to_vmem [thread:$0]  %s53_s15, 1024, %s55_s17, [#allocation5], %s5279_s21, %s5279_s21, %s5280_s22  }
   0x6   :  { %s31_s24 = sshll.u32 %s5281_s23, 4  ;;  %s5282_s25 = smov 128   ;;  %s32_s24 = int_to_ptr.vmem [resolvable:$true] %s31_s24 }
   0x7   :  { %s5283_s26 = smov 8   ;;  %s67_s28 = sshll.u32 %s5876_s9, 4  ;;  %s68_s28 = int_to_ptr.hbm [resolvable:$true] %s67_s28 }
   0x8   :  { %37 = dma.hbm_to_vmem [thread:$0]  %s30_s20, 18432, %s32_s24, [#allocation3], %s5282_s25, %s5282_s25, %s5283_s26  }
   0x9   :  { %s5284_s29 = smov [#allocation6]   ;;  %s82_s18 = sshll.u32 %s5878_s11, 4  ;;  %s83_s18 = int_to_ptr.hbm [resolvable:$true] %s82_s18 }
   0xa   :  { %s69_s30 = sshll.u32 %s5284_s29, 4  ;;  %s5285_s15 = smov [#allocation7]   ;;  %s70_s30 = int_to_ptr.vmem [resolvable:$true] %s69_s30 }
   0xb   :  { %75 = dma.hbm_to_vmem [thread:$0]  %s68_s28, 2048, %s70_s30, [#allocation5], %s5282_s25, %s5282_s25, %s5283_s26  }
   0xc   :  { %s84_s17 = sshll.u32 %s5285_s15, 4  ;;  %s5286_s19 = smov 576   ;;  %s85_s17 = int_to_ptr.vmem [resolvable:$true] %s84_s17 }
   0xd   :  { %s5287_s21 = smov 36  }
   0xe   :  { %90 = dma.hbm_to_vmem [thread:$0]  %s83_s18, 18432, %s85_s17, [#allocation8], %s5286_s19, %s5286_s19, %s5287_s21  }
   0xf   :  { %5272 = dma.done.wait [#allocation3], 18432  }
  0x10   :  { %5273 = vsyncadd [#allocation3], 4294948864 }
  0x11   :  { %5274 = dma.done.wait [#allocation5], 3072  }
  0x12   :  { %5275 = vsyncadd [#allocation5], 4294964224 }
  0x13   :  { %5276 = dma.done.wait [#allocation8], 18432  }
  0x14   :  { %5277 = vsyncadd [#allocation8], 4294948864  ;;  %v3408_v0 = vld [vmem:[#allocation2 + $0x70] sm:$0xf]  ;;  %v4736_v1 = vld [vmem:[#allocation2 + $0x74] sm:$0xf0] }
  0x15   :  { %v3472_v2 = vld [vmem:[#allocation2 + $0xf0] sm:$0xf]  ;;  %v3409_v3 = vor.u32 %v4736_v1, %v3408_v0  ;;  %v4752_v4 = vld [vmem:[#allocation2 + $0xf4] sm:$0xf0]  ;;  %v3400_v11 = vld [vmem:[#allocation2 + $0x60] sm:$0xf] }
  0x16   :  { %v3536_v5 = vld [vmem:[#allocation2 + $0x170] sm:$0xf]  ;;  %v4768_v6 = vld [vmem:[#allocation2 + $0x174] sm:$0xf0]  ;;  %v3473_v7 = vor.u32 %v4752_v4, %v3472_v2  ;;  %v4734_v13 = vld [vmem:[#allocation2 + $0x64] sm:$0xf0] }
  0x17   :  { %v3537_v8 = vor.u32 %v4768_v6, %v3536_v5  ;;  %v3600_v9 = vld [vmem:[#allocation2 + $0x1f0] sm:$0xf]  ;;  %v4784_v10 = vld [vmem:[#allocation2 + $0x1f4] sm:$0xf0]  ;;  %1035 = vmatpush.bf16.msra.mxu0 %v3409_v3  ;;  %v3464_v14 = vld [vmem:[#allocation2 + $0xe0] sm:$0xf]  ;;  %v3401_v16 = vor.u32 %v4734_v13, %v3400_v11 }
  0x18   :  { %v3601_v12 = vor.u32 %v4784_v10, %v3600_v9  ;;  %v4750_v15 = vld [vmem:[#allocation2 + $0xe4] sm:$0xf0]  ;;  %1049 = vmatpush.bf16.msra.mxu1 %v3473_v7  ;;  %v3528_v18 = vld [vmem:[#allocation2 + $0x160] sm:$0xf]  ;;  %v3392_v23 = vld [vmem:[#allocation2 + $0x50] sm:$0xf] }
  0x19   :  { %1063 = vmatpush.bf16.msra.mxu2 %v3537_v8  ;;  %v3465_v17 = vor.u32 %v4750_v15, %v3464_v14  ;;  %v4766_v19 = vld [vmem:[#allocation2 + $0x164] sm:$0xf0]  ;;  %v3592_v20 = vld [vmem:[#allocation2 + $0x1e0] sm:$0xf]  ;;  %v4732_v24 = vld [vmem:[#allocation2 + $0x54] sm:$0xf0] }
  0x1a   :  { %1077 = vmatpush.bf16.msra.mxu3 %v3601_v12  ;;  %v3529_v21 = vor.u32 %v4766_v19, %v3528_v18  ;;  %v4782_v22 = vld [vmem:[#allocation2 + $0x1e4] sm:$0xf0]  ;;  %v3456_v26 = vld [vmem:[#allocation2 + $0xd0] sm:$0xf]  ;;  %v4748_v27 = vld [vmem:[#allocation2 + $0xd4] sm:$0xf0]  ;;  %v3393_v29 = vor.u32 %v4732_v24, %v3392_v23 }
  0x1b   :  { %v3593_v25 = vor.u32 %v4782_v22, %v3592_v20  ;;  %v3520_v28 = vld [vmem:[#allocation2 + $0x150] sm:$0xf]  ;;  %1036 = vmatpush.bf16.msra.mxu0 %v3401_v16  ;;  %v4764_v30 = vld [vmem:[#allocation2 + $0x154] sm:$0xf0]  ;;  %v3457_v33 = vor.u32 %v4748_v27, %v3456_v26  ;;  %v3384_v35 = vld [vmem:[#allocation2 + $0x40] sm:$0xf] }
  0x1c   :  { %v3584_v31 = vld [vmem:[#allocation2 + $0x1d0] sm:$0xf]  ;;  %v4780_v32 = vld [vmem:[#allocation2 + $0x1d4] sm:$0xf0]  ;;  %1050 = vmatpush.bf16.msra.mxu1 %v3465_v17  ;;  %v3521_v34 = vor.u32 %v4764_v30, %v3520_v28  ;;  %v4730_v36 = vld [vmem:[#allocation2 + $0x44] sm:$0xf0] }
  0x1d   :  { %1064 = vmatpush.bf16.msra.mxu2 %v3529_v21  ;;  %v3448_v37 = vld [vmem:[#allocation2 + $0xc0] sm:$0xf]  ;;  %v3585_v38 = vor.u32 %v4780_v32, %v3584_v31  ;;  %v4746_v39 = vld [vmem:[#allocation2 + $0xc4] sm:$0xf0]  ;;  %v3385_v44 = vor.u32 %v4730_v36, %v3384_v35  ;;  %v3376_v47 = vld [vmem:[#allocation2 + $0x30] sm:$0xf] }
  0x1e   :  { %1078 = vmatpush.bf16.msra.mxu3 %v3593_v25  ;;  %v3512_v40 = vld [vmem:[#allocation2 + $0x140] sm:$0xf]  ;;  %v4762_v41 = vld [vmem:[#allocation2 + $0x144] sm:$0xf0]  ;;  %v3449_v45 = vor.u32 %v4746_v39, %v3448_v37  ;;  %v4728_v48 = vld [vmem:[#allocation2 + $0x34] sm:$0xf0] }
  0x1f   :  { %v3576_v42 = vld [vmem:[#allocation2 + $0x1c0] sm:$0xf]  ;;  %v4778_v43 = vld [vmem:[#allocation2 + $0x1c4] sm:$0xf0]  ;;  %1037 = vmatpush.bf16.msra.mxu0 %v3393_v29  ;;  %v3513_v46 = vor.u32 %v4762_v41, %v3512_v40  ;;  %v3440_v49 = vld [vmem:[#allocation2 + $0xb0] sm:$0xf]  ;;  %v3377_v56 = vor.u32 %v4728_v48, %v3376_v47 }
  0x20   :  { %1051 = vmatpush.bf16.msra.mxu1 %v3457_v33  ;;  %v3577_v50 = vor.u32 %v4778_v43, %v3576_v42  ;;  %v4744_v51 = vld [vmem:[#allocation2 + $0xb4] sm:$0xf0]  ;;  %v3504_v52 = vld [vmem:[#allocation2 + $0x130] sm:$0xf]  ;;  %v3368_v59 = vld [vmem:[#allocation2 + $0x20] sm:$0xf] }
  0x21   :  { %1065 = vmatpush.bf16.msra.mxu2 %v3521_v34  ;;  %v4760_v53 = vld [vmem:[#allocation2 + $0x134] sm:$0xf0]  ;;  %v3568_v54 = vld [vmem:[#allocation2 + $0x1b0] sm:$0xf]  ;;  %v3441_v57 = vor.u32 %v4744_v51, %v3440_v49  ;;  %v4726_v60 = vld [vmem:[#allocation2 + $0x24] sm:$0xf0] }
  0x22   :  { %1079 = vmatpush.bf16.msra.mxu3 %v3585_v38  ;;  %v4776_v55 = vld [vmem:[#allocation2 + $0x1b4] sm:$0xf0]  ;;  %v3505_v58 = vor.u32 %v4760_v53, %v3504_v52  ;;  %v3432_v61 = vld [vmem:[#allocation2 + $0xa0] sm:$0xf]  ;;  %v4742_v63 = vld [vmem:[#allocation2 + $0xa4] sm:$0xf0]  ;;  %v3369_v4 = vor.u32 %v4726_v60, %v3368_v59 }
  0x23   :  { %1038 = vmatpush.bf16.msra.mxu0 %v3385_v44  ;;  %v3569_v62 = vor.u32 %v4776_v55, %v3568_v54  ;;  %v3496_v0 = vld [vmem:[#allocation2 + $0x120] sm:$0xf]  ;;  %v4758_v1 = vld [vmem:[#allocation2 + $0x124] sm:$0xf0]  ;;  %v3433_v5 = vor.u32 %v4742_v63, %v3432_v61  ;;  %v3360_v7 = vld [vmem:[#allocation2 + $0x10] sm:$0xf] }
  0x24   :  { %1052 = vmatpush.bf16.msra.mxu1 %v3449_v45  ;;  %v3560_v2 = vld [vmem:[#allocation2 + $0x1a0] sm:$0xf]  ;;  %v4774_v3 = vld [vmem:[#allocation2 + $0x1a4] sm:$0xf0]  ;;  %v3497_v6 = vor.u32 %v4758_v1, %v3496_v0  ;;  %v4724_v8 = vld [vmem:[#allocation2 + $0x14] sm:$0xf0] }
  0x25   :  { %1066 = vmatpush.bf16.msra.mxu2 %v3513_v46  ;;  %v3424_v9 = vld [vmem:[#allocation2 + $0x90] sm:$0xf]  ;;  %v3561_v10 = vor.u32 %v4774_v3, %v3560_v2  ;;  %v4740_v11 = vld [vmem:[#allocation2 + $0x94] sm:$0xf0]  ;;  %v3361_v16 = vor.u32 %v4724_v8, %v3360_v7  ;;  %v3352_v17 = vld [vmem:[#allocation2] sm:$0xf] }
  0x26   :  { %1080 = vmatpush.bf16.msra.mxu3 %v3577_v50  ;;  %v3488_v12 = vld [vmem:[#allocation2 + $0x110] sm:$0xf]  ;;  %v4756_v13 = vld [vmem:[#allocation2 + $0x114] sm:$0xf0]  ;;  %v4722_v18 = vld [vmem:[#allocation2 + $0x4] sm:$0xf0]  ;;  %v3425_v19 = vor.u32 %v4740_v11, %v3424_v9 }
  0x27   :  { %1039 = vmatpush.bf16.msra.mxu0 %v3377_v56  ;;  %v3552_v14 = vld [vmem:[#allocation2 + $0x190] sm:$0xf]  ;;  %v4772_v15 = vld [vmem:[#allocation2 + $0x194] sm:$0xf0]  ;;  %v3489_v20 = vor.u32 %v4756_v13, %v3488_v12  ;;  %v3416_v21 = vld [vmem:[#allocation2 + $0x80] sm:$0xf]  ;;  %v3353_v31 = vor.u32 %v4722_v18, %v3352_v17 }
  0x28   :  { %1053 = vmatpush.bf16.msra.mxu1 %v3441_v57  ;;  %v4738_v22 = vld [vmem:[#allocation2 + $0x84] sm:$0xf0]  ;;  %v3480_v23 = vld [vmem:[#allocation2 + $0x100] sm:$0xf]  ;;  %v3553_v24 = vor.u32 %v4772_v15, %v3552_v14  ;;  %v3664_v26 = vld [vmem:[#allocation2 + $0x270] sm:$0xf] }
  0x29   :  { %1067 = vmatpush.bf16.msra.mxu2 %v3505_v58  ;;  %v4754_v25 = vld [vmem:[#allocation2 + $0x104] sm:$0xf0]  ;;  %v4800_v27 = vld [vmem:[#allocation2 + $0x274] sm:$0xf0]  ;;  %v3728_v28 = vld [vmem:[#allocation2 + $0x2f0] sm:$0xf]  ;;  %v3417_v35 = vor.u32 %v4738_v22, %v3416_v21 }
  0x2a   :  { %1081 = vmatpush.bf16.msra.mxu3 %v3569_v62  ;;  %v4816_v29 = vld [vmem:[#allocation2 + $0x2f4] sm:$0xf0]  ;;  %v3792_v30 = vld [vmem:[#allocation2 + $0x370] sm:$0xf]  ;;  %v3544_v33 = vld [vmem:[#allocation2 + $0x180] sm:$0xf]  ;;  %v3481_v36 = vor.u32 %v4754_v25, %v3480_v23  ;;  %v3665_v39 = vor.u32 %v4800_v27, %v3664_v26 }
  0x2b   :  { %1040 = vmatpush.bf16.msra.mxu0 %v3369_v4  ;;  %v4832_v32 = vld [vmem:[#allocation2 + $0x374] sm:$0xf0]  ;;  %v4770_v34 = vld [vmem:[#allocation2 + $0x184] sm:$0xf0]  ;;  %v3856_v37 = vld [vmem:[#allocation2 + $0x3f0] sm:$0xf]  ;;  %v3729_v40 = vor.u32 %v4816_v29, %v3728_v28 }
  0x2c   :  { %1054 = vmatpush.bf16.msra.mxu1 %v3433_v5  ;;  %v4848_v38 = vld [vmem:[#allocation2 + $0x3f4] sm:$0xf0]  ;;  %v3656_v41 = vld [vmem:[#allocation2 + $0x260] sm:$0xf]  ;;  %v4798_v42 = vld [vmem:[#allocation2 + $0x264] sm:$0xf0]  ;;  %v3793_v43 = vor.u32 %v4832_v32, %v3792_v30  ;;  %v3545_v44 = vor.u32 %v4770_v34, %v3544_v33 }
  0x2d   :  { %1068 = vmatpush.bf16.msra.mxu2 %v3497_v6  ;;  %v3720_v45 = vld [vmem:[#allocation2 + $0x2e0] sm:$0xf]  ;;  %v4814_v46 = vld [vmem:[#allocation2 + $0x2e4] sm:$0xf0]  ;;  %v3857_v48 = vor.u32 %v4848_v38, %v3856_v37  ;;  %v3648_v52 = vld [vmem:[#allocation2 + $0x250] sm:$0xf]  ;;  %v3657_v56 = vor.u32 %v4798_v42, %v3656_v41 }
  0x2e   :  { %1082 = vmatpush.bf16.msra.mxu3 %v3561_v10  ;;  %v3784_v47 = vld [vmem:[#allocation2 + $0x360] sm:$0xf]  ;;  %v4830_v49 = vld [vmem:[#allocation2 + $0x364] sm:$0xf0]  ;;  %v4716_v54 = vld [vmem:[%s5867_s0 + $0x20] sm:$0xf0]  ;;  %v3721_v57 = vor.u32 %v4814_v46, %v3720_v45 }
  0x2f   :  { %1041 = vmatpush.bf16.msra.mxu0 %v3361_v16  ;;  %v3848_v50 = vld [vmem:[#allocation2 + $0x3e0] sm:$0xf]  ;;  %v4846_v51 = vld [vmem:[#allocation2 + $0x3e4] sm:$0xf0]  ;;  %v4796_v58 = vld [vmem:[#allocation2 + $0x254] sm:$0xf0]  ;;  %v3785_v62 = vor.u32 %v4830_v49, %v3784_v47 }
  0x30   :  { %1055 = vmatpush.bf16.msra.mxu1 %v3425_v19  ;;  %v3316_v53 = vld [vmem:[%s5867_s0] sm:$0xf]  ;;  %v3324_v55 = vld [vmem:[%s5867_s0 + $0x8] sm:$0xf]  ;;  %v3712_v59 = vld [vmem:[#allocation2 + $0x2d0] sm:$0xf]  ;;  %v3849_v3 = vor.u32 %v4846_v51, %v3848_v50  ;;  %v3649_v11 = vor.u32 %v4796_v58, %v3648_v52 }
  0x31   :  { %1069 = vmatpush.bf16.msra.mxu2 %v3489_v20  ;;  %v5384_v60 = vor.u32 %v4716_v54, %v3316_v53  ;;  %v4717_v61 = vld [vmem:[%s5867_s0 + $0x28] sm:$0xf0]  ;;  %v4812_v63 = vld [vmem:[#allocation2 + $0x2d4] sm:$0xf0]  ;;  %v3776_v0 = vld [vmem:[#allocation2 + $0x350] sm:$0xf] }
  0x32   :  { %1083 = vmatpush.bf16.msra.mxu3 %v3553_v24  ;;  %v4828_v1 = vld [vmem:[#allocation2 + $0x354] sm:$0xf0]  ;;  %v5389_v2 = vor.u32 %v4717_v61, %v3324_v55  ;;  %v3840_v4 = vld [vmem:[#allocation2 + $0x3d0] sm:$0xf]  ;;  %v4712_v5 = vld [vmem:[%s5867_s0 + $0x4] sm:$0xf]  ;;  %v3713_v12 = vor.u32 %v4812_v63, %v3712_v59 }
  0x33   :  { %1042 = vmatpush.bf16.msra.mxu0 %v3353_v31  ;;  %v3318_v6 = vld [vmem:[%s5867_s0 + $0x24] sm:$0xf0]  ;;  %v4844_v7 = vld [vmem:[#allocation2 + $0x3d4] sm:$0xf0]  ;;  %v4713_v9 = vld [vmem:[%s5867_s0 + $0xc] sm:$0xf]  ;;  %v3777_v15 = vor.u32 %v4828_v1, %v3776_v0 }
  0x34   :  { %1056 = vmatpush.bf16.msra.mxu1 %v3417_v35  ;;  %v5399_v8 = vor.u32 %v4712_v5, %v3318_v6  ;;  %v3326_v10 = vld [vmem:[%s5867_s0 + $0x2c] sm:$0xf0]  ;;  %v3640_v13 = vld [vmem:[#allocation2 + $0x240] sm:$0xf]  ;;  %v4794_v16 = vld [vmem:[#allocation2 + $0x244] sm:$0xf0]  ;;  %v3841_v19 = vor.u32 %v4844_v7, %v3840_v4 }
  0x35   :  { %1070 = vmatpush.bf16.msra.mxu2 %v3481_v36  ;;  %v5407_v14 = vor.u32 %v4713_v9, %v3326_v10  ;;  %v3704_v17 = vld [vmem:[#allocation2 + $0x2c0] sm:$0xf]  ;;  %v4810_v18 = vld [vmem:[#allocation2 + $0x2c4] sm:$0xf0]  ;;  %v3641_v24 = vor.u32 %v4794_v16, %v3640_v13  ;;  %v3632_v26 = vld [vmem:[#allocation2 + $0x230] sm:$0xf] }
  0x36   :  { %1084 = vmatpush.bf16.msra.mxu3 %v3545_v44  ;;  %1043 = vmatmul.bf16.vlgmr.msra.gmra.mxu0 %v5384_v60  ;;  %v3768_v20 = vld [vmem:[#allocation2 + $0x340] sm:$0xf]  ;;  %v4826_v21 = vld [vmem:[#allocation2 + $0x344] sm:$0xf0]  ;;  %v3705_v25 = vor.u32 %v4810_v18, %v3704_v17  ;;  %v4792_v28 = vld [vmem:[#allocation2 + $0x234] sm:$0xf0] }
  0x37   :  { %1091 = vmatpush.bf16.msrb.mxu0 %v3665_v39  ;;  %1057 = vmatmul.bf16.vlgmr.msra.gmra.mxu1 %v5399_v8  ;;  %v3832_v22 = vld [vmem:[#allocation2 + $0x3c0] sm:$0xf]  ;;  %v4842_v23 = vld [vmem:[#allocation2 + $0x3c4] sm:$0xf0]  ;;  %v3769_v27 = vor.u32 %v4826_v21, %v3768_v20  ;;  %v3696_v29 = vld [vmem:[#allocation2 + $0x2b0] sm:$0xf]  ;;  %v3633_v36 = vor.u32 %v4792_v28, %v3632_v26 }
  0x38   :  { %1105 = vmatpush.bf16.msrb.mxu1 %v3729_v40  ;;  %1071 = vmatmul.bf16.vlgmr.msra.gmra.mxu2 %v5389_v2  ;;  %v4808_v30 = vld [vmem:[#allocation2 + $0x2b4] sm:$0xf0]  ;;  %v3833_v31 = vor.u32 %v4842_v23, %v3832_v22  ;;  %v3760_v32 = vld [vmem:[#allocation2 + $0x330] sm:$0xf]  ;;  %v3624_v38 = vld [vmem:[#allocation2 + $0x220] sm:$0xf] }
  0x39   :  { %1119 = vmatpush.bf16.msrb.mxu2 %v3793_v43  ;;  %1085 = vmatmul.bf16.vlgmr.msra.gmra.mxu3 %v5407_v14  ;;  %v4824_v33 = vld [vmem:[#allocation2 + $0x334] sm:$0xf0]  ;;  %v3824_v34 = vld [vmem:[#allocation2 + $0x3b0] sm:$0xf]  ;;  %v3697_v37 = vor.u32 %v4808_v30, %v3696_v29  ;;  %v4790_v40 = vld [vmem:[#allocation2 + $0x224] sm:$0xf0] }
  0x3a   :  { %1133 = vmatpush.bf16.msrb.mxu3 %v3857_v48  ;;  %v4840_v35 = vld [vmem:[#allocation2 + $0x3b4] sm:$0xf0]  ;;  %v3761_v39 = vor.u32 %v4824_v33, %v3760_v32  ;;  %v3688_v41 = vld [vmem:[#allocation2 + $0x2a0] sm:$0xf]  ;;  %v4806_v42 = vld [vmem:[#allocation2 + $0x2a4] sm:$0xf0]  ;;  %v3625_v48 = vor.u32 %v4790_v40, %v3624_v38 }
  0x3b   :  { %1092 = vmatpush.bf16.msrb.mxu0 %v3657_v56  ;;  %v3825_v43 = vor.u32 %v4840_v35, %v3824_v34  ;;  %v3752_v44 = vld [vmem:[#allocation2 + $0x320] sm:$0xf]  ;;  %v4822_v45 = vld [vmem:[#allocation2 + $0x324] sm:$0xf0]  ;;  %v3689_v49 = vor.u32 %v4806_v42, %v3688_v41  ;;  %v3616_v50 = vld [vmem:[#allocation2 + $0x210] sm:$0xf] }
  0x3c   :  { %1106 = vmatpush.bf16.msrb.mxu1 %v3721_v57  ;;  %v3816_v46 = vld [vmem:[#allocation2 + $0x3a0] sm:$0xf]  ;;  %v4838_v47 = vld [vmem:[#allocation2 + $0x3a4] sm:$0xf0]  ;;  %v4788_v51 = vld [vmem:[#allocation2 + $0x214] sm:$0xf0]  ;;  %v3753_v52 = vor.u32 %v4822_v45, %v3752_v44 }
  0x3d   :  { %1120 = vmatpush.bf16.msrb.mxu2 %v3785_v62  ;;  %v3680_v53 = vld [vmem:[#allocation2 + $0x290] sm:$0xf]  ;;  %v4804_v54 = vld [vmem:[#allocation2 + $0x294] sm:$0xf0]  ;;  %v3817_v56 = vor.u32 %v4838_v47, %v3816_v46  ;;  %v3608_v61 = vld [vmem:[#allocation2 + $0x200] sm:$0xf]  ;;  %v3617_v1 = vor.u32 %v4788_v51, %v3616_v50 }
  0x3e   :  { %1134 = vmatpush.bf16.msrb.mxu3 %v3849_v3  ;;  %v3744_v55 = vld [vmem:[#allocation2 + $0x310] sm:$0xf]  ;;  %v4820_v57 = vld [vmem:[#allocation2 + $0x314] sm:$0xf0]  ;;  %v4786_v62 = vld [vmem:[#allocation2 + $0x204] sm:$0xf0]  ;;  %v3681_v3 = vor.u32 %v4804_v54, %v3680_v53 }
  0x3f   :  { %1093 = vmatpush.bf16.msrb.mxu0 %v3649_v11  ;;  %v3808_v58 = vld [vmem:[#allocation2 + $0x390] sm:$0xf]  ;;  %v4836_v59 = vld [vmem:[#allocation2 + $0x394] sm:$0xf0]  ;;  %v3672_v63 = vld [vmem:[#allocation2 + $0x280] sm:$0xf]  ;;  %v3745_v7 = vor.u32 %v4820_v57, %v3744_v55  ;;  %v3609_v20 = vor.u32 %v4786_v62, %v3608_v61 }
  0x40   :  { %1107 = vmatpush.bf16.msrb.mxu1 %v3713_v12  ;;  %v4802_v0 = vld [vmem:[#allocation2 + $0x284] sm:$0xf0]  ;;  %v3736_v4 = vld [vmem:[#allocation2 + $0x300] sm:$0xf]  ;;  %v3920_v6 = vld [vmem:[#allocation2 + $0x470] sm:$0xf]  ;;  %v3809_v12 = vor.u32 %v4836_v59, %v3808_v58 }
  0x41   :  { %1121 = vmatpush.bf16.msrb.mxu2 %v3777_v15  ;;  %v4818_v5 = vld [vmem:[#allocation2 + $0x304] sm:$0xf0]  ;;  %v4864_v9 = vld [vmem:[#allocation2 + $0x474] sm:$0xf0]  ;;  %v4735_v10 = vld [vmem:[#allocation2 + $0x74] sm:$0xf]  ;;  %v3673_v21 = vor.u32 %v4802_v0, %v3672_v63 }
  0x42   :  { %1135 = vmatpush.bf16.msrb.mxu3 %v3841_v19  ;;  %v3410_v11 = vld [vmem:[#allocation2 + $0x78] sm:$0xf0]  ;;  %v4751_v13 = vld [vmem:[#allocation2 + $0xf4] sm:$0xf]  ;;  %v3800_v16 = vld [vmem:[#allocation2 + $0x380] sm:$0xf]  ;;  %v3921_v26 = vor.u32 %v4864_v9, %v3920_v6 }
  0x43   :  { %1094 = vmatpush.bf16.msrb.mxu0 %v3641_v24  ;;  %v3474_v15 = vld [vmem:[#allocation2 + $0xf8] sm:$0xf0]  ;;  %v4834_v17 = vld [vmem:[#allocation2 + $0x384] sm:$0xf0]  ;;  %v3332_v18 = vld [vmem:[%s5867_s0 + $0x10] sm:$0xf]  ;;  %v3413_v30 = vor.u32 %v4735_v10, %v3410_v11 }
  0x44   :  { %1108 = vmatpush.bf16.msrb.mxu1 %v3705_v25  ;;  %v4718_v19 = vld [vmem:[%s5867_s0 + $0x30] sm:$0xf0]  ;;  %v3340_v22 = vld [vmem:[%s5867_s0 + $0x18] sm:$0xf]  ;;  %v4719_v23 = vld [vmem:[%s5867_s0 + $0x38] sm:$0xf0]  ;;  %v3737_v25 = vor.u32 %v4818_v5, %v3736_v4  ;;  %v3801_v35 = vor.u32 %v4834_v17, %v3800_v16 }
  0x45   :  { %1122 = vmatpush.bf16.msrb.mxu2 %v3769_v27  ;;  %v4767_v24 = vld [vmem:[#allocation2 + $0x174] sm:$0xf]  ;;  %v3538_v27 = vld [vmem:[#allocation2 + $0x178] sm:$0xf0]  ;;  %v3334_v29 = vld [vmem:[%s5867_s0 + $0x34] sm:$0xf0]  ;;  %v5437_v40 = vor.u32 %v4719_v23, %v3340_v22 }
  0x46   :  { %1136 = vmatpush.bf16.msrb.mxu3 %v3833_v31  ;;  %v4714_v28 = vld [vmem:[%s5867_s0 + $0x14] sm:$0xf]  ;;  %v3477_v31 = vor.u32 %v4751_v13, %v3474_v15  ;;  %v4715_v32 = vld [vmem:[%s5867_s0 + $0x1c] sm:$0xf]  ;;  %v3912_v33 = vld [vmem:[#allocation2 + $0x460] sm:$0xf]  ;;  %v3541_v41 = vor.u32 %v4767_v24, %v3538_v27 }
  0x47   :  { %1095 = vmatpush.bf16.msrb.mxu0 %v3633_v36  ;;  %v4862_v34 = vld [vmem:[#allocation2 + $0x464] sm:$0xf0]  ;;  %v5432_v36 = vor.u32 %v4718_v19, %v3332_v18  ;;  %v4733_v38 = vld [vmem:[#allocation2 + $0x64] sm:$0xf]  ;;  %v5439_v44 = vor.u32 %v4714_v28, %v3334_v29  ;;  %v3530_v47 = vld [vmem:[#allocation2 + $0x168] sm:$0xf0] }
  0x48   :  { %1109 = vmatpush.bf16.msrb.mxu1 %v3697_v37  ;;  %v3342_v37 = vld [vmem:[%s5867_s0 + $0x3c] sm:$0xf0]  ;;  %v4749_v42 = vld [vmem:[#allocation2 + $0xe4] sm:$0xf]  ;;  %v3913_v45 = vor.u32 %v4862_v34, %v3912_v33  ;;  %v3904_v50 = vld [vmem:[#allocation2 + $0x450] sm:$0xf] }
  0x49   :  { %1123 = vmatpush.bf16.msrb.mxu2 %v3761_v39  ;;  %v3402_v39 = vld [vmem:[#allocation2 + $0x68] sm:$0xf0]  ;;  %v4765_v46 = vld [vmem:[#allocation2 + $0x164] sm:$0xf]  ;;  %v4860_v51 = vld [vmem:[#allocation2 + $0x454] sm:$0xf0] }
  0x4a   :  { %1137 = vmatpush.bf16.msrb.mxu3 %v3825_v43  ;;  %v3466_v43 = vld [vmem:[#allocation2 + $0xe8] sm:$0xf0]  ;;  %v4731_v53 = vld [vmem:[#allocation2 + $0x54] sm:$0xf]  ;;  %v3394_v54 = vld [vmem:[#allocation2 + $0x58] sm:$0xf0]  ;;  %v3533_v55 = vor.u32 %v4765_v46, %v3530_v47  ;;  %v3905_v58 = vor.u32 %v4860_v51, %v3904_v50 }
  0x4b   :  { %1096 = vmatpush.bf16.msrb.mxu0 %v3625_v48  ;;  %v5441_v48 = vor.u32 %v4715_v32, %v3342_v37  ;;  %v3458_v57 = vld [vmem:[#allocation2 + $0xd8] sm:$0xf0]  ;;  %v4763_v59 = vld [vmem:[#allocation2 + $0x154] sm:$0xf]  ;;  %v3397_v62 = vor.u32 %v4731_v53, %v3394_v54  ;;  %v3896_v63 = vld [vmem:[#allocation2 + $0x440] sm:$0xf] }
  0x4c   :  { %1110 = vmatpush.bf16.msrb.mxu1 %v3689_v49  ;;  %v3405_v49 = vor.u32 %v4733_v38, %v3402_v39  ;;  %v3522_v61 = vld [vmem:[#allocation2 + $0x158] sm:$0xf0]  ;;  %v4858_v0 = vld [vmem:[#allocation2 + $0x444] sm:$0xf0]  ;;  %v3386_v4 = vld [vmem:[#allocation2 + $0x48] sm:$0xf0] }
  0x4d   :  { %1124 = vmatpush.bf16.msrb.mxu2 %v3753_v52  ;;  %v3469_v52 = vor.u32 %v4749_v42, %v3466_v43  ;;  %v3525_v5 = vor.u32 %v4763_v59, %v3522_v61  ;;  %v4745_v6 = vld [vmem:[#allocation2 + $0xc4] sm:$0xf]  ;;  %v3897_v9 = vor.u32 %v4858_v0, %v3896_v63  ;;  %v3514_v11 = vld [vmem:[#allocation2 + $0x148] sm:$0xf0]  ;;  %v3888_v13 = vld [vmem:[#allocation2 + $0x430] sm:$0xf] }
  0x4e   :  { %1138 = vmatpush.bf16.msrb.mxu3 %v3817_v56  ;;  %v4747_v56 = vld [vmem:[#allocation2 + $0xd4] sm:$0xf]  ;;  %v4761_v10 = vld [vmem:[#allocation2 + $0x144] sm:$0xf]  ;;  %v4856_v15 = vld [vmem:[#allocation2 + $0x434] sm:$0xf0] }
  0x4f   :  { %1097 = vmatpush.bf16.msrb.mxu0 %v3617_v1  ;;  %v3461_v1 = vor.u32 %v4747_v56, %v3458_v57  ;;  %v4727_v17 = vld [vmem:[#allocation2 + $0x34] sm:$0xf]  ;;  %v3378_v18 = vld [vmem:[#allocation2 + $0x38] sm:$0xf0]  ;;  %v3517_v19 = vor.u32 %v4761_v10, %v3514_v11  ;;  %v3889_v22 = vor.u32 %v4856_v15, %v3888_v13  ;;  %v4854_v27 = vld [vmem:[#allocation2 + $0x424] sm:$0xf0] }
  0x50   :  { %1111 = vmatpush.bf16.msrb.mxu1 %v3681_v3  ;;  %v4729_v3 = vld [vmem:[#allocation2 + $0x44] sm:$0xf]  ;;  %v4759_v23 = vld [vmem:[#allocation2 + $0x134] sm:$0xf]  ;;  %v3506_v24 = vld [vmem:[#allocation2 + $0x138] sm:$0xf0] }
  0x51   :  { %1125 = vmatpush.bf16.msrb.mxu2 %v3745_v7  ;;  %v3450_v7 = vld [vmem:[#allocation2 + $0xc8] sm:$0xf0]  ;;  %v4725_v29 = vld [vmem:[#allocation2 + $0x24] sm:$0xf]  ;;  %v3872_v39 = vld [vmem:[#allocation2 + $0x410] sm:$0xf] }
  0x52   :  { %1139 = vmatpush.bf16.msrb.mxu3 %v3809_v12  ;;  %v3389_v12 = vor.u32 %v4729_v3, %v3386_v4  ;;  %v3453_v16 = vor.u32 %v4745_v6, %v3450_v7  ;;  %v4741_v32 = vld [vmem:[#allocation2 + $0xa4] sm:$0xf]  ;;  %v3434_v33 = vld [vmem:[#allocation2 + $0xa8] sm:$0xf0]  ;;  %v4723_v43 = vld [vmem:[#allocation2 + $0x14] sm:$0xf] }
  0x53   :  { %1098 = vmatpush.bf16.msrb.mxu0 %v3609_v20  ;;  %v4743_v20 = vld [vmem:[#allocation2 + $0xb4] sm:$0xf]  ;;  %v3498_v37 = vld [vmem:[#allocation2 + $0x128] sm:$0xf0]  ;;  %v3437_v42 = vor.u32 %v4741_v32, %v3434_v33  ;;  %v3490_v51 = vld [vmem:[#allocation2 + $0x118] sm:$0xf0] }
  0x54   :  { %1112 = vmatpush.bf16.msrb.mxu1 %v3673_v21  ;;  %v3442_v21 = vld [vmem:[#allocation2 + $0xb8] sm:$0xf0]  ;;  %v4739_v46 = vld [vmem:[#allocation2 + $0x94] sm:$0xf]  ;;  %v3864_v53 = vld [vmem:[#allocation2 + $0x400] sm:$0xf] }
  0x55   :  { %1126 = vmatpush.bf16.msrb.mxu2 %v3737_v25  ;;  %v3381_v25 = vor.u32 %v4727_v17, %v3378_v18  ;;  %v3445_v28 = vor.u32 %v4743_v20, %v3442_v21  ;;  %v4755_v50 = vld [vmem:[#allocation2 + $0x114] sm:$0xf]  ;;  %v4850_v54 = vld [vmem:[#allocation2 + $0x404] sm:$0xf0]  ;;  %v3354_v57 = vld [vmem:[#allocation2 + $0x8] sm:$0xf0] }
  0x56   :  { %1140 = vmatpush.bf16.msrb.mxu3 %v3801_v35  ;;  %1099 = vmatmul.bf16.vlgmr.msrb.gmra.mxu0 %v5432_v36  ;;  %v4757_v35 = vld [vmem:[#allocation2 + $0x124] sm:$0xf]  ;;  %v3418_v59 = vld [vmem:[#allocation2 + $0x88] sm:$0xf0]  ;;  %v3602_v63 = vld [vmem:[#allocation2 + $0x1f8] sm:$0xf0]  ;;  %v3865_v6 = vor.u32 %v4850_v54, %v3864_v53 }
  0x57   :  { %1147 = vmatpush.bf16.msra.mxu0 %v3921_v26  ;;  %1113 = vmatmul.bf16.vlgmr.msrb.gmra.mxu1 %v5439_v44  ;;  %v3880_v26 = vld [vmem:[#allocation2 + $0x420] sm:$0xf]  ;;  %v3501_v47 = vor.u32 %v4757_v35, %v3498_v37  ;;  %v4799_v0 = vld [vmem:[#allocation2 + $0x274] sm:$0xf]  ;;  %v3666_v3 = vld [vmem:[#allocation2 + $0x278] sm:$0xf0] }
  0x58   :  { %1161 = vmatpush.bf16.msra.mxu1 %v3413_v30  ;;  %1127 = vmatmul.bf16.vlgmr.msrb.gmra.mxu2 %v5437_v40  ;;  %v3370_v30 = vld [vmem:[#allocation2 + $0x28] sm:$0xf0]  ;;  %v3881_v34 = vor.u32 %v4854_v27, %v3880_v26  ;;  %v4815_v4 = vld [vmem:[#allocation2 + $0x2f4] sm:$0xf]  ;;  %v4753_v7 = vld [vmem:[#allocation2 + $0x104] sm:$0xf]  ;;  %v3669_v18 = vor.u32 %v4799_v0, %v3666_v3 }
  0x59   :  { %1175 = vmatpush.bf16.msra.mxu2 %v3477_v31  ;;  %1141 = vmatmul.bf16.vlgmr.msrb.gmra.mxu3 %v5441_v48  ;;  %v3509_v31 = vor.u32 %v4759_v23, %v3506_v24  ;;  %v3373_v38 = vor.u32 %v4725_v29, %v3370_v30  ;;  %v3348_v10 = vld [vmem:[%s5867_s0 + $0x20] sm:$0xf]  ;;  %v4720_v13 = vld [vmem:[%s5867_s0 + $0x40] sm:$0xf0]  ;;  %v4831_v15 = vld [vmem:[#allocation2 + $0x374] sm:$0xf] }
  0x5a   :  { %1189 = vmatpush.bf16.msra.mxu3 %v3541_v41  ;;  %v4852_v41 = vld [vmem:[#allocation2 + $0x414] sm:$0xf0]  ;;  %v3594_v20 = vld [vmem:[#allocation2 + $0x1e8] sm:$0xf0]  ;;  %v4797_v23 = vld [vmem:[#allocation2 + $0x264] sm:$0xf] }
  0x5b   :  { %1148 = vmatpush.bf16.msra.mxu0 %v3913_v45  ;;  %v3362_v45 = vld [vmem:[#allocation2 + $0x18] sm:$0xf0]  ;;  %v3658_v24 = vld [vmem:[#allocation2 + $0x268] sm:$0xf0]  ;;  %v4813_v27 = vld [vmem:[#allocation2 + $0x2e4] sm:$0xf] }
  0x5c   :  { %1162 = vmatpush.bf16.msra.mxu1 %v3405_v49  ;;  %v3426_v49 = vld [vmem:[#allocation2 + $0x98] sm:$0xf0]  ;;  %v3365_v56 = vor.u32 %v4723_v43, %v3362_v45  ;;  %v4829_v30 = vld [vmem:[#allocation2 + $0x364] sm:$0xf]  ;;  %v3661_v32 = vor.u32 %v4797_v23, %v3658_v24  ;;  %v4779_v33 = vld [vmem:[#allocation2 + $0x1d4] sm:$0xf] }
  0x5d   :  { %1176 = vmatpush.bf16.msra.mxu2 %v3469_v52  ;;  %v3873_v52 = vor.u32 %v4852_v41, %v3872_v39  ;;  %v3429_v61 = vor.u32 %v4739_v46, %v3426_v49  ;;  %v4795_v37 = vld [vmem:[#allocation2 + $0x254] sm:$0xf]  ;;  %v3778_v46 = vld [vmem:[#allocation2 + $0x358] sm:$0xf0]  ;;  %v3642_v53 = vld [vmem:[#allocation2 + $0x248] sm:$0xf0] }
  0x5e   :  { %1190 = vmatpush.bf16.msra.mxu3 %v3533_v55  ;;  %v4721_v55 = vld [vmem:[#allocation2 + $0x4] sm:$0xf]  ;;  %v4811_v39 = vld [vmem:[#allocation2 + $0x2d4] sm:$0xf]  ;;  %v3634_v0 = vld [vmem:[#allocation2 + $0x238] sm:$0xf0] }
  0x5f   :  { %1149 = vmatpush.bf16.msra.mxu0 %v3905_v58  ;;  %v4737_v58 = vld [vmem:[#allocation2 + $0x84] sm:$0xf]  ;;  %v3357_v11 = vor.u32 %v4721_v55, %v3354_v57  ;;  %v4827_v43 = vld [vmem:[#allocation2 + $0x354] sm:$0xf]  ;;  %v3554_v23 = vld [vmem:[#allocation2 + $0x198] sm:$0xf0] }
  0x60   :  { %1163 = vmatpush.bf16.msra.mxu1 %v3397_v62  ;;  %v4783_v62 = vld [vmem:[#allocation2 + $0x1f4] sm:$0xf]  ;;  %v3421_v17 = vor.u32 %v4737_v58, %v3418_v59  ;;  %v3781_v54 = vor.u32 %v4827_v43, %v3778_v46  ;;  %v4809_v55 = vld [vmem:[#allocation2 + $0x2c4] sm:$0xf]  ;;  %v3770_v59 = vld [vmem:[#allocation2 + $0x348] sm:$0xf0] }
  0x61   :  { %1177 = vmatpush.bf16.msra.mxu2 %v3461_v1  ;;  %v3493_v1 = vor.u32 %v4755_v50, %v3490_v51  ;;  %v3578_v50 = vld [vmem:[#allocation2 + $0x1c8] sm:$0xf0]  ;;  %v4825_v58 = vld [vmem:[#allocation2 + $0x344] sm:$0xf]  ;;  %v4807_v3 = vld [vmem:[#allocation2 + $0x2b4] sm:$0xf] }
  0x62   :  { %1191 = vmatpush.bf16.msra.mxu3 %v3525_v5  ;;  %v3730_v5 = vld [vmem:[#allocation2 + $0x2f8] sm:$0xf0]  ;;  %v4847_v43 = vld [vmem:[#allocation2 + $0x3f4] sm:$0xf] }
  0x63   :  { %1150 = vmatpush.bf16.msra.mxu0 %v3897_v9  ;;  %v3482_v9 = vld [vmem:[#allocation2 + $0x108] sm:$0xf0]  ;;  %v3733_v21 = vor.u32 %v4815_v4, %v3730_v5  ;;  %v4823_v5 = vld [vmem:[#allocation2 + $0x334] sm:$0xf] }
  0x64   :  { %1164 = vmatpush.bf16.msra.mxu1 %v3389_v12  ;;  %v3605_v12 = vor.u32 %v4783_v62, %v3602_v63  ;;  %v3570_v62 = vld [vmem:[#allocation2 + $0x1b8] sm:$0xf0]  ;;  %v4791_v63 = vld [vmem:[#allocation2 + $0x234] sm:$0xf] }
  0x65   :  { %1178 = vmatpush.bf16.msra.mxu2 %v3453_v16  ;;  %v3794_v16 = vld [vmem:[#allocation2 + $0x378] sm:$0xf0] }
  0x66   :  { %1192 = vmatpush.bf16.msra.mxu3 %v3517_v19  ;;  %v4781_v19 = vld [vmem:[#allocation2 + $0x1e4] sm:$0xf]  ;;  %v3797_v26 = vor.u32 %v4831_v15, %v3794_v16 }
  0x67   :  { %1151 = vmatpush.bf16.msra.mxu0 %v3889_v22  ;;  %v3485_v22 = vor.u32 %v4753_v7, %v3482_v9  ;;  %v3597_v29 = vor.u32 %v4781_v19, %v3594_v20  ;;  %v3637_v7 = vor.u32 %v4791_v63, %v3634_v0  ;;  %v4773_v9 = vld [vmem:[#allocation2 + $0x1a4] sm:$0xf]  ;;  %v3754_v20 = vld [vmem:[#allocation2 + $0x328] sm:$0xf0]  ;;  %v4843_v0 = vld [vmem:[#allocation2 + $0x3d4] sm:$0xf] }
  0x68   :  { %1165 = vmatpush.bf16.msra.mxu1 %v3381_v25  ;;  %v5453_v25 = vor.u32 %v4720_v13, %v3348_v10  ;;  %v3562_v10 = vld [vmem:[#allocation2 + $0x1a8] sm:$0xf0]  ;;  %v4805_v16 = vld [vmem:[#allocation2 + $0x2a4] sm:$0xf] }
  0x69   :  { %1179 = vmatpush.bf16.msra.mxu2 %v3445_v28  ;;  %v3722_v28 = vld [vmem:[#allocation2 + $0x2e8] sm:$0xf0]  ;;  %v4821_v19 = vld [vmem:[#allocation2 + $0x324] sm:$0xf] }
  0x6a   :  { %1193 = vmatpush.bf16.msra.mxu3 %v3509_v31  ;;  %v3786_v31 = vld [vmem:[#allocation2 + $0x368] sm:$0xf0]  ;;  %v3725_v35 = vor.u32 %v4813_v27, %v3722_v28  ;;  %v3618_v27 = vld [vmem:[#allocation2 + $0x218] sm:$0xf0]  ;;  %v3757_v28 = vor.u32 %v4821_v19, %v3754_v20 }
  0x6b   :  { %1152 = vmatpush.bf16.msra.mxu0 %v3881_v34  ;;  %v3586_v34 = vld [vmem:[#allocation2 + $0x1d8] sm:$0xf0]  ;;  %v3789_v41 = vor.u32 %v4829_v30, %v3786_v31  ;;  %v3626_v13 = vld [vmem:[#allocation2 + $0x228] sm:$0xf0] }
  0x6c   :  { %1166 = vmatpush.bf16.msra.mxu1 %v3373_v38  ;;  %v3650_v38 = vld [vmem:[#allocation2 + $0x258] sm:$0xf0]  ;;  %v3589_v45 = vor.u32 %v4779_v33, %v3586_v34  ;;  %v4769_v34 = vld [vmem:[#allocation2 + $0x184] sm:$0xf]  ;;  %v3882_v19 = vld [vmem:[#allocation2 + $0x428] sm:$0xf0] }
  0x6d   :  { %1180 = vmatpush.bf16.msra.mxu2 %v3437_v42  ;;  %v3714_v42 = vld [vmem:[#allocation2 + $0x2d8] sm:$0xf0]  ;;  %v3653_v49 = vor.u32 %v4795_v37, %v3650_v38  ;;  %v3546_v37 = vld [vmem:[#allocation2 + $0x188] sm:$0xf0]  ;;  %v4785_v38 = vld [vmem:[#allocation2 + $0x204] sm:$0xf] }
  0x6e   :  { %1194 = vmatpush.bf16.msra.mxu3 %v3501_v47  ;;  %v4777_v47 = vld [vmem:[#allocation2 + $0x1c4] sm:$0xf]  ;;  %v3717_v51 = vor.u32 %v4811_v39, %v3714_v42  ;;  %v3682_v30 = vld [vmem:[#allocation2 + $0x298] sm:$0xf0]  ;;  %v3610_v39 = vld [vmem:[#allocation2 + $0x208] sm:$0xf0] }
  0x6f   :  { %1153 = vmatpush.bf16.msra.mxu0 %v3873_v52  ;;  %v4793_v52 = vld [vmem:[#allocation2 + $0x244] sm:$0xf]  ;;  %v3581_v57 = vor.u32 %v4777_v47, %v3578_v50  ;;  %v3746_v33 = vld [vmem:[#allocation2 + $0x318] sm:$0xf0]  ;;  %v3674_v47 = vld [vmem:[#allocation2 + $0x288] sm:$0xf0] }
  0x70   :  { %1167 = vmatpush.bf16.msra.mxu1 %v3365_v56  ;;  %v3706_v56 = vld [vmem:[#allocation2 + $0x2c8] sm:$0xf0]  ;;  %v4801_v42 = vld [vmem:[#allocation2 + $0x284] sm:$0xf]  ;;  %v3922_v50 = vld [vmem:[#allocation2 + $0x478] sm:$0xf0] }
  0x71   :  { %1181 = vmatpush.bf16.msra.mxu2 %v3429_v61  ;;  %v4775_v61 = vld [vmem:[#allocation2 + $0x1b4] sm:$0xf] }
  0x72   :  { %1195 = vmatpush.bf16.msra.mxu3 %v3493_v1  ;;  %v3773_v1 = vor.u32 %v4825_v58, %v3770_v59  ;;  %v3573_v4 = vor.u32 %v4775_v61, %v3570_v62  ;;  %v4845_v58 = vld [vmem:[#allocation2 + $0x3e4] sm:$0xf]  ;;  %v3850_v59 = vld [vmem:[#allocation2 + $0x3e8] sm:$0xf0] }
  0x73   :  { %1154 = vmatpush.bf16.msra.mxu0 %v3865_v6  ;;  %v3762_v6 = vld [vmem:[#allocation2 + $0x338] sm:$0xf0]  ;;  %v4861_v61 = vld [vmem:[#allocation2 + $0x464] sm:$0xf]  ;;  %v3914_v62 = vld [vmem:[#allocation2 + $0x468] sm:$0xf0] }
  0x74   :  { %1168 = vmatpush.bf16.msra.mxu1 %v3357_v11  ;;  %v3765_v15 = vor.u32 %v4823_v5, %v3762_v6  ;;  %v3917_v63 = vor.u32 %v4861_v61, %v3914_v62  ;;  %v4841_v6 = vld [vmem:[#allocation2 + $0x3c4] sm:$0xf] }
  0x75   :  { %1182 = vmatpush.bf16.msra.mxu2 %v3421_v17  ;;  %v3690_v17 = vld [vmem:[#allocation2 + $0x2a8] sm:$0xf0] }
  0x76   :  { %1196 = vmatpush.bf16.msra.mxu3 %v3485_v22  ;;  %1155 = vmatmul.bf16.vlgmr.msra.gmra.mxu0 %v5453_v25  ;;  %v4771_v22 = vld [vmem:[#allocation2 + $0x194] sm:$0xf]  ;;  %v3693_v24 = vor.u32 %v4805_v16, %v3690_v17  ;;  %v4837_v17 = vld [vmem:[#allocation2 + $0x3a4] sm:$0xf] }
  0x77   :  { %1203 = vmatpush.bf16.msrb.mxu0 %v3605_v12  ;;  %1169 = vmatmul.bf16.vlgmr.msra.gmra.mxu1 %v5384_v60  ;;  %v3698_v60 = vld [vmem:[#allocation2 + $0x2b8] sm:$0xf0]  ;;  %v4789_v12 = vld [vmem:[#allocation2 + $0x224] sm:$0xf]  ;;  %v3557_v31 = vor.u32 %v4771_v22, %v3554_v23  ;;  %v4835_v22 = vld [vmem:[#allocation2 + $0x394] sm:$0xf] }
  0x78   :  { %1217 = vmatpush.bf16.msrb.mxu1 %v3669_v18  ;;  %1183 = vmatmul.bf16.vlgmr.msra.gmra.mxu2 %v5399_v8  ;;  %v3645_v8 = vor.u32 %v4793_v52, %v3642_v53  ;;  %v3701_v11 = vor.u32 %v4807_v3, %v3698_v60  ;;  %v3565_v18 = vor.u32 %v4773_v9, %v3562_v10  ;;  %v4817_v52 = vld [vmem:[#allocation2 + $0x304] sm:$0xf]  ;;  %v3738_v53 = vld [vmem:[#allocation2 + $0x308] sm:$0xf0]  ;;  %v4859_v3 = vld [vmem:[#allocation2 + $0x454] sm:$0xf] }
  0x79   :  { %1231 = vmatpush.bf16.msrb.mxu2 %v3733_v21  ;;  %1197 = vmatmul.bf16.vlgmr.msra.gmra.mxu3 %v5389_v2  ;;  %v3709_v2 = vor.u32 %v4809_v55, %v3706_v56  ;;  %v3629_v21 = vor.u32 %v4789_v12, %v3626_v13  ;;  %v3677_v56 = vor.u32 %v4801_v42, %v3674_v47  ;;  %v3906_v60 = vld [vmem:[#allocation2 + $0x458] sm:$0xf0]  ;;  %v4857_v9 = vld [vmem:[#allocation2 + $0x444] sm:$0xf]  ;;  %v3898_v10 = vld [vmem:[#allocation2 + $0x448] sm:$0xf0] }
  0x7a   :  { %1245 = vmatpush.bf16.msrb.mxu3 %v3797_v26  ;;  %v4787_v26 = vld [vmem:[#allocation2 + $0x214] sm:$0xf]  ;;  %v3909_v5 = vor.u32 %v4859_v3, %v3906_v60  ;;  %v3826_v13 = vld [vmem:[#allocation2 + $0x3b8] sm:$0xf0] }
  0x7b   :  { %1204 = vmatpush.bf16.msrb.mxu0 %v3597_v29  ;;  %v4803_v29 = vld [vmem:[#allocation2 + $0x294] sm:$0xf]  ;;  %v3810_v23 = vld [vmem:[#allocation2 + $0x398] sm:$0xf0] }
  0x7c   :  { %1218 = vmatpush.bf16.msrb.mxu1 %v3661_v32  ;;  %v4819_v32 = vld [vmem:[#allocation2 + $0x314] sm:$0xf] }
  0x7d   :  { %1232 = vmatpush.bf16.msrb.mxu2 %v3725_v35  ;;  %v3621_v35 = vor.u32 %v4787_v26, %v3618_v27  ;;  %v3749_v46 = vor.u32 %v4819_v32, %v3746_v33  ;;  %v4839_v12 = vld [vmem:[#allocation2 + $0x3b4] sm:$0xf]  ;;  %v3874_v26 = vld [vmem:[#allocation2 + $0x418] sm:$0xf0]  ;;  %v3813_v27 = vor.u32 %v4835_v22, %v3810_v23  ;;  %v3866_v32 = vld [vmem:[#allocation2 + $0x408] sm:$0xf0] }
  0x7e   :  { %1246 = vmatpush.bf16.msrb.mxu3 %v3789_v41  ;;  %v3685_v41 = vor.u32 %v4803_v29, %v3682_v30  ;;  %v4833_v29 = vld [vmem:[#allocation2 + $0x384] sm:$0xf]  ;;  %v3802_v30 = vld [vmem:[#allocation2 + $0x388] sm:$0xf0] }
  0x7f   :  { %1205 = vmatpush.bf16.msrb.mxu0 %v3589_v45  ;;  %v3858_v45 = vld [vmem:[#allocation2 + $0x3f8] sm:$0xf0]  ;;  %v3805_v33 = vor.u32 %v4833_v29, %v3802_v30  ;;  %v4878_v22 = vld [vmem:[%s5870_s3 + $0x68] sm:$0xff] }
  0x80   :  { %1219 = vmatpush.bf16.msrb.mxu1 %v3653_v49  ;;  %v4863_v49 = vld [vmem:[#allocation2 + $0x474] sm:$0xf]  ;;  %v3861_v55 = vor.u32 %v4847_v43, %v3858_v45  ;;  %v4868_v43 = vld [vmem:[%s5870_s3 + $0x18] sm:$0xff] }
  0x81   :  { %1233 = vmatpush.bf16.msrb.mxu2 %v3717_v51  ;;  %v3549_v51 = vor.u32 %v4769_v34, %v3546_v37  ;;  %v4871_v37 = vld [vmem:[%s5870_s3 + $0x30] sm:$0xff] }
  0x82   :  { %1247 = vmatpush.bf16.msrb.mxu3 %v3781_v54  ;;  %v3613_v54 = vor.u32 %v4785_v38, %v3610_v39  ;;  %v4870_v39 = vld [vmem:[%s5870_s3 + $0x28] sm:$0xff] }
  0x83   :  { %1206 = vmatpush.bf16.msrb.mxu0 %v3581_v57  ;;  %v3925_v57 = vor.u32 %v4863_v49, %v3922_v50  ;;  %v4867_v50 = vld [vmem:[%s5870_s3 + $0x10] sm:$0xff] }
  0x84   :  { %1220 = vmatpush.bf16.msrb.mxu1 %v3645_v8  ;;  %v3741_v8 = vor.u32 %v4817_v52, %v3738_v53  ;;  %v4866_v52 = vld [vmem:[%s5870_s3 + $0x8] sm:$0xff] }
  0x85   :  { %1234 = vmatpush.bf16.msrb.mxu2 %v3709_v2  ;;  %v3853_v2 = vor.u32 %v4845_v58, %v3850_v59 }
  0x86   :  { %1248 = vmatpush.bf16.msrb.mxu3 %v3773_v1  ;;  %v3842_v1 = vld [vmem:[#allocation2 + $0x3d8] sm:$0xf0] }
  0x87   :  { %1207 = vmatpush.bf16.msrb.mxu0 %v3573_v4  ;;  %v3845_v4 = vor.u32 %v4843_v0, %v3842_v1 }
  0x88   :  { %1221 = vmatpush.bf16.msrb.mxu1 %v3637_v7  ;;  %v3834_v7 = vld [vmem:[#allocation2 + $0x3c8] sm:$0xf0] }
  0x89   :  { %1235 = vmatpush.bf16.msrb.mxu2 %v3701_v11  ;;  %v3837_v11 = vor.u32 %v4841_v6, %v3834_v7 }
  0x8a   :  { %1249 = vmatpush.bf16.msrb.mxu3 %v3765_v15  ;;  %v4855_v15 = vld [vmem:[#allocation2 + $0x434] sm:$0xf] }
  0x8b   :  { %1208 = vmatpush.bf16.msrb.mxu0 %v3565_v18  ;;  %v4853_v18 = vld [vmem:[#allocation2 + $0x424] sm:$0xf] }
  0x8c   :  { %1222 = vmatpush.bf16.msrb.mxu1 %v3629_v21  ;;  %v3885_v21 = vor.u32 %v4853_v18, %v3882_v19  ;;  %v4879_v19 = vld [vmem:[%s5870_s3 + $0x70] sm:$0xff] }
  0x8d   :  { %1236 = vmatpush.bf16.msrb.mxu2 %v3693_v24  ;;  %v4851_v24 = vld [vmem:[#allocation2 + $0x414] sm:$0xf] }
  0x8e   :  { %1250 = vmatpush.bf16.msrb.mxu3 %v3757_v28  ;;  %v3877_v28 = vor.u32 %v4851_v24, %v3874_v26  ;;  %v4877_v24 = vld [vmem:[%s5870_s3 + $0x60] sm:$0xff] }
  0x8f   :  { %1209 = vmatpush.bf16.msrb.mxu0 %v3557_v31  ;;  %v4849_v31 = vld [vmem:[#allocation2 + $0x404] sm:$0xf] }
  0x90   :  { %1223 = vmatpush.bf16.msrb.mxu1 %v3621_v35  ;;  %v3869_v34 = vor.u32 %v4849_v31, %v3866_v32  ;;  %v4872_v35 = vld [vmem:[%s5870_s3 + $0x38] sm:$0xff]  ;;  %v4875_v31 = vld [vmem:[%s5870_s3 + $0x50] sm:$0xff] }
  0x91   :  { %1237 = vmatpush.bf16.msrb.mxu2 %v3685_v41 }
  0x92   :  { %1251 = vmatpush.bf16.msrb.mxu3 %v3749_v46 }
  0x93   :  { %1210 = vmatpush.bf16.msrb.mxu0 %v3549_v51 }
  0x94   :  { %1224 = vmatpush.bf16.msrb.mxu1 %v3613_v54 }
  0x95   :  { %1238 = vmatpush.bf16.msrb.mxu2 %v3677_v56  ;;  %v4865_v56 = vld [vmem:[%s5870_s3] sm:$0xff] }
  0x96   :  { %1252 = vmatpush.bf16.msrb.mxu3 %v3741_v8  ;;  %1211 = vmatmul.bf16.vlgmr.msrb.gmra.mxu0 %v5407_v14  ;;  %v3901_v14 = vor.u32 %v4857_v9, %v3898_v10 }
  0x97   :  { %1259 = vmatpush.bf16.msra.mxu0 %v3861_v55  ;;  %1225 = vmatmul.bf16.vlgmr.msrb.gmra.mxu1 %v5432_v36  ;;  %v3890_v36 = vld [vmem:[#allocation2 + $0x438] sm:$0xf0] }
  0x98   :  { %1273 = vmatpush.bf16.msra.mxu1 %v3925_v57  ;;  %1239 = vmatmul.bf16.vlgmr.msrb.gmra.mxu2 %v5439_v44  ;;  %v3829_v44 = vor.u32 %v4839_v12, %v3826_v13  ;;  %v3893_v16 = vor.u32 %v4855_v15, %v3890_v36 }
  0x99   :  { %1253 = vmatmul.bf16.vlgmr.msrb.gmra.mxu3 %v5437_v40  ;;  %v3818_v40 = vld [vmem:[#allocation2 + $0x3a8] sm:$0xf0]  ;;  %1425 = vmatpush.bf16.msra.mxu2 %v4872_v35 }
  0x9a   :  { %v3821_v20 = vor.u32 %v4837_v17, %v3818_v40  ;;  %v4880_v17 = vld [vmem:[%s5870_s3 + $0x78] sm:$0xff] }
  0x9b   :  { %1260 = vmatpush.bf16.msra.mxu0 %v3853_v2  ;;  %1439 = vmatpush.bf16.msra.mxu3 %v4880_v17 }
  0x9c   :  { %1274 = vmatpush.bf16.msra.mxu1 %v3917_v63 }
  0x9d   :  { %1426 = vmatpush.bf16.msra.mxu2 %v4871_v37 }
  0x9f   :  { %1261 = vmatpush.bf16.msra.mxu0 %v3845_v4  ;;  %1440 = vmatpush.bf16.msra.mxu3 %v4879_v19 }
  0xa0   :  { %1275 = vmatpush.bf16.msra.mxu1 %v3909_v5 }
  0xa1   :  { %1427 = vmatpush.bf16.msra.mxu2 %v4870_v39  ;;  %v4873_v39 = vld [vmem:[%s5870_s3 + $0x40] sm:$0xff] }
  0xa3   :  { %1262 = vmatpush.bf16.msra.mxu0 %v3837_v11  ;;  %1441 = vmatpush.bf16.msra.mxu3 %v4878_v22 }
  0xa4   :  { %1276 = vmatpush.bf16.msra.mxu1 %v3901_v14 }
  0xa7   :  { %1263 = vmatpush.bf16.msra.mxu0 %v3829_v44  ;;  %1442 = vmatpush.bf16.msra.mxu3 %v4877_v24 }
  0xa8   :  { %1277 = vmatpush.bf16.msra.mxu1 %v3893_v16 }
  0xab   :  { %1264 = vmatpush.bf16.msra.mxu0 %v3821_v20 }
  0xac   :  { %1278 = vmatpush.bf16.msra.mxu1 %v3885_v21 }
  0xaf   :  { %1265 = vmatpush.bf16.msra.mxu0 %v3813_v27  ;;  %v4876_v27 = vld [vmem:[%s5870_s3 + $0x58] sm:$0xff] }
  0xb0   :  { %1279 = vmatpush.bf16.msra.mxu1 %v3877_v28  ;;  %1443 = vmatpush.bf16.msra.mxu3 %v4876_v27  ;;  %v4893_v27 = vld [vmem:[#allocation4 + $0x20] sm:$0xff] }
  0xb3   :  { %1266 = vmatpush.bf16.msra.mxu0 %v3805_v33  ;;  %v1044_v38 = vpop.f32.mrf.mxu0  ;;  %v4874_v33 = vld [vmem:[%s5870_s3 + $0x48] sm:$0xff] }
  0xb4   :  { %1280 = vmatpush.bf16.msra.mxu1 %v3869_v34  ;;  %v1058_v41 = vpop.f32.mrf.mxu1  ;;  %1444 = vmatpush.bf16.msra.mxu3 %v4875_v31  ;;  %v4889_v31 = vld [vmem:[#allocation4] sm:$0xff] }
  0xb6   :  { %1267 = vmatmul.bf16.vlgmr.msra.gmra.mxu0 %v5441_v48  ;;  %v4869_v48 = vld [vmem:[%s5870_s3 + $0x20] sm:$0xff] }
  0xb7   :  { %1281 = vmatmul.bf16.vlgmr.msra.gmra.mxu1 %v5453_v25  ;;  %v5480_v25 = vld [vmem:[%s5869_s2] sm:$0x3]  ;;  %1428 = vmatpush.bf16.msra.mxu2 %v4869_v48 }
  0xb8   :  { %v265_v45 = vperm.slane %v5480_v25, 0  ;;  %v266_v28 = vperm.slane %v5480_v25, 1  ;;  %1445 = vmatpush.bf16.msra.mxu3 %v4874_v33  ;;  %v4912_v33 = vld [vmem:[#allocation6 + $0x74] sm:$0xf0] }
  0xba   :  { %v1045_v49 = vadd.f32 %v1044_v38, %v265_v45 }
  0xbb   :  { %v1072_v42 = vpop.f32.mrf.mxu2  ;;  %v1046_v46 = vpop.f32.mrf.mxu0  ;;  %1429 = vmatpush.bf16.msra.mxu2 %v4868_v43 }
  0xbc   :  { %v1086_v47 = vpop.f32.mrf.mxu3  ;;  %v1060_v51 = vpop.f32.mrf.mxu1  ;;  %v1059_v53 = vadd.f32 %v1058_v41, %v1045_v49  ;;  %v1047_v57 = vadd.f32 %v1046_v46, %v265_v45  ;;  %1446 = vmatpush.bf16.msra.mxu3 %v4873_v39  ;;  %v4910_v39 = vld [vmem:[#allocation6 + $0x64] sm:$0xf0] }
  0xbe   :  { %v1073_v58 = vadd.f32 %v1072_v42, %v1059_v53  ;;  %v1061_v8 = vadd.f32 %v1060_v51, %v1047_v57 }
  0xbf   :  { %1430 = vmatpush.bf16.msra.mxu2 %v4867_v50 }
  0xc0   :  { %v1087_v61 = vadd.f32 %v1086_v47, %v1073_v58 }
  0xc3   :  { %v1074_v54 = vpop.f32.mrf.mxu2  ;;  %1431 = vmatpush.bf16.msra.mxu2 %v4866_v52 }
  0xc4   :  { %v1088_v59 = vpop.f32.mrf.mxu3  ;;  %v1075_v63 = vadd.f32 %v1074_v54, %v1061_v8 }
  0xc6   :  { %v1089_v60 = vadd.f32 %v1088_v59, %v1075_v63 }
  0xc7   :  { %1432 = vmatpush.bf16.msra.mxu2 %v4865_v56 }
  0xd3   :  { %v1100_v55 = vpop.f32.mrf.mxu0 }
  0xd4   :  { %v1114_v62 = vpop.f32.mrf.mxu1  ;;  %v1101_v0 = vadd.f32 %v1100_v55, %v1087_v61 }
  0xd6   :  { %v1115_v4 = vadd.f32 %v1114_v62, %v1101_v0 }
  0xdb   :  { %v1128_v2 = vpop.f32.mrf.mxu2  ;;  %v1102_v1 = vpop.f32.mrf.mxu0 }
  0xdc   :  { %v1142_v3 = vpop.f32.mrf.mxu3  ;;  %v1103_v5 = vadd.f32 %v1102_v1, %v1089_v60  ;;  %v1116_v6 = vpop.f32.mrf.mxu1  ;;  %v1129_v7 = vadd.f32 %v1128_v2, %v1115_v4 }
  0xde   :  { %v1117_v11 = vadd.f32 %v1116_v6, %v1103_v5  ;;  %v1143_v12 = vadd.f32 %v1142_v3, %v1129_v7  ;;  %v4888_v5 = vld [vmem:[%s5872_s5 + $0x38] sm:$0xff]  ;;  %v4887_v6 = vld [vmem:[%s5872_s5 + $0x30] sm:$0xff]  ;;  %v4886_v7 = vld [vmem:[%s5872_s5 + $0x28] sm:$0xff] }
  0xdf   :  { %1524 = vmatpush.bf16.msrb.mxu0 %v4888_v5 }
  0xe3   :  { %v1130_v9 = vpop.f32.mrf.mxu2  ;;  %1525 = vmatpush.bf16.msrb.mxu0 %v4887_v6  ;;  %v4080_v6 = vld [vmem:[#allocation6 + $0x30] sm:$0xf] }
  0xe4   :  { %v1131_v14 = vadd.f32 %v1130_v9, %v1117_v11  ;;  %v1144_v13 = vpop.f32.mrf.mxu3  ;;  %v4885_v9 = vld [vmem:[%s5872_s5 + $0x20] sm:$0xff]  ;;  %v4883_v11 = vld [vmem:[%s5872_s5 + $0x10] sm:$0xff] }
  0xe6   :  { %v1145_v36 = vadd.f32 %v1144_v13, %v1131_v14  ;;  %v4882_v14 = vld [vmem:[%s5872_s5 + $0x8] sm:$0xff]  ;;  %v4896_v13 = vld [vmem:[#allocation4 + $0x38] sm:$0xff] }
  0xe7   :  { %1526 = vmatpush.bf16.msrb.mxu0 %v4886_v7  ;;  %1618 = vmatpush.bf16.msrb.mxu1 %v4896_v13  ;;  %v4904_v7 = vld [vmem:[#allocation6 + $0x34] sm:$0xf0]  ;;  %v4902_v13 = vld [vmem:[#allocation6 + $0x24] sm:$0xf0] }
  0xeb   :  { %1527 = vmatpush.bf16.msrb.mxu0 %v4885_v9  ;;  %v4903_v9 = vld [vmem:[#allocation6 + $0x34] sm:$0xf] }
  0xf3   :  { %v1156_v10 = vpop.f32.mrf.mxu0 }
  0xf4   :  { %v1157_v15 = vadd.f32 %v1156_v10, %v1143_v12  ;;  %v1170_v21 = vpop.f32.mrf.mxu1  ;;  %v4884_v10 = vld [vmem:[%s5872_s5 + $0x18] sm:$0xff]  ;;  %v4881_v12 = vld [vmem:[%s5872_s5] sm:$0xff] }
  0xf5   :  { %v1171_v30 = vadd.f32 %v1170_v21, %v266_v28  ;;  %1528 = vmatpush.bf16.msrb.mxu0 %v4884_v10  ;;  %v4081_v10 = vor.u32 %v4904_v7, %v4080_v6  ;;  %v4949_v6 = vld [vmem:[#allocation7 + $0x124] sm:$0xf]  ;;  %v4266_v7 = vld [vmem:[#allocation7 + $0x144] sm:$0xf0] }
  0xf6   :  { %5076 = vtanh.f32 %v1157_v15  ;;  %v4895_v15 = vld [vmem:[#allocation4 + $0x30] sm:$0xff] }
  0xf7   :  { %1619 = vmatpush.bf16.msrb.mxu1 %v4895_v15  ;;  %v4901_v15 = vld [vmem:[#allocation6 + $0x24] sm:$0xf] }
  0xf9   :  { %1529 = vmatpush.bf16.msrb.mxu0 %v4883_v11  ;;  %v4082_v11 = vld [vmem:[#allocation6 + $0x38] sm:$0xf0] }
  0xfb   :  { %v1158_v44 = vpop.f32.mrf.mxu0  ;;  %v1184_v23 = vpop.f32.mrf.mxu2 }
  0xfc   :  { %v1159_v16 = vadd.f32 %v1158_v44, %v1145_v36  ;;  %v5077_v40 = vpop.eup %5076  ;;  %v1172_v26 = vpop.f32.mrf.mxu1  ;;  %v1185_v34 = vadd.f32 %v1184_v23, %v1171_v30  ;;  %v5072_v44 = vld [vmem:[%s5871_s4] ss:$0 sm:$0xff]  ;;  %v4890_v30 = vld [vmem:[#allocation4 + $0x8] sm:$0xff] }
  0xfd   :  { %v1198_v29 = vpop.f32.mrf.mxu3  ;;  %v1173_v48 = vadd.f32 %v1172_v26, %v266_v28  ;;  %1530 = vmatpush.bf16.msrb.mxu0 %v4882_v14  ;;  %v4894_v26 = vld [vmem:[#allocation4 + $0x28] sm:$0xff]  ;;  %v4892_v28 = vld [vmem:[#allocation4 + $0x18] sm:$0xff]  ;;  %v4085_v14 = vor.u32 %v4903_v9, %v4082_v11  ;;  %v5021_v9 = vld [vmem:[#allocation7 + $0x364] sm:$0xf] }
  0xfe   :  { %5078 = vtanh.f32 %v1159_v16  ;;  %v1199_v41 = vadd.f32 %v1198_v29, %v1185_v34  ;;  %1620 = vmatpush.bf16.msrb.mxu1 %v4894_v26  ;;  %v4891_v29 = vld [vmem:[#allocation4 + $0x10] sm:$0xff]  ;;  %v4058_v26 = vld [vmem:[#allocation6 + $0x8] sm:$0xf0] }
  0xff   :  { %v4911_v34 = vld [vmem:[#allocation6 + $0x74] sm:$0xf] }
 0x101   :  { %1531 = vmatpush.bf16.msrb.mxu0 %v4881_v12  ;;  %v4072_v12 = vld [vmem:[#allocation6 + $0x20] sm:$0xf] }
 0x102   :  { %1621 = vmatpush.bf16.msrb.mxu1 %v4893_v27 }
 0x103   :  { %v1186_v32 = vpop.f32.mrf.mxu2 }
 0x104   :  { %v5079_v18 = vpop.eup %5078  ;;  %v1187_v43 = vadd.f32 %v1186_v32, %v1173_v48  ;;  %v4112_v32 = vld [vmem:[#allocation6 + $0x70] sm:$0xf]  ;;  %v4909_v48 = vld [vmem:[#allocation6 + $0x64] sm:$0xf] }
 0x105   :  { %v1291_v20 = vpack.c.bf16 %v5079_v18, %v5077_v40  ;;  %v1200_v38 = vpop.f32.mrf.mxu3 }
 0x106   :  { %v1201_v50 = vadd.f32 %v1200_v38, %v1187_v43  ;;  %1622 = vmatpush.bf16.msrb.mxu1 %v4892_v28  ;;  %v4104_v38 = vld [vmem:[#allocation6 + $0x60] sm:$0xf] }
 0x107   :  { %1433 = vmatmul.bf16.vlgmr.msra.gmra.mxu2 %v1291_v20 }
 0x10a   :  { %1623 = vmatpush.bf16.msrb.mxu1 %v4891_v29  ;;  %v4372_v29 = vld [vmem:[#allocation7 + $0x1f8] sm:$0xf] }
 0x10e   :  { %1624 = vmatpush.bf16.msrb.mxu1 %v4890_v30  ;;  %v4980_v30 = vld [vmem:[#allocation7 + $0x218] sm:$0xf0] }
 0x112   :  { %1625 = vmatpush.bf16.msrb.mxu1 %v4889_v31  ;;  %v4660_v31 = vld [vmem:[#allocation7 + $0x438] sm:$0xf] }
 0x113   :  { %v1212_v35 = vpop.f32.mrf.mxu0 }
 0x114   :  { %v1226_v37 = vpop.f32.mrf.mxu1  ;;  %v1213_v25 = vadd.f32 %v1212_v35, %v1199_v41  ;;  %v4113_v35 = vor.u32 %v4912_v33, %v4112_v32  ;;  %v4373_v32 = vor.u32 %v4980_v30, %v4372_v29  ;;  %v5052_v33 = vld [vmem:[#allocation7 + $0x458] sm:$0xf0]  ;;  %v5007_v30 = vld [vmem:[#allocation7 + $0x2f0] sm:$0xf0] }
 0x116   :  { %v1227_v47 = vadd.f32 %v1226_v37, %v1213_v25  ;;  %v4114_v37 = vld [vmem:[#allocation6 + $0x78] sm:$0xf0]  ;;  %v4106_v25 = vld [vmem:[#allocation6 + $0x68] sm:$0xf0]  ;;  %1737 = vmatpush.bf16.msrb.mxu2 %v4113_v35  ;;  %v4374_v35 = vld [vmem:[#allocation7 + $0x21c] sm:$0xf0]  ;;  %2689 = vmatpush.bf16.msra.mxu0 %v4373_v32 }
 0x117   :  { %v4117_v41 = vor.u32 %v4911_v34, %v4114_v37  ;;  %v4109_v43 = vor.u32 %v4909_v48, %v4106_v25  ;;  %v4976_v34 = vld [vmem:[#allocation7 + $0x1fc] sm:$0xf]  ;;  %v4661_v37 = vor.u32 %v5052_v33, %v4660_v31  ;;  %v4336_v48 = vld [vmem:[#allocation7 + $0x1b0] sm:$0xf]  ;;  %v4931_v31 = vld [vmem:[#allocation7 + $0x94] sm:$0xf] }
 0x118   :  { %v4194_v32 = vld [vmem:[#allocation7 + $0xb4] sm:$0xf0] }
 0x119   :  { %1751 = vmatpush.bf16.msrb.mxu3 %v4117_v41  ;;  %v4662_v41 = vld [vmem:[#allocation7 + $0x45c] sm:$0xf0]  ;;  %2703 = vmatpush.bf16.msra.mxu1 %v4661_v37 }
 0x11b   :  { %v1240_v42 = vpop.f32.mrf.mxu2  ;;  %v1214_v45 = vpop.f32.mrf.mxu0 }
 0x11c   :  { %v1228_v46 = vpop.f32.mrf.mxu1  ;;  %v1254_v49 = vpop.f32.mrf.mxu3  ;;  %v1215_v51 = vadd.f32 %v1214_v45, %v1201_v50  ;;  %v1241_v52 = vadd.f32 %v1240_v42, %v1227_v47  ;;  %v4105_v42 = vor.u32 %v4910_v39, %v4104_v38  ;;  %v4096_v45 = vld [vmem:[#allocation6 + $0x50] sm:$0xf]  ;;  %v4907_v47 = vld [vmem:[#allocation6 + $0x54] sm:$0xf]  ;;  %v5073_v50 = vld [vmem:[%s5873_s6] ss:$0 sm:$0xff]  ;;  %v4377_v38 = vor.u32 %v4976_v34, %v4374_v35 }
 0x11d   :  { %1752 = vmatpush.bf16.msrb.mxu3 %v4109_v43  ;;  %v5048_v39 = vld [vmem:[#allocation7 + $0x43c] sm:$0xf]  ;;  %v4624_v43 = vld [vmem:[#allocation7 + $0x3f0] sm:$0xf]  ;;  %v5003_v34 = vld [vmem:[#allocation7 + $0x2d4] sm:$0xf] }
 0x11e   :  { %v1229_v55 = vadd.f32 %v1228_v46, %v1215_v51  ;;  %v1255_v57 = vadd.f32 %v1254_v49, %v1241_v52  ;;  %v4908_v46 = vld [vmem:[#allocation6 + $0x54] sm:$0xf0]  ;;  %v4098_v49 = vld [vmem:[#allocation6 + $0x58] sm:$0xf0]  ;;  %1738 = vmatpush.bf16.msrb.mxu2 %v4105_v42  ;;  %v4665_v25 = vor.u32 %v5048_v39, %v4662_v41  ;;  %v4971_v42 = vld [vmem:[#allocation7 + $0x1d0] sm:$0xf0]  ;;  %v4197_v41 = vor.u32 %v4931_v31, %v4194_v32 }
 0x11f   :  { %v4097_v51 = vor.u32 %v4908_v46, %v4096_v45  ;;  %v5043_v45 = vld [vmem:[#allocation7 + $0x410] sm:$0xf0]  ;;  %v4337_v46 = vor.u32 %v4971_v42, %v4336_v48  ;;  %v4482_v35 = vld [vmem:[#allocation7 + $0x2f4] sm:$0xf0]  ;;  %v4156_v48 = vld [vmem:[#allocation7 + $0x48] sm:$0xf] }
 0x120   :  { %v4444_v42 = vld [vmem:[#allocation7 + $0x288] sm:$0xf]  ;;  %v5035_v32 = vld [vmem:[#allocation7 + $0x3d0] sm:$0xf0] }
 0x121   :  { %2690 = vmatpush.bf16.msra.mxu0 %v4337_v46  ;;  %v4998_v46 = vld [vmem:[#allocation7 + $0x2a8] sm:$0xf0] }
 0x122   :  { %1739 = vmatpush.bf16.msrb.mxu2 %v4097_v51  ;;  %v5039_v51 = vld [vmem:[#allocation7 + $0x3f4] sm:$0xf] }
 0x123   :  { %v1242_v53 = vpop.f32.mrf.mxu2 }
 0x124   :  { %v1243_v58 = vadd.f32 %v1242_v53, %v1229_v55  ;;  %v1256_v59 = vpop.f32.mrf.mxu3  ;;  %v4101_v53 = vor.u32 %v4907_v47, %v4098_v49  ;;  %v4625_v47 = vor.u32 %v5043_v45, %v4624_v43  ;;  %v4967_v49 = vld [vmem:[#allocation7 + $0x1b4] sm:$0xf]  ;;  %v4485_v45 = vor.u32 %v5003_v34, %v4482_v35  ;;  %v4310_v34 = vld [vmem:[#allocation7 + $0x194] sm:$0xf0] }
 0x125   :  { %v5031_v35 = vld [vmem:[#allocation7 + $0x3b4] sm:$0xf] }
 0x126   :  { %v1257_v61 = vadd.f32 %v1256_v59, %v1243_v58  ;;  %1753 = vmatpush.bf16.msrb.mxu3 %v4101_v53  ;;  %v4626_v53 = vld [vmem:[#allocation7 + $0x414] sm:$0xf0]  ;;  %2704 = vmatpush.bf16.msra.mxu1 %v4625_v47  ;;  %v4922_v47 = vld [vmem:[#allocation7 + $0x4c] sm:$0xf] }
 0x133   :  { %v1268_v54 = vpop.f32.mrf.mxu0 }
 0x134   :  { %v1282_v56 = vpop.f32.mrf.mxu1  ;;  %v1269_v8 = vadd.f32 %v1268_v54, %v1255_v57 }
 0x136   :  { %v1283_v62 = vadd.f32 %v1282_v56, %v1269_v8 }
 0x138   :  { %5080 = vtanh.f32 %v1283_v62 }
 0x13b   :  { %v1270_v2 = vpop.f32.mrf.mxu0 }
 0x13c   :  { %v1271_v63 = vadd.f32 %v1270_v2, %v1257_v61  ;;  %v1284_v0 = vpop.f32.mrf.mxu1 }
 0x13e   :  { %v1285_v1 = vadd.f32 %v1284_v0, %v1271_v63  ;;  %v5081_v3 = vpop.eup %5080  ;;  %v4088_v0 = vld [vmem:[#allocation6 + $0x40] sm:$0xf] }
 0x140   :  { %5082 = vtanh.f32 %v1285_v1  ;;  %v4906_v1 = vld [vmem:[#allocation6 + $0x44] sm:$0xf0] }
 0x146   :  { %v5083_v60 = vpop.eup %5082 }
 0x147   :  { %v1292_v4 = vpack.c.bf16 %v5083_v60, %v5081_v3  ;;  %v4905_v3 = vld [vmem:[#allocation6 + $0x44] sm:$0xf]  ;;  %v4089_v60 = vor.u32 %v4906_v1, %v4088_v0  ;;  %v4264_v1 = vld [vmem:[#allocation7 + $0x120] sm:$0xf] }
 0x149   :  { %1447 = vmatmul.bf16.vlgmr.msra.gmra.mxu3 %v1292_v4  ;;  %v4090_v4 = vld [vmem:[#allocation6 + $0x48] sm:$0xf0]  ;;  %1740 = vmatpush.bf16.msrb.mxu2 %v4089_v60  ;;  %v4552_v60 = vld [vmem:[#allocation7 + $0x360] sm:$0xf] }
 0x14a   :  { %v4093_v5 = vor.u32 %v4905_v3, %v4090_v4  ;;  %v4953_v3 = vld [vmem:[#allocation7 + $0x140] sm:$0xf0] }
 0x14b   :  { %v4265_v11 = vor.u32 %v4953_v3, %v4264_v1  ;;  %v4981_v1 = vld [vmem:[#allocation7 + $0x220] sm:$0xf0]  ;;  %v4668_v3 = vld [vmem:[#allocation7 + $0x440] sm:$0xf] }
 0x14c   :  { %1754 = vmatpush.bf16.msrb.mxu3 %v4093_v5  ;;  %v5025_v5 = vld [vmem:[#allocation7 + $0x380] sm:$0xf0] }
 0x14d   :  { %1741 = vmatpush.bf16.msrb.mxu2 %v4081_v10  ;;  %v4554_v10 = vld [vmem:[#allocation7 + $0x384] sm:$0xf0] }
 0x150   :  { %1755 = vmatpush.bf16.msrb.mxu3 %v4085_v14 }
 0x18a   :  { %v1434_v36 = vpop.f32.mrf.mxu2 }
 0x18b   :  { %v1435_v17 = vadd.f32 %v5072_v44, %v1434_v36  ;;  %v4073_v36 = vor.u32 %v4902_v13, %v4072_v12  ;;  %v4553_v12 = vor.u32 %v5025_v5, %v4552_v60  ;;  %v4269_v13 = vor.u32 %v4949_v6, %v4266_v7  ;;  %v4977_v5 = vld [vmem:[#allocation7 + $0x204] sm:$0xf]  ;;  %v4382_v6 = vld [vmem:[#allocation7 + $0x224] sm:$0xf0] }
 0x18d   :  { %1742 = vmatpush.bf16.msrb.mxu2 %v4073_v36  ;;  %v4944_v36 = vld [vmem:[#allocation7 + $0xf8] sm:$0xf0] }
 0x192   :  { %v1436_v40 = vpop.f32.mrf.mxu2 }
 0x193   :  { %v1437_v19 = vadd.f32 %v5072_v44, %v1436_v40  ;;  %v4074_v44 = vld [vmem:[#allocation6 + $0x28] sm:$0xf0]  ;;  %v4900_v40 = vld [vmem:[#allocation6 + $0x14] sm:$0xf0] }
 0x1cc   :  { %v1448_v16 = vpop.f32.mrf.mxu3 }
 0x1cd   :  { %v1449_v18 = vadd.f32 %v1448_v16, %v1435_v17  ;;  %v4077_v16 = vor.u32 %v4901_v15, %v4074_v44  ;;  %v4064_v17 = vld [vmem:[#allocation6 + $0x10] sm:$0xf]  ;;  %v4228_v15 = vld [vmem:[#allocation7 + $0xd8] sm:$0xf] }
 0x1ce   :  { %v4516_v44 = vld [vmem:[#allocation7 + $0x318] sm:$0xf] }
 0x1cf   :  { %5084 = vtanh.f32 %v1449_v18  ;;  %v4899_v18 = vld [vmem:[#allocation6 + $0x14] sm:$0xf]  ;;  %1756 = vmatpush.bf16.msrb.mxu3 %v4077_v16  ;;  %v4557_v16 = vor.u32 %v5021_v9, %v4554_v10 }
 0x1d4   :  { %v1450_v20 = vpop.f32.mrf.mxu3 }
 0x1d5   :  { %v1451_v21 = vadd.f32 %v1450_v20, %v1437_v19  ;;  %v5085_v22 = vpop.eup %5084  ;;  %v4065_v19 = vor.u32 %v4900_v40, %v4064_v17  ;;  %v4066_v20 = vld [vmem:[#allocation6 + $0x18] sm:$0xf0] }
 0x1d6   :  { %v5016_v17 = vld [vmem:[#allocation7 + $0x338] sm:$0xf0] }
 0x1d7   :  { %5086 = vtanh.f32 %v1451_v21  ;;  %v4056_v21 = vld [vmem:[#allocation6] sm:$0xf]  ;;  %1743 = vmatpush.bf16.msrb.mxu2 %v4065_v19  ;;  %v4940_v40 = vld [vmem:[#allocation7 + $0xdc] sm:$0xf] }
 0x1d8   :  { %v5074_v19 = vld [vmem:[%s5875_s8] ss:$0 sm:$0xff] }
 0x1dd   :  { %v5087_v23 = vpop.eup %5086 }
 0x1de   :  { %v1455_v24 = vpack.c.bf16 %v5087_v23, %v5085_v22  ;;  %v4898_v22 = vld [vmem:[#allocation6 + $0x4] sm:$0xf0]  ;;  %v4069_v23 = vor.u32 %v4899_v18, %v4066_v20  ;;  %v4230_v18 = vld [vmem:[#allocation7 + $0xfc] sm:$0xf0]  ;;  %v5012_v20 = vld [vmem:[#allocation7 + $0x31c] sm:$0xf] }
 0x1df   :  { %v4057_v27 = vor.u32 %v4898_v22, %v4056_v21  ;;  %v4518_v21 = vld [vmem:[#allocation7 + $0x33c] sm:$0xf0]  ;;  %v4229_v22 = vor.u32 %v4944_v36, %v4228_v15 }
 0x1e0   :  { %1532 = vmatmul.bf16.vlgmr.msrb.gmra.mxu0 %v1455_v24  ;;  %v4897_v24 = vld [vmem:[#allocation6 + $0x4] sm:$0xf]  ;;  %1757 = vmatpush.bf16.msrb.mxu3 %v4069_v23  ;;  %v4517_v23 = vor.u32 %v5016_v17, %v4516_v44  ;;  %v4521_v29 = vor.u32 %v5012_v20, %v4518_v21  ;;  %v4385_v44 = vor.u32 %v4977_v5, %v4382_v6  ;;  %v4972_v17 = vld [vmem:[#allocation7 + $0x1d8] sm:$0xf0]  ;;  %v4346_v21 = vld [vmem:[#allocation7 + $0x1dc] sm:$0xf0] }
 0x1e1   :  { %v4061_v28 = vor.u32 %v4897_v24, %v4058_v26  ;;  %1744 = vmatpush.bf16.msrb.mxu2 %v4057_v27  ;;  %v4233_v24 = vor.u32 %v4940_v40, %v4230_v18  ;;  %v4192_v26 = vld [vmem:[#allocation7 + $0x90] sm:$0xf]  ;;  %v4935_v27 = vld [vmem:[#allocation7 + $0xb0] sm:$0xf0]  ;;  %v4632_v40 = vld [vmem:[#allocation7 + $0x3f8] sm:$0xf] }
 0x1e2   :  { %v4193_v37 = vor.u32 %v4935_v27, %v4192_v26  ;;  %v4968_v20 = vld [vmem:[#allocation7 + $0x1bc] sm:$0xf] }
 0x1e3   :  { %v4349_v27 = vor.u32 %v4968_v20, %v4346_v21  ;;  %v5008_v6 = vld [vmem:[#allocation7 + $0x2f8] sm:$0xf0]  ;;  %v4995_v21 = vld [vmem:[#allocation7 + $0x294] sm:$0xf] }
 0x1e4   :  { %1758 = vmatpush.bf16.msrb.mxu3 %v4061_v28  ;;  %v4480_v28 = vld [vmem:[#allocation7 + $0x2d0] sm:$0xf] }
 0x1e5   :  { %2717 = vmatpush.bf16.msra.mxu2 %v4377_v38  ;;  %v4481_v39 = vor.u32 %v5007_v30, %v4480_v28  ;;  %v4308_v28 = vld [vmem:[#allocation7 + $0x170] sm:$0xf] }
 0x1e6   :  { %v4596_v30 = vld [vmem:[#allocation7 + $0x3b0] sm:$0xf] }
 0x1e8   :  { %2731 = vmatpush.bf16.msra.mxu3 %v4665_v25  ;;  %v4926_v25 = vld [vmem:[#allocation7 + $0x68] sm:$0xf0] }
 0x25d   :  { %v1533_v52 = vpop.f32.mrf.mxu0 }
 0x25e   :  { %v1534_v54 = vadd.f32 %v5073_v50, %v1533_v52 }
 0x260   :  { %5088 = vtanh.f32 %v1534_v54  ;;  %v4300_v54 = vld [vmem:[#allocation7 + $0x168] sm:$0xf] }
 0x265   :  { %v1535_v55 = vpop.f32.mrf.mxu0 }
 0x266   :  { %v1536_v56 = vadd.f32 %v5073_v50, %v1535_v55  ;;  %v5089_v57 = vpop.eup %5088  ;;  %v4338_v50 = vld [vmem:[#allocation7 + $0x1d4] sm:$0xf0]  ;;  %v4962_v55 = vld [vmem:[#allocation7 + $0x188] sm:$0xf0] }
 0x267   :  { %v1540_v58 = vpack.c.bf16 %v5089_v57, %v5089_v57  ;;  %v4341_v52 = vor.u32 %v4967_v49, %v4338_v50  ;;  %v4158_v49 = vld [vmem:[#allocation7 + $0x6c] sm:$0xf0]  ;;  %v4994_v50 = vld [vmem:[#allocation7 + $0x28c] sm:$0xf] }
 0x268   :  { %5090 = vtanh.f32 %v1536_v56  ;;  %v4629_v56 = vor.u32 %v5039_v51, %v4626_v53  ;;  %v4446_v51 = vld [vmem:[#allocation7 + $0x2ac] sm:$0xf0]  ;;  %v4445_v53 = vor.u32 %v4998_v46, %v4444_v42  ;;  %v4954_v42 = vld [vmem:[#allocation7 + $0x148] sm:$0xf0] }
 0x269   :  { %v1566_v62 = vunpack.c.l.b16 %v1540_v58  ;;  %v5034_v58 = vld [vmem:[#allocation7 + $0x3c8] sm:$0xf0]  ;;  %2718 = vmatpush.bf16.msra.mxu2 %v4341_v52  ;;  %v4157_v52 = vor.u32 %v4926_v25, %v4156_v48  ;;  %v4272_v25 = vld [vmem:[#allocation7 + $0x128] sm:$0xf] }
 0x26a   :  { %2732 = vmatpush.bf16.msra.mxu3 %v4629_v56  ;;  %v4917_v56 = vld [vmem:[#allocation7 + $0x20] sm:$0xf0]  ;;  %v5026_v46 = vld [vmem:[#allocation7 + $0x388] sm:$0xf0] }
 0x26e   :  { %v5091_v59 = vpop.eup %5090 }
 0x26f   :  { %v1541_v8 = vpack.c.bf16 %v5091_v59, %v5091_v59  ;;  %v5060_v61 = vpack.c.bf16 %v5091_v59, %v5089_v57  ;;  %v4588_v57 = vld [vmem:[#allocation7 + $0x3a8] sm:$0xf]  ;;  %v4958_v59 = vld [vmem:[#allocation7 + $0x16c] sm:$0xf] }
 0x271   :  { %5061 = vst [vmem:[%s5880_s13] sm:$0xff] %v5060_v61   ;;  %v1567_v2 = vunpack.c.l.b16 %v1541_v8  ;;  %v4301_v8 = vor.u32 %v4962_v55, %v4300_v54  ;;  %v4302_v61 = vld [vmem:[#allocation7 + $0x18c] sm:$0xf0]  ;;  %v4161_v54 = vor.u32 %v4922_v47, %v4158_v49  ;;  %v4120_v55 = vld [vmem:[#allocation7] sm:$0xf]  ;;  %v4950_v47 = vld [vmem:[#allocation7 + $0x12c] sm:$0xf] }
 0x272   :  { %v4305_v0 = vor.u32 %v4958_v59, %v4302_v61  ;;  %v4989_v59 = vld [vmem:[#allocation7 + $0x260] sm:$0xf0]  ;;  %v4122_v61 = vld [vmem:[#allocation7 + $0x24] sm:$0xf0]  ;;  %v4274_v49 = vld [vmem:[#allocation7 + $0x14c] sm:$0xf0] }
 0x273   :  { %v1568_v63 = vpack.c.b16 %v1567_v2, %v1566_v62  ;;  %v5030_v62 = vld [vmem:[#allocation7 + $0x3ac] sm:$0xf]  ;;  %v4590_v2 = vld [vmem:[#allocation7 + $0x3cc] sm:$0xf0]  ;;  %2691 = vmatpush.bf16.msra.mxu0 %v4301_v8  ;;  %v4913_v8 = vld [vmem:[#allocation7 + $0x4] sm:$0xf] }
 0x274   :  { %v4593_v4 = vor.u32 %v5030_v62, %v4590_v2  ;;  %2719 = vmatpush.bf16.msra.mxu2 %v4305_v0  ;;  %v4985_v62 = vld [vmem:[#allocation7 + $0x244] sm:$0xf]  ;;  %v4410_v2 = vld [vmem:[#allocation7 + $0x264] sm:$0xf0]  ;;  %v4380_v0 = vld [vmem:[#allocation7 + $0x200] sm:$0xf]  ;;  %v4125_v10 = vor.u32 %v4913_v8, %v4122_v61 }
 0x275   :  { %1626 = vmatmul.bf16.vlgmr.msrb.gmra.mxu1 %v1568_v63  ;;  %v4589_v63 = vor.u32 %v5034_v58, %v4588_v57  ;;  %v4449_v57 = vor.u32 %v4994_v50, %v4446_v51  ;;  %v4408_v58 = vld [vmem:[#allocation7 + $0x240] sm:$0xf]  ;;  %v4381_v15 = vor.u32 %v4981_v1, %v4380_v0  ;;  %v4277_v51 = vor.u32 %v4950_v47, %v4274_v49  ;;  %v4941_v61 = vld [vmem:[#allocation7 + $0xe4] sm:$0xf]  ;;  %v4526_v0 = vld [vmem:[#allocation7 + $0x344] sm:$0xf0] }
 0x276   :  { %2733 = vmatpush.bf16.msra.mxu3 %v4593_v4  ;;  %v5053_v4 = vld [vmem:[#allocation7 + $0x460] sm:$0xf0]  ;;  %v4409_v9 = vor.u32 %v4989_v59, %v4408_v58 }
 0x277   :  { %2705 = vmatpush.bf16.msra.mxu1 %v4589_v63  ;;  %2692 = vmatpush.bf16.msra.mxu0 %v4265_v11  ;;  %v4121_v63 = vor.u32 %v4917_v56, %v4120_v55  ;;  %v5049_v11 = vld [vmem:[#allocation7 + $0x444] sm:$0xf]  ;;  %v4669_v36 = vor.u32 %v5053_v4, %v4668_v3  ;;  %v4200_v3 = vld [vmem:[#allocation7 + $0x98] sm:$0xf] }
 0x278   :  { %2720 = vmatpush.bf16.msra.mxu2 %v4269_v13  ;;  %v4413_v13 = vor.u32 %v4985_v62, %v4410_v2  ;;  %v4945_v56 = vld [vmem:[#allocation7 + $0x100] sm:$0xf0]  ;;  %v4238_v62 = vld [vmem:[#allocation7 + $0x104] sm:$0xf0]  ;;  %v4488_v4 = vld [vmem:[#allocation7 + $0x2d8] sm:$0xf] }
 0x279   :  { %v5017_v58 = vld [vmem:[#allocation7 + $0x340] sm:$0xf0] }
 0x27a   :  { %2734 = vmatpush.bf16.msra.mxu3 %v4557_v16  ;;  %v4344_v16 = vld [vmem:[#allocation7 + $0x1b8] sm:$0xf]  ;;  %v5013_v2 = vld [vmem:[#allocation7 + $0x324] sm:$0xf] }
 0x27b   :  { %2706 = vmatpush.bf16.msra.mxu1 %v4553_v12  ;;  %2693 = vmatpush.bf16.msra.mxu0 %v4229_v22  ;;  %v5040_v22 = vld [vmem:[#allocation7 + $0x3fc] sm:$0xf]  ;;  %v4529_v1 = vor.u32 %v5013_v2, %v4526_v0  ;;  %v4352_v0 = vld [vmem:[#allocation7 + $0x1c0] sm:$0xf] }
 0x27c   :  { %2721 = vmatpush.bf16.msra.mxu2 %v4233_v24  ;;  %v4345_v24 = vor.u32 %v4972_v17, %v4344_v16  ;;  %v4999_v17 = vld [vmem:[#allocation7 + $0x2b0] sm:$0xf0] }
 0x27e   :  { %2735 = vmatpush.bf16.msra.mxu3 %v4521_v29  ;;  %v4963_v29 = vld [vmem:[#allocation7 + $0x190] sm:$0xf0] }
 0x27f   :  { %2707 = vmatpush.bf16.msra.mxu1 %v4517_v23  ;;  %2694 = vmatpush.bf16.msra.mxu0 %v4193_v37  ;;  %v4634_v23 = vld [vmem:[#allocation7 + $0x41c] sm:$0xf0]  ;;  %v4598_v37 = vld [vmem:[#allocation7 + $0x3d4] sm:$0xf0] }
 0x280   :  { %2722 = vmatpush.bf16.msra.mxu2 %v4197_v41  ;;  %v4637_v31 = vor.u32 %v5040_v22, %v4634_v23  ;;  %v4601_v48 = vor.u32 %v5031_v35, %v4598_v37  ;;  %v4454_v22 = vld [vmem:[#allocation7 + $0x2b4] sm:$0xf0]  ;;  %v4418_v35 = vld [vmem:[#allocation7 + $0x26c] sm:$0xf0] }
 0x281   :  { %v4457_v23 = vor.u32 %v4995_v21, %v4454_v22 }
 0x282   :  { %2736 = vmatpush.bf16.msra.mxu3 %v4485_v45  ;;  %v4273_v45 = vor.u32 %v4954_v42, %v4272_v25 }
 0x283   :  { %2708 = vmatpush.bf16.msra.mxu1 %v4481_v39  ;;  %2695 = vmatpush.bf16.msra.mxu0 %v4157_v52  ;;  %v4597_v39 = vor.u32 %v5035_v32, %v4596_v30  ;;  %v5022_v52 = vld [vmem:[#allocation7 + $0x36c] sm:$0xf] }
 0x284   :  { %2723 = vmatpush.bf16.msra.mxu2 %v4161_v54  ;;  %v4236_v54 = vld [vmem:[#allocation7 + $0xe0] sm:$0xf]  ;;  %v4914_v30 = vld [vmem:[#allocation7 + $0xc] sm:$0xf] }
 0x285   :  { %v4237_v59 = vor.u32 %v4945_v56, %v4236_v54  ;;  %v5054_v54 = vld [vmem:[#allocation7 + $0x468] sm:$0xf0] }
 0x286   :  { %2737 = vmatpush.bf16.msra.mxu3 %v4449_v57  ;;  %v4524_v57 = vld [vmem:[#allocation7 + $0x320] sm:$0xf] }
 0x287   :  { %2709 = vmatpush.bf16.msra.mxu1 %v4445_v53  ;;  %2696 = vmatpush.bf16.msra.mxu0 %v4121_v63  ;;  %v4562_v53 = vld [vmem:[#allocation7 + $0x38c] sm:$0xf0]  ;;  %v4525_v8 = vor.u32 %v5017_v58, %v4524_v57  ;;  %v4241_v63 = vor.u32 %v4941_v61, %v4238_v62  ;;  %v5050_v58 = vld [vmem:[#allocation7 + $0x44c] sm:$0xf] }
 0x288   :  { %2724 = vmatpush.bf16.msra.mxu2 %v4125_v10  ;;  %v4565_v55 = vor.u32 %v5022_v52, %v4562_v53  ;;  %v4489_v10 = vor.u32 %v5008_v6, %v4488_v4  ;;  %v4676_v53 = vld [vmem:[#allocation7 + $0x448] sm:$0xf]  ;;  %v4390_v57 = vld [vmem:[#allocation7 + $0x22c] sm:$0xf0]  ;;  %v5045_v6 = vld [vmem:[#allocation7 + $0x420] sm:$0xf0] }
 0x28a   :  { %2738 = vmatpush.bf16.msra.mxu3 %v4413_v13 }
 0x28b   :  { %2710 = vmatpush.bf16.msra.mxu1 %v4409_v9  ;;  %2745 = vmatpush.bf16.msrb.mxu0 %v4381_v15  ;;  %v4202_v9 = vld [vmem:[#allocation7 + $0xbc] sm:$0xf0]  ;;  %v4164_v15 = vld [vmem:[#allocation7 + $0x50] sm:$0xf] }
 0x28f   :  { %2759 = vmatpush.bf16.msrb.mxu1 %v4669_v36  ;;  %2746 = vmatpush.bf16.msrb.mxu0 %v4345_v24  ;;  %v4927_v36 = vld [vmem:[#allocation7 + $0x70] sm:$0xf0]  ;;  %v4128_v24 = vld [vmem:[#allocation7 + $0x8] sm:$0xf] }
 0x290   :  { %v4165_v16 = vor.u32 %v4927_v36, %v4164_v15  ;;  %v4964_v15 = vld [vmem:[#allocation7 + $0x198] sm:$0xf0] }
 0x2f2   :  { %v1627_v14 = vpop.f32.mrf.mxu1 }
 0x2f3   :  { %v1628_v33 = vadd.f32 %v5074_v19, %v1627_v14  ;;  %v4670_v14 = vld [vmem:[#allocation7 + $0x464] sm:$0xf0] }
 0x2f4   :  { %v4673_v18 = vor.u32 %v5049_v11, %v4670_v14  ;;  %v5004_v14 = vld [vmem:[#allocation7 + $0x2dc] sm:$0xf] }
 0x2f5   :  { %5092 = vtanh.f32 %v1628_v33  ;;  %v4959_v33 = vld [vmem:[#allocation7 + $0x174] sm:$0xf] }
 0x2f6   :  { %v4313_v41 = vor.u32 %v4959_v33, %v4310_v34  ;;  %v4986_v34 = vld [vmem:[#allocation7 + $0x24c] sm:$0xf] }
 0x2f7   :  { %v4421_v37 = vor.u32 %v4986_v34, %v4418_v35 }
 0x2fa   :  { %v1629_v38 = vpop.f32.mrf.mxu1 }
 0x2fb   :  { %v1630_v43 = vadd.f32 %v5074_v19, %v1629_v38  ;;  %v5093_v60 = vpop.eup %5092  ;;  %v5044_v19 = vld [vmem:[#allocation7 + $0x418] sm:$0xf0]  ;;  %v4309_v38 = vor.u32 %v4963_v29, %v4308_v28  ;;  %v4990_v29 = vld [vmem:[#allocation7 + $0x268] sm:$0xf0] }
 0x2fc   :  { %v4633_v26 = vor.u32 %v5044_v19, %v4632_v40  ;;  %v4923_v40 = vld [vmem:[#allocation7 + $0x54] sm:$0xf] }
 0x2fd   :  { %5094 = vtanh.f32 %v1630_v43  ;;  %2747 = vmatpush.bf16.msrb.mxu0 %v4309_v38  ;;  %v4560_v43 = vld [vmem:[#allocation7 + $0x368] sm:$0xf]  ;;  %v1651_v38 = vld [vmem:[%s5877_s10] sm:$0x3] }
 0x2fe   :  { %2760 = vmatpush.bf16.msrb.mxu1 %v4633_v26  ;;  %v4561_v50 = vor.u32 %v5026_v46, %v4560_v43  ;;  %v4918_v26 = vld [vmem:[#allocation7 + $0x28] sm:$0xf0]  ;;  %v1654_v25 = vperm.slane %v1651_v38, 1 }
 0x2ff   :  { %v4129_v28 = vor.u32 %v4918_v26, %v4128_v24  ;;  %v4955_v24 = vld [vmem:[#allocation7 + $0x150] sm:$0xf0] }
 0x301   :  { %2748 = vmatpush.bf16.msrb.mxu0 %v4273_v45 }
 0x302   :  { %2761 = vmatpush.bf16.msrb.mxu1 %v4597_v39 }
 0x303   :  { %v5095_v7 = vpop.eup %5094 }
 0x304   :  { %v1634_v12 = vpack.c.bf16 %v5095_v7, %v5093_v60  ;;  %v4936_v60 = vld [vmem:[#allocation7 + $0xb8] sm:$0xf0] }
 0x305   :  { %2749 = vmatpush.bf16.msrb.mxu0 %v4237_v59  ;;  %v4201_v5 = vor.u32 %v4936_v60, %v4200_v3  ;;  %v4932_v7 = vld [vmem:[#allocation7 + $0x9c] sm:$0xf]  ;;  %v4678_v59 = vld [vmem:[#allocation7 + $0x46c] sm:$0xf0] }
 0x306   :  { %1745 = vmatmul.bf16.vlgmr.msrb.gmra.mxu2 %v1634_v12  ;;  %1759 = vmatmul.bf16.vlgmr.msrb.gmra.mxu3 %v1634_v12  ;;  %v4205_v11 = vor.u32 %v4932_v7, %v4202_v9  ;;  %v4490_v12 = vld [vmem:[#allocation7 + $0x2fc] sm:$0xf0]  ;;  %v4681_v4 = vor.u32 %v5050_v58, %v4678_v59  ;;  %v4969_v7 = vld [vmem:[#allocation7 + $0x1c4] sm:$0xf]  ;;  %v4354_v9 = vld [vmem:[#allocation7 + $0x1e4] sm:$0xf0] }
 0x307   :  { %2773 = vmatpush.bf16.msrb.mxu2 %v4385_v44  ;;  %2787 = vmatpush.bf16.msrb.mxu3 %v4673_v18  ;;  %v4493_v13 = vor.u32 %v5004_v14, %v4490_v12  ;;  %v4452_v44 = vld [vmem:[#allocation7 + $0x290] sm:$0xf]  ;;  %v4166_v18 = vld [vmem:[#allocation7 + $0x74] sm:$0xf0]  ;;  %v4357_v36 = vor.u32 %v4969_v7, %v4354_v9  ;;  %v5005_v58 = vld [vmem:[#allocation7 + $0x2e4] sm:$0xf] }
 0x308   :  { %2762 = vmatpush.bf16.msrb.mxu1 %v4561_v50  ;;  %v4453_v19 = vor.u32 %v4999_v17, %v4452_v44  ;;  %v4169_v20 = vor.u32 %v4923_v40, %v4166_v18  ;;  %v4388_v50 = vld [vmem:[#allocation7 + $0x208] sm:$0xf]  ;;  %v5036_v17 = vld [vmem:[#allocation7 + $0x3d8] sm:$0xf0]  ;;  %v4318_v18 = vld [vmem:[#allocation7 + $0x19c] sm:$0xf0] }
 0x309   :  { %2750 = vmatpush.bf16.msrb.mxu0 %v4201_v5  ;;  %v4640_v5 = vld [vmem:[#allocation7 + $0x400] sm:$0xf]  ;;  %v4960_v40 = vld [vmem:[#allocation7 + $0x17c] sm:$0xf]  ;;  %v4498_v59 = vld [vmem:[#allocation7 + $0x304] sm:$0xf0] }
 0x30a   :  { %v4641_v12 = vor.u32 %v5045_v6, %v4640_v5  ;;  %v4321_v26 = vor.u32 %v4960_v40, %v4318_v18  ;;  %v4924_v5 = vld [vmem:[#allocation7 + $0x5c] sm:$0xf]  ;;  %v4174_v6 = vld [vmem:[#allocation7 + $0x7c] sm:$0xf0]  ;;  %v4987_v40 = vld [vmem:[#allocation7 + $0x254] sm:$0xf] }
 0x30b   :  { %2774 = vmatpush.bf16.msrb.mxu2 %v4349_v27  ;;  %2788 = vmatpush.bf16.msrb.mxu3 %v4637_v31  ;;  %v4416_v27 = vld [vmem:[#allocation7 + $0x248] sm:$0xf]  ;;  %v4130_v31 = vld [vmem:[#allocation7 + $0x2c] sm:$0xf0]  ;;  %v4996_v7 = vld [vmem:[#allocation7 + $0x29c] sm:$0xf] }
 0x30c   :  { %2763 = vmatpush.bf16.msrb.mxu1 %v4525_v8  ;;  %v4417_v32 = vor.u32 %v4990_v29, %v4416_v27  ;;  %v4133_v33 = vor.u32 %v4914_v30, %v4130_v31  ;;  %v5027_v29 = vld [vmem:[#allocation7 + $0x390] sm:$0xf0]  ;;  %v4282_v31 = vld [vmem:[#allocation7 + $0x154] sm:$0xf0]  ;;  %v4462_v9 = vld [vmem:[#allocation7 + $0x2bc] sm:$0xf0] }
 0x30d   :  { %2751 = vmatpush.bf16.msrb.mxu0 %v4165_v16  ;;  %v4604_v16 = vld [vmem:[#allocation7 + $0x3b8] sm:$0xf]  ;;  %v4951_v30 = vld [vmem:[#allocation7 + $0x134] sm:$0xf] }
 0x30e   :  { %v4605_v22 = vor.u32 %v5036_v17, %v4604_v16  ;;  %v4915_v16 = vld [vmem:[#allocation7 + $0x14] sm:$0xf]  ;;  %v4138_v17 = vld [vmem:[#allocation7 + $0x34] sm:$0xf0] }
 0x30f   :  { %2775 = vmatpush.bf16.msrb.mxu2 %v4313_v41  ;;  %2789 = vmatpush.bf16.msrb.mxu3 %v4601_v48  ;;  %v1653_v48 = vperm.slane %v1651_v38, 0  ;;  %v4946_v38 = vld [vmem:[#allocation7 + $0x108] sm:$0xf0]  ;;  %v4426_v18 = vld [vmem:[#allocation7 + $0x274] sm:$0xf0] }
 0x310   :  { %2764 = vmatpush.bf16.msrb.mxu1 %v4489_v10  ;;  %v5041_v10 = vld [vmem:[#allocation7 + $0x404] sm:$0xf] }
 0x311   :  { %2752 = vmatpush.bf16.msrb.mxu0 %v4129_v28  ;;  %v4568_v28 = vld [vmem:[#allocation7 + $0x370] sm:$0xf] }
 0x312   :  { %v4569_v35 = vor.u32 %v5027_v29, %v4568_v28  ;;  %v5051_v28 = vld [vmem:[#allocation7 + $0x454] sm:$0xf]  ;;  %v4686_v29 = vld [vmem:[#allocation7 + $0x474] sm:$0xf0] }
 0x313   :  { %2776 = vmatpush.bf16.msrb.mxu2 %v4277_v51  ;;  %2790 = vmatpush.bf16.msrb.mxu3 %v4565_v55  ;;  %v4982_v51 = vld [vmem:[#allocation7 + $0x228] sm:$0xf0] }
 0x314   :  { %2765 = vmatpush.bf16.msrb.mxu1 %v4453_v19  ;;  %v4978_v55 = vld [vmem:[#allocation7 + $0x20c] sm:$0xf]  ;;  %v4389_v2 = vor.u32 %v4982_v51, %v4388_v50  ;;  %v5032_v19 = vld [vmem:[#allocation7 + $0x3bc] sm:$0xf]  ;;  %v4208_v50 = vld [vmem:[#allocation7 + $0xa0] sm:$0xf] }
 0x315   :  { %v4393_v60 = vor.u32 %v4978_v55, %v4390_v57  ;;  %v4937_v51 = vld [vmem:[#allocation7 + $0xc0] sm:$0xf0]  ;;  %v4210_v57 = vld [vmem:[#allocation7 + $0xc4] sm:$0xf0] }
 0x316   :  { %v5009_v55 = vld [vmem:[#allocation7 + $0x300] sm:$0xf0] }
 0x317   :  { %2777 = vmatpush.bf16.msrb.mxu2 %v4241_v63  ;;  %2791 = vmatpush.bf16.msrb.mxu3 %v4529_v1  ;;  %v4677_v63 = vor.u32 %v5054_v54, %v4676_v53  ;;  %v4973_v1 = vld [vmem:[#allocation7 + $0x1e0] sm:$0xf0]  ;;  %v4496_v54 = vld [vmem:[#allocation7 + $0x2e0] sm:$0xf] }
 0x318   :  { %2766 = vmatpush.bf16.msrb.mxu1 %v4417_v32  ;;  %v4353_v14 = vor.u32 %v4973_v1, %v4352_v0  ;;  %v5023_v32 = vld [vmem:[#allocation7 + $0x374] sm:$0xf]  ;;  %v4501_v1 = vor.u32 %v5005_v58, %v4498_v59 }
 0x31b   :  { %2778 = vmatpush.bf16.msrb.mxu2 %v4205_v11  ;;  %2792 = vmatpush.bf16.msrb.mxu3 %v4493_v13  ;;  %v4642_v11 = vld [vmem:[#allocation7 + $0x424] sm:$0xf0]  ;;  %v4316_v13 = vld [vmem:[#allocation7 + $0x178] sm:$0xf] }
 0x31c   :  { %v4645_v44 = vor.u32 %v5041_v10, %v4642_v11  ;;  %v4317_v21 = vor.u32 %v4964_v15, %v4316_v13  ;;  %v4136_v10 = vld [vmem:[#allocation7 + $0x10] sm:$0xf]  ;;  %v4991_v15 = vld [vmem:[#allocation7 + $0x270] sm:$0xf0] }
 0x31d   :  { %v4424_v13 = vld [vmem:[#allocation7 + $0x250] sm:$0xf] }
 0x31f   :  { %2779 = vmatpush.bf16.msrb.mxu2 %v4169_v20  ;;  %2793 = vmatpush.bf16.msrb.mxu3 %v4457_v23  ;;  %v4606_v20 = vld [vmem:[#allocation7 + $0x3dc] sm:$0xf0]  ;;  %v4280_v23 = vld [vmem:[#allocation7 + $0x130] sm:$0xf] }
 0x320   :  { %v4609_v27 = vor.u32 %v5032_v19, %v4606_v20  ;;  %v4281_v34 = vor.u32 %v4955_v24, %v4280_v23  ;;  %v4396_v19 = vld [vmem:[#allocation7 + $0x210] sm:$0xf]  ;;  %v4983_v20 = vld [vmem:[#allocation7 + $0x230] sm:$0xf0] }
 0x321   :  { %v4979_v23 = vld [vmem:[#allocation7 + $0x214] sm:$0xf] }
 0x323   :  { %2780 = vmatpush.bf16.msrb.mxu2 %v4133_v33  ;;  %2794 = vmatpush.bf16.msrb.mxu3 %v4421_v37  ;;  %v4570_v33 = vld [vmem:[#allocation7 + $0x394] sm:$0xf0]  ;;  %v4244_v37 = vld [vmem:[#allocation7 + $0xe8] sm:$0xf] }
 0x389   :  { %v1746_v39 = vpop.f32.mrf.mxu2  ;;  %v1760_v41 = vpop.f32.mrf.mxu3 }
 0x38a   :  { %v1747_v42 = vadd.f32 %v1746_v39, %v1653_v48  ;;  %v1761_v43 = vadd.f32 %v1760_v41, %v1654_v25  ;;  %v4285_v39 = vor.u32 %v4951_v30, %v4282_v31  ;;  %v4573_v41 = vor.u32 %v5023_v32, %v4570_v33 }
 0x38b   :  { %v4141_v30 = vor.u32 %v4915_v16, %v4138_v17  ;;  %v4429_v31 = vor.u32 %v4987_v40, %v4426_v18  ;;  %v4397_v32 = vor.u32 %v4983_v20, %v4396_v19  ;;  %v5015_v16 = vld [vmem:[#allocation7 + $0x334] sm:$0xf]  ;;  %v4542_v17 = vld [vmem:[#allocation7 + $0x354] sm:$0xf0]  ;;  %v4216_v19 = vld [vmem:[#allocation7 + $0xa8] sm:$0xf] }
 0x38c   :  { %5096 = vtanh.f32 %v1747_v42  ;;  %v4942_v42 = vld [vmem:[#allocation7 + $0xec] sm:$0xf] }
 0x38d   :  { %5098 = vtanh.f32 %v1761_v43  ;;  %v4246_v43 = vld [vmem:[#allocation7 + $0x10c] sm:$0xf0]  ;;  %v4938_v20 = vld [vmem:[#allocation7 + $0xc8] sm:$0xf0] }
 0x391   :  { %v1748_v45 = vpop.f32.mrf.mxu2  ;;  %v1762_v46 = vpop.f32.mrf.mxu3 }
 0x392   :  { %v1749_v47 = vadd.f32 %v1748_v45, %v1653_v48  ;;  %v1763_v49 = vadd.f32 %v1762_v46, %v1654_v25  ;;  %v5097_v52 = vpop.eup %5096  ;;  %v4532_v48 = vld [vmem:[#allocation7 + $0x328] sm:$0xf]  ;;  %v5018_v25 = vld [vmem:[#allocation7 + $0x348] sm:$0xf0]  ;;  %v4534_v46 = vld [vmem:[#allocation7 + $0x34c] sm:$0xf0] }
 0x393   :  { %v5099_v56 = vpop.eup %5098  ;;  %v5014_v45 = vld [vmem:[#allocation7 + $0x32c] sm:$0xf] }
 0x394   :  { %5100 = vtanh.f32 %v1749_v47  ;;  %v4245_v47 = vor.u32 %v4946_v38, %v4244_v37  ;;  %v4537_v53 = vor.u32 %v5014_v45, %v4534_v46  ;;  %v4689_v38 = vor.u32 %v5051_v28, %v4686_v29  ;;  %v5006_v28 = vld [vmem:[#allocation7 + $0x2ec] sm:$0xf]  ;;  %v4506_v29 = vld [vmem:[#allocation7 + $0x30c] sm:$0xf0] }
 0x395   :  { %5102 = vtanh.f32 %v1763_v49  ;;  %v4533_v49 = vor.u32 %v5018_v25, %v4532_v48  ;;  %v4970_v48 = vld [vmem:[#allocation7 + $0x1cc] sm:$0xf]  ;;  %v4362_v25 = vld [vmem:[#allocation7 + $0x1ec] sm:$0xf0] }
 0x39a   :  { %v5101_v8 = vpop.eup %5100 }
 0x39b   :  { %v5103_v61 = vpop.eup %5102  ;;  %v5559_v62 = vpack.c.bf16 %v5101_v8, %v5097_v52  ;;  %v4249_v52 = vor.u32 %v4942_v42, %v4246_v43  ;;  %v4209_v8 = vor.u32 %v4937_v51, %v4208_v50  ;;  %v5042_v42 = vld [vmem:[#allocation7 + $0x40c] sm:$0xf]  ;;  %v4650_v43 = vld [vmem:[#allocation7 + $0x42c] sm:$0xf0]  ;;  %v4365_v50 = vor.u32 %v4970_v48, %v4362_v25  ;;  %v4997_v48 = vld [vmem:[#allocation7 + $0x2a4] sm:$0xf] }
 0x39c   :  { %v5561_v3 = vpack.c.bf16 %v5103_v61, %v5099_v56  ;;  %v4933_v56 = vld [vmem:[#allocation7 + $0xa4] sm:$0xf]  ;;  %v4497_v61 = vor.u32 %v5009_v55, %v4496_v54  ;;  %v4653_v51 = vor.u32 %v5042_v42, %v4650_v43  ;;  %v4326_v55 = vld [vmem:[#allocation7 + $0x1a4] sm:$0xf0] }
 0x39d   :  { %2697 = vmatmul.bf16.vlgmr.msra.gmra.mxu0 %v5559_v62  ;;  %2725 = vmatmul.bf16.vlgmr.msra.gmra.mxu2 %v5559_v62  ;;  %v4213_v0 = vor.u32 %v4933_v56, %v4210_v57  ;;  %v4961_v54 = vld [vmem:[#allocation7 + $0x184] sm:$0xf]  ;;  %v4614_v57 = vld [vmem:[#allocation7 + $0x3e4] sm:$0xf0] }
 0x39e   :  { %2711 = vmatmul.bf16.vlgmr.msra.gmra.mxu1 %v5561_v3  ;;  %2739 = vmatmul.bf16.vlgmr.msra.gmra.mxu3 %v5561_v3  ;;  %v5033_v56 = vld [vmem:[#allocation7 + $0x3c4] sm:$0xf]  ;;  %v4470_v25 = vld [vmem:[#allocation7 + $0x2c4] sm:$0xf0] }
 0x39f   :  { %2801 = vmatpush.bf16.msra.mxu0 %v4389_v2  ;;  %2815 = vmatpush.bf16.msra.mxu1 %v4677_v63  ;;  %v4172_v2 = vld [vmem:[#allocation7 + $0x58] sm:$0xf]  ;;  %v4928_v63 = vld [vmem:[#allocation7 + $0x78] sm:$0xf0] }
 0x3a0   :  { %2829 = vmatpush.bf16.msra.mxu2 %v4393_v60  ;;  %2843 = vmatpush.bf16.msra.mxu3 %v4681_v4  ;;  %v4460_v60 = vld [vmem:[#allocation7 + $0x298] sm:$0xf]  ;;  %v5000_v4 = vld [vmem:[#allocation7 + $0x2b8] sm:$0xf0]  ;;  %v4173_v11 = vor.u32 %v4928_v63, %v4172_v2  ;;  %v4329_v2 = vor.u32 %v4961_v54, %v4326_v55  ;;  %v4617_v63 = vor.u32 %v5033_v56, %v4614_v57  ;;  %v4434_v55 = vld [vmem:[#allocation7 + $0x27c] sm:$0xf0] }
 0x3a1   :  { %v4988_v54 = vld [vmem:[#allocation7 + $0x25c] sm:$0xf]  ;;  %v4404_v56 = vld [vmem:[#allocation7 + $0x218] sm:$0xf] }
 0x3a2   :  { %v4984_v57 = vld [vmem:[#allocation7 + $0x238] sm:$0xf0] }
 0x3a3   :  { %2802 = vmatpush.bf16.msra.mxu0 %v4353_v14  ;;  %2816 = vmatpush.bf16.msra.mxu1 %v4641_v12  ;;  %v4461_v14 = vor.u32 %v5000_v4, %v4460_v60  ;;  %v4919_v12 = vld [vmem:[#allocation7 + $0x30] sm:$0xf0]  ;;  %v4952_v60 = vld [vmem:[#allocation7 + $0x13c] sm:$0xf]  ;;  %v4290_v4 = vld [vmem:[#allocation7 + $0x15c] sm:$0xf0] }
 0x3a4   :  { %2830 = vmatpush.bf16.msra.mxu2 %v4357_v36  ;;  %2844 = vmatpush.bf16.msra.mxu3 %v4645_v44  ;;  %v4177_v36 = vor.u32 %v4924_v5, %v4174_v6  ;;  %v4465_v44 = vor.u32 %v4996_v7, %v4462_v9  ;;  %v4137_v24 = vor.u32 %v4919_v12, %v4136_v10  ;;  %v5024_v5 = vld [vmem:[#allocation7 + $0x37c] sm:$0xf]  ;;  %v4578_v6 = vld [vmem:[#allocation7 + $0x39c] sm:$0xf0]  ;;  %v4252_v10 = vld [vmem:[#allocation7 + $0xf0] sm:$0xf] }
 0x3a5   :  { %v4581_v12 = vor.u32 %v5024_v5, %v4578_v6  ;;  %v4656_v5 = vld [vmem:[#allocation7 + $0x410] sm:$0xf]  ;;  %v5047_v6 = vld [vmem:[#allocation7 + $0x430] sm:$0xf0] }
 0x3a7   :  { %2803 = vmatpush.bf16.msra.mxu0 %v4317_v21  ;;  %2817 = vmatpush.bf16.msra.mxu1 %v4605_v22  ;;  %v4684_v21 = vld [vmem:[#allocation7 + $0x450] sm:$0xf]  ;;  %v5055_v22 = vld [vmem:[#allocation7 + $0x470] sm:$0xf0] }
 0x3a8   :  { %2831 = vmatpush.bf16.msra.mxu2 %v4321_v26  ;;  %2845 = vmatpush.bf16.msra.mxu3 %v4609_v27  ;;  %v4425_v26 = vor.u32 %v4991_v15, %v4424_v13  ;;  %v4398_v27 = vld [vmem:[#allocation7 + $0x234] sm:$0xf0]  ;;  %v4685_v33 = vor.u32 %v5055_v22, %v4684_v21  ;;  %v4540_v13 = vld [vmem:[#allocation7 + $0x330] sm:$0xf]  ;;  %v5019_v15 = vld [vmem:[#allocation7 + $0x350] sm:$0xf0]  ;;  %v4545_v22 = vor.u32 %v5015_v16, %v4542_v17 }
 0x3a9   :  { %v4401_v37 = vor.u32 %v4979_v23, %v4398_v27  ;;  %v4541_v18 = vor.u32 %v5019_v15, %v4540_v13  ;;  %v4504_v23 = vld [vmem:[#allocation7 + $0x2e8] sm:$0xf]  ;;  %v4218_v27 = vld [vmem:[#allocation7 + $0xcc] sm:$0xf0]  ;;  %v4584_v16 = vld [vmem:[#allocation7 + $0x380] sm:$0xf] }
 0x3aa   :  { %v5029_v17 = vld [vmem:[#allocation7 + $0x3a0] sm:$0xf0] }
 0x3ab   :  { %2804 = vmatpush.bf16.msra.mxu0 %v4281_v34  ;;  %2818 = vmatpush.bf16.msra.mxu1 %v4569_v35  ;;  %v4360_v34 = vld [vmem:[#allocation7 + $0x1c8] sm:$0xf]  ;;  %v4974_v35 = vld [vmem:[#allocation7 + $0x1e8] sm:$0xf0] }
 0x3ac   :  { %2832 = vmatpush.bf16.msra.mxu2 %v4285_v39  ;;  %2846 = vmatpush.bf16.msra.mxu3 %v4573_v41  ;;  %v4648_v39 = vld [vmem:[#allocation7 + $0x408] sm:$0xf]  ;;  %v5046_v41 = vld [vmem:[#allocation7 + $0x428] sm:$0xf0]  ;;  %v4361_v45 = vor.u32 %v4974_v35, %v4360_v34  ;;  %v4509_v35 = vor.u32 %v5006_v28, %v4506_v29  ;;  %v4512_v28 = vld [vmem:[#allocation7 + $0x2f0] sm:$0xf] }
 0x3ad   :  { %2753 = vmatmul.bf16.vlgmr.msrb.gmra.mxu0 %v5559_v62  ;;  %2781 = vmatmul.bf16.vlgmr.msrb.gmra.mxu2 %v5559_v62  ;;  %v4649_v46 = vor.u32 %v5046_v41, %v4648_v39  ;;  %v4925_v39 = vld [vmem:[#allocation7 + $0x64] sm:$0xf]  ;;  %v4182_v41 = vld [vmem:[#allocation7 + $0x84] sm:$0xf0]  ;;  %v5011_v29 = vld [vmem:[#allocation7 + $0x310] sm:$0xf0] }
 0x3ae   :  { %2767 = vmatmul.bf16.vlgmr.msrb.gmra.mxu1 %v5561_v3  ;;  %2795 = vmatmul.bf16.vlgmr.msrb.gmra.mxu3 %v5561_v3 }
 0x3af   :  { %2805 = vmatpush.bf16.msra.mxu0 %v4245_v47  ;;  %2819 = vmatpush.bf16.msra.mxu1 %v4533_v49  ;;  %v4324_v47 = vld [vmem:[#allocation7 + $0x180] sm:$0xf]  ;;  %v4965_v49 = vld [vmem:[#allocation7 + $0x1a0] sm:$0xf0] }
 0x3b0   :  { %2833 = vmatpush.bf16.msra.mxu2 %v4249_v52  ;;  %2847 = vmatpush.bf16.msra.mxu3 %v4537_v53  ;;  %v4612_v52 = vld [vmem:[#allocation7 + $0x3c0] sm:$0xf]  ;;  %v5037_v53 = vld [vmem:[#allocation7 + $0x3e0] sm:$0xf0]  ;;  %v4325_v58 = vor.u32 %v4965_v49, %v4324_v47  ;;  %v4432_v47 = vld [vmem:[#allocation7 + $0x258] sm:$0xf]  ;;  %v4185_v49 = vor.u32 %v4925_v39, %v4182_v41 }
 0x3b1   :  { %v4613_v59 = vor.u32 %v5037_v53, %v4612_v52  ;;  %v4916_v52 = vld [vmem:[#allocation7 + $0x1c] sm:$0xf]  ;;  %v4146_v53 = vld [vmem:[#allocation7 + $0x3c] sm:$0xf0]  ;;  %v4921_v41 = vld [vmem:[#allocation7 + $0x40] sm:$0xf0] }
 0x3b2   :  { %v4152_v39 = vld [vmem:[#allocation7 + $0x20] sm:$0xf] }
 0x3b3   :  { %2806 = vmatpush.bf16.msra.mxu0 %v4209_v8  ;;  %2820 = vmatpush.bf16.msra.mxu1 %v4497_v61  ;;  %v4288_v8 = vld [vmem:[#allocation7 + $0x138] sm:$0xf]  ;;  %v4956_v61 = vld [vmem:[#allocation7 + $0x158] sm:$0xf0] }
 0x3b4   :  { %2834 = vmatpush.bf16.msra.mxu2 %v4213_v0  ;;  %2848 = vmatpush.bf16.msra.mxu3 %v4501_v1  ;;  %v4576_v0 = vld [vmem:[#allocation7 + $0x378] sm:$0xf]  ;;  %v5028_v1 = vld [vmem:[#allocation7 + $0x398] sm:$0xf0]  ;;  %v4289_v7 = vor.u32 %v4956_v61, %v4288_v8 }
 0x3b5   :  { %v4577_v9 = vor.u32 %v5028_v1, %v4576_v0  ;;  %v4405_v0 = vor.u32 %v4984_v57, %v4404_v56 }
 0x3b7   :  { %2807 = vmatpush.bf16.msra.mxu0 %v4173_v11  ;;  %2821 = vmatpush.bf16.msra.mxu1 %v4461_v14  ;;  %v4947_v11 = vld [vmem:[#allocation7 + $0x110] sm:$0xf0]  ;;  %v4293_v14 = vor.u32 %v4952_v60, %v4290_v4  ;;  %v4368_v60 = vld [vmem:[#allocation7 + $0x1d0] sm:$0xf] }
 0x3b8   :  { %2835 = vmatpush.bf16.msra.mxu2 %v4177_v36  ;;  %2849 = vmatpush.bf16.msra.mxu3 %v4465_v44  ;;  %v4943_v36 = vld [vmem:[#allocation7 + $0xf4] sm:$0xf]  ;;  %v4254_v44 = vld [vmem:[#allocation7 + $0x114] sm:$0xf0]  ;;  %v4253_v40 = vor.u32 %v4947_v11, %v4252_v10  ;;  %v4332_v10 = vld [vmem:[#allocation7 + $0x188] sm:$0xf] }
 0x3b9   :  { %v4257_v21 = vor.u32 %v4943_v36, %v4254_v44  ;;  %v4975_v4 = vld [vmem:[#allocation7 + $0x1f0] sm:$0xf0]  ;;  %v4966_v11 = vld [vmem:[#allocation7 + $0x1a8] sm:$0xf0]  ;;  %v4296_v36 = vld [vmem:[#allocation7 + $0x140] sm:$0xf] }
 0x3ba   :  { %v4333_v13 = vor.u32 %v4966_v11, %v4332_v10  ;;  %v4957_v44 = vld [vmem:[#allocation7 + $0x160] sm:$0xf0] }
 0x3bb   :  { %2808 = vmatpush.bf16.msra.mxu0 %v4137_v24  ;;  %2822 = vmatpush.bf16.msra.mxu1 %v4425_v26  ;;  %v5010_v24 = vld [vmem:[#allocation7 + $0x308] sm:$0xf0] }
 0x3bc   :  { %2836 = vmatpush.bf16.msra.mxu2 %v4141_v30  ;;  %2850 = vmatpush.bf16.msra.mxu3 %v4429_v31  ;;  %v4934_v26 = vld [vmem:[#allocation7 + $0xac] sm:$0xf]  ;;  %v4217_v30 = vor.u32 %v4938_v20, %v4216_v19  ;;  %v4505_v31 = vor.u32 %v5010_v24, %v4504_v23  ;;  %v4260_v19 = vld [vmem:[#allocation7 + $0xf8] sm:$0xf]  ;;  %v4948_v20 = vld [vmem:[#allocation7 + $0x118] sm:$0xf0] }
 0x3bd   :  { %v4221_v34 = vor.u32 %v4934_v26, %v4218_v27  ;;  %v4261_v23 = vor.u32 %v4948_v20, %v4260_v19  ;;  %v4224_v26 = vld [vmem:[#allocation7 + $0xb0] sm:$0xf]  ;;  %v4939_v27 = vld [vmem:[#allocation7 + $0xd0] sm:$0xf0] }
 0x3be   :  { %2809 = vmatmul.bf16.vlgmr.msra.gmra.mxu0 %v5559_v62  ;;  %2823 = vmatmul.bf16.vlgmr.msra.gmra.mxu1 %v5561_v3 }
 0x3bf   :  { %2857 = vmatpush.bf16.msrb.mxu0 %v4397_v32  ;;  %2871 = vmatpush.bf16.msrb.mxu1 %v4685_v33  ;;  %v4180_v32 = vld [vmem:[#allocation7 + $0x60] sm:$0xf]  ;;  %v4929_v33 = vld [vmem:[#allocation7 + $0x80] sm:$0xf0] }
 0x3c0   :  { %2885 = vmatpush.bf16.msrb.mxu2 %v4401_v37  ;;  %2899 = vmatpush.bf16.msrb.mxu3 %v4689_v38  ;;  %v4468_v37 = vld [vmem:[#allocation7 + $0x2a0] sm:$0xf]  ;;  %v5001_v38 = vld [vmem:[#allocation7 + $0x2c0] sm:$0xf0]  ;;  %v4181_v42 = vor.u32 %v4929_v33, %v4180_v32  ;;  %v4188_v32 = vld [vmem:[#allocation7 + $0x68] sm:$0xf] }
 0x3c1   :  { %2837 = vmatmul.bf16.vlgmr.msra.gmra.mxu2 %v5559_v62  ;;  %2851 = vmatmul.bf16.vlgmr.msra.gmra.mxu3 %v5561_v3  ;;  %v4469_v43 = vor.u32 %v5001_v38, %v4468_v37  ;;  %v4930_v33 = vld [vmem:[#allocation7 + $0x88] sm:$0xf0] }
 0x3c2   :  { %v4189_v37 = vor.u32 %v4930_v33, %v4188_v32 }
 0x3c3   :  { %2858 = vmatpush.bf16.msrb.mxu0 %v4361_v45  ;;  %2872 = vmatpush.bf16.msrb.mxu1 %v4649_v46  ;;  %v4144_v45 = vld [vmem:[#allocation7 + $0x18] sm:$0xf]  ;;  %v4920_v46 = vld [vmem:[#allocation7 + $0x38] sm:$0xf0] }
 0x3c4   :  { %2886 = vmatpush.bf16.msrb.mxu2 %v4365_v50  ;;  %2900 = vmatpush.bf16.msrb.mxu3 %v4653_v51  ;;  %v4473_v50 = vor.u32 %v4997_v48, %v4470_v25  ;;  %v4992_v51 = vld [vmem:[#allocation7 + $0x278] sm:$0xf0]  ;;  %v4145_v8 = vor.u32 %v4920_v46, %v4144_v45  ;;  %v4440_v48 = vld [vmem:[#allocation7 + $0x260] sm:$0xf]  ;;  %v4993_v25 = vld [vmem:[#allocation7 + $0x280] sm:$0xf0] }
 0x3c5   :  { %v4433_v61 = vor.u32 %v4992_v51, %v4432_v47  ;;  %v5584_v45 = vld [vmem:[%s5879_s12] sm:$0xff] }
 0x3c6   :  { %v1935_v46 = vperm.slane %v5584_v45, 0 }
 0x3c7   :  { %2859 = vmatpush.bf16.msrb.mxu0 %v4325_v58  ;;  %2873 = vmatpush.bf16.msrb.mxu1 %v4613_v59  ;;  %v4692_v58 = vld [vmem:[#allocation7 + $0x458] sm:$0xf]  ;;  %v5056_v59 = vld [vmem:[#allocation7 + $0x478] sm:$0xf0] }
 0x3c8   :  { %2887 = vmatpush.bf16.msrb.mxu2 %v4329_v2  ;;  %2901 = vmatpush.bf16.msrb.mxu3 %v4617_v63  ;;  %v4149_v2 = vor.u32 %v4916_v52, %v4146_v53  ;;  %v4437_v63 = vor.u32 %v4988_v54, %v4434_v55  ;;  %v4693_v1 = vor.u32 %v5056_v59, %v4692_v58  ;;  %v1936_v52 = vperm.slane %v5584_v45, 1 }
 0x3cb   :  { %2860 = vmatpush.bf16.msrb.mxu0 %v4289_v7  ;;  %2874 = vmatpush.bf16.msrb.mxu1 %v4577_v9  ;;  %v4369_v7 = vor.u32 %v4975_v4, %v4368_v60  ;;  %v4657_v9 = vor.u32 %v5047_v6, %v4656_v5 }
 0x3cc   :  { %2888 = vmatpush.bf16.msrb.mxu2 %v4293_v14  ;;  %2902 = vmatpush.bf16.msrb.mxu3 %v4581_v12  ;;  %v4620_v14 = vld [vmem:[#allocation7 + $0x3c8] sm:$0xf]  ;;  %v5038_v12 = vld [vmem:[#allocation7 + $0x3e8] sm:$0xf0] }
 0x3cd   :  { %v4621_v15 = vor.u32 %v5038_v12, %v4620_v14 }
 0x3cf   :  { %2861 = vmatpush.bf16.msrb.mxu0 %v4253_v40  ;;  %2875 = vmatpush.bf16.msrb.mxu1 %v4541_v18  ;;  %v4297_v40 = vor.u32 %v4957_v44, %v4296_v36  ;;  %v4585_v18 = vor.u32 %v5029_v17, %v4584_v16 }
 0x3d0   :  { %2889 = vmatpush.bf16.msrb.mxu2 %v4257_v21  ;;  %2903 = vmatpush.bf16.msrb.mxu3 %v4545_v22  ;;  %v4548_v21 = vld [vmem:[#allocation7 + $0x338] sm:$0xf]  ;;  %v5020_v22 = vld [vmem:[#allocation7 + $0x358] sm:$0xf0] }
 0x3d1   :  { %v4549_v24 = vor.u32 %v5020_v22, %v4548_v21 }
 0x3d3   :  { %2862 = vmatpush.bf16.msrb.mxu0 %v4217_v30  ;;  %2876 = vmatpush.bf16.msrb.mxu1 %v4505_v31  ;;  %v4225_v30 = vor.u32 %v4939_v27, %v4224_v26  ;;  %v4513_v31 = vor.u32 %v5011_v29, %v4512_v28 }
 0x3d4   :  { %2890 = vmatpush.bf16.msrb.mxu2 %v4221_v34  ;;  %2904 = vmatpush.bf16.msrb.mxu3 %v4509_v35  ;;  %v4476_v34 = vld [vmem:[#allocation7 + $0x2a8] sm:$0xf]  ;;  %v5002_v35 = vld [vmem:[#allocation7 + $0x2c8] sm:$0xf0] }
 0x3d5   :  { %v4477_v38 = vor.u32 %v5002_v35, %v4476_v34 }
 0x3d7   :  { %2863 = vmatpush.bf16.msrb.mxu0 %v4181_v42  ;;  %2877 = vmatpush.bf16.msrb.mxu1 %v4469_v43  ;;  %v4153_v42 = vor.u32 %v4921_v41, %v4152_v39  ;;  %v4441_v43 = vor.u32 %v4993_v25, %v4440_v48 }
 0x3d8   :  { %2891 = vmatpush.bf16.msrb.mxu2 %v4185_v49  ;;  %2905 = vmatpush.bf16.msrb.mxu3 %v4473_v50 }
 0x3db   :  { %2864 = vmatpush.bf16.msrb.mxu0 %v4145_v8  ;;  %2878 = vmatpush.bf16.msrb.mxu1 %v4433_v61 }
 0x3dc   :  { %2892 = vmatpush.bf16.msrb.mxu2 %v4149_v2  ;;  %2906 = vmatpush.bf16.msrb.mxu3 %v4437_v63  ;;  %v1937_v63 = vperm.slane %v5584_v45, 2 }
 0x3de   :  { %2865 = vmatmul.bf16.vlgmr.msrb.gmra.mxu0 %v5559_v62  ;;  %2879 = vmatmul.bf16.vlgmr.msrb.gmra.mxu1 %v5561_v3 }
 0x3df   :  { %2913 = vmatpush.bf16.msra.mxu0 %v4405_v0  ;;  %2927 = vmatpush.bf16.msra.mxu1 %v4693_v1 }
 0x3e0   :  { %2893 = vmatmul.bf16.vlgmr.msrb.gmra.mxu2 %v5559_v62  ;;  %2907 = vmatmul.bf16.vlgmr.msrb.gmra.mxu3 %v5561_v3 }
 0x3e3   :  { %2914 = vmatpush.bf16.msra.mxu0 %v4369_v7  ;;  %2928 = vmatpush.bf16.msra.mxu1 %v4657_v9 }
 0x3e7   :  { %2915 = vmatpush.bf16.msra.mxu0 %v4333_v13  ;;  %2929 = vmatpush.bf16.msra.mxu1 %v4621_v15  ;;  %v1938_v13 = vperm.slane %v5584_v45, 3 }
 0x3eb   :  { %2916 = vmatpush.bf16.msra.mxu0 %v4297_v40  ;;  %2930 = vmatpush.bf16.msra.mxu1 %v4585_v18 }
 0x3ef   :  { %2917 = vmatpush.bf16.msra.mxu0 %v4261_v23  ;;  %2931 = vmatpush.bf16.msra.mxu1 %v4549_v24 }
 0x3f3   :  { %2918 = vmatpush.bf16.msra.mxu0 %v4225_v30  ;;  %2932 = vmatpush.bf16.msra.mxu1 %v4513_v31 }
 0x3f7   :  { %2919 = vmatpush.bf16.msra.mxu0 %v4189_v37  ;;  %2933 = vmatpush.bf16.msra.mxu1 %v4477_v38  ;;  %v1939_v37 = vperm.slane %v5584_v45, 4  ;;  %v1940_v38 = vperm.slane %v5584_v45, 5 }
 0x3fb   :  { %2920 = vmatpush.bf16.msra.mxu0 %v4153_v42  ;;  %2934 = vmatpush.bf16.msra.mxu1 %v4441_v43 }
 0x3fe   :  { %2921 = vmatmul.bf16.vlgmr.msra.gmra.mxu0 %v5559_v62  ;;  %2935 = vmatmul.bf16.vlgmr.msra.gmra.mxu1 %v5561_v3 }
 0x41a   :  { %v2698_v47 = vpop.f32.mrf.mxu0 }
 0x41b   :  { %v2699_v49 = vadd.f32 %v2698_v47, %v1935_v46  ;;  %v2712_v50 = vpop.f32.mrf.mxu1 }
 0x41d   :  { %v2713_v51 = vadd.f32 %v2712_v50, %v2699_v49 }
 0x41f   :  { %v4694_v53 = vmul.f32 -1.442695, %v2713_v51 }
 0x420   :  { %v2726_v54 = vpop.f32.mrf.mxu2 }
 0x421   :  { %5104 = vpow2.f32 %v4694_v53  ;;  %v2727_v55 = vadd.f32 %v2726_v54, %v1936_v52  ;;  %v2740_v62 = vpop.f32.mrf.mxu3 }
 0x422   :  { %v2700_v56 = vpop.f32.mrf.mxu0 }
 0x423   :  { %v2741_v3 = vadd.f32 %v2740_v62, %v2727_v55  ;;  %v2701_v57 = vadd.f32 %v2700_v56, %v1935_v46  ;;  %v2714_v58 = vpop.f32.mrf.mxu1 }
 0x425   :  { %v4695_v59 = vmul.f32 -1.442695, %v2741_v3  ;;  %v2715_v8 = vadd.f32 %v2714_v58, %v2701_v57 }
 0x427   :  { %v5105_v61 = vpop.eup %5104  ;;  %5106 = vpow2.f32 %v4695_v59  ;;  %v4703_v2 = vmul.f32 -1.442695, %v2715_v8 }
 0x428   :  { %v2995_v0 = vadd.f32 1.0, %v5105_v61  ;;  %v2728_v1 = vpop.f32.mrf.mxu2 }
 0x429   :  { %5108 = vpow2.f32 %v4703_v2  ;;  %v2729_v60 = vadd.f32 %v2728_v1, %v1936_v52  ;;  %v2742_v4 = vpop.f32.mrf.mxu3 }
 0x42a   :  { %5110 = vrcp.f32 %v2995_v0  ;;  %v2754_v5 = vpop.f32.mrf.mxu0  ;;  %v3022_v29 = vand.u32 2147483647, %v2995_v0  ;;  %v3024_v30 = vand.u32 2147483648, %v2995_v0  ;;  %vm3018_vm1 = vweird.f32 %v2995_v0 }
 0x42b   :  { %v2743_v6 = vadd.f32 %v2742_v4, %v2729_v60  ;;  %v2755_v7 = vadd.f32 %v2754_v5, %v1937_v63  ;;  %v2768_v9 = vpop.f32.mrf.mxu1 }
 0x42c   :  { %vm5608_vm2 = vcmp.eq.f32.partialorder %v3022_v29, 8.507059e+37  ;;  %v3025_v49 = vor.u32 1.1754944e-38, %v3024_v30 }
 0x42d   :  { %v5107_v10 = vpop.eup %5106  ;;  %v4704_v11 = vmul.f32 -1.442695, %v2743_v6  ;;  %v2769_v14 = vadd.f32 %v2768_v9, %v2755_v7 }
 0x42e   :  { %v2996_v12 = vadd.f32 1.0, %v5107_v10 }
 0x42f   :  { %v5109_v15 = vpop.eup %5108  ;;  %5112 = vpow2.f32 %v4704_v11  ;;  %v4696_v36 = vmul.f32 -1.442695, %v2769_v14 }
 0x430   :  { %v5590_v44 = vpop.eup %5110  ;;  %5114 = vrcp.f32 %v2996_v12  ;;  %v2782_v16 = vpop.f32.mrf.mxu2  ;;  %v5593_v40 = vadd.f32 1.0, %v5109_v15  ;;  %v3037_v35 = vand.u32 2147483647, %v2996_v12  ;;  %v3039_v42 = vand.u32 2147483648, %v2996_v12 }
 0x431   :  { %v3014_v17 = vmul.f32 %v5590_v44, %v2995_v0  ;;  %5116 = vpow2.f32 %v4696_v36  ;;  %v2796_v18 = vpop.f32.mrf.mxu3  ;;  %v2783_v19 = vadd.f32 %v2782_v16, %v1938_v13  ;;  %vm3019_vm0 = vweird.f32 %v5590_v44 }
 0x432   :  { %v2756_v20 = vpop.f32.mrf.mxu0  ;;  %5118 = vrcp.f32 %v5593_v40  ;;  %vm5614_vm3 = vmor %vm3018_vm1, %vm3019_vm0  ;;  %vm3033_vm4 = vweird.f32 %v2996_v12  ;;  %vm5622_vm6 = vcmp.eq.f32.partialorder %v3037_v35, 8.507059e+37  ;;  %v3040_v58 = vor.u32 1.1754944e-38, %v3039_v42 }
 0x433   :  { %v3015_v21 = vsub.f32 1.0, %v3014_v17  ;;  %v2797_v22 = vadd.f32 %v2796_v18, %v2783_v19  ;;  %v2757_v23 = vadd.f32 %v2756_v20, %v1937_v63  ;;  %v2770_v27 = vpop.f32.mrf.mxu1  ;;  %vm3153_vm8 = vweird.f32 %v5593_v40 }
 0x434   :  { %v3157_v63 = vand.u32 2147483647, %v5593_v40  ;;  %v3159_v36 = vand.u32 2147483648, %v5593_v40 }
 0x435   :  { %v5113_v24 = vpop.eup %5112  ;;  %v3016_v26 = vmul.f32 %v5590_v44, %v3015_v21  ;;  %v4697_v32 = vmul.f32 -1.442695, %v2797_v22  ;;  %v2771_v41 = vadd.f32 %v2770_v27, %v2757_v23 }
 0x436   :  { %v5115_v28 = vpop.eup %5114  ;;  %v5597_v31 = vadd.f32 1.0, %v5113_v24  ;;  %vm5650_vm10 = vcmp.eq.f32.partialorder %v3157_v63, 8.507059e+37 }
 0x437   :  { %v5117_v33 = vpop.eup %5116  ;;  %v3029_v34 = vmul.f32 %v5115_v28, %v2996_v12  ;;  %v3017_v39 = vadd.f32 %v5590_v44, %v3016_v26  ;;  %vm3034_vm5 = vweird.f32 %v5115_v28  ;;  %v4705_v56 = vmul.f32 -1.442695, %v2771_v41 }
 0x438   :  { %5120 = vrcp.f32 %v5597_v31  ;;  %v5604_v48 = vpop.eup %5118  ;;  %v5606_v43 = vadd.f32 1.0, %v5117_v33  ;;  %v2784_v46 = vpop.f32.mrf.mxu2  ;;  %vm3035_vm7 = vmor %vm3033_vm4, %vm3034_vm5  ;;  %v3172_v19 = vand.u32 2147483647, %v5597_v31  ;;  %vm3168_vm13 = vweird.f32 %v5597_v31 }
 0x439   :  { %v3030_v25 = vsub.f32 1.0, %v3029_v34  ;;  %5122 = vpow2.f32 %v4697_v32  ;;  %v3149_v50 = vmul.f32 %v5604_v48, %v5593_v40  ;;  %v2798_v51 = vpop.f32.mrf.mxu3  ;;  %v3021_v54 = vsel %vm5614_vm3, %v5590_v44, %v3017_v39 }
 0x43a   :  { %5124 = vrcp.f32 %v5606_v43  ;;  %v2785_v59 = vadd.f32 %v2784_v46, %v1938_v13  ;;  %v3026_v1 = vsel %vm5608_vm2, %v3025_v49, %v3021_v54  ;;  %vm3154_vm9 = vweird.f32 %v5604_v48 }
 0x43b   :  { %v3031_v53 = vmul.f32 %v5115_v28, %v3030_v25  ;;  %v3150_v62 = vsub.f32 1.0, %v3149_v50  ;;  %v2810_v3 = vpop.f32.mrf.mxu0  ;;  %5126 = vpow2.f32 %v4705_v56  ;;  %v2824_v6 = vpop.f32.mrf.mxu1  ;;  %v3174_v44 = vand.u32 2147483648, %v5597_v31  ;;  %vm5659_vm12 = vmor %vm3153_vm8, %vm3154_vm9 }
 0x43c   :  { %v2811_v8 = vadd.f32 %v2810_v3, %v1939_v37  ;;  %v2799_v5 = vadd.f32 %v2798_v51, %v2785_v59  ;;  %v3160_v32 = vor.u32 1.1754944e-38, %v3159_v36  ;;  %vm3173_vm15 = vcmp.eq.f32.partialorder %v3172_v19, 8.507059e+37 }
 0x43d   :  { %v3032_v57 = vadd.f32 %v5115_v28, %v3031_v53  ;;  %v3151_v2 = vmul.f32 %v5604_v48, %v3150_v62  ;;  %v3175_v33 = vor.u32 1.1754944e-38, %v3174_v44  ;;  %vm3048_vm0 = vweird.f32 %v5606_v43 }
 0x43e   :  { %v5121_v61 = vpop.eup %5120  ;;  %v2825_v10 = vadd.f32 %v2824_v6, %v2811_v8  ;;  %v4706_v15 = vmul.f32 -1.442695, %v2799_v5  ;;  %v3054_v50 = vand.u32 2147483648, %v5606_v43 }
 0x43f   :  { %v5123_v0 = vpop.eup %5122  ;;  %v3036_v60 = vsel %vm3035_vm7, %v5115_v28, %v3032_v57  ;;  %v3164_v4 = vmul.f32 %v5121_v61, %v5597_v31  ;;  %v3152_v12 = vadd.f32 %v5604_v48, %v3151_v2  ;;  %vm3169_vm11 = vweird.f32 %v5121_v61 }
 0x440   :  { %v3041_v7 = vsel %vm5622_vm6, %v3040_v58, %v3036_v60  ;;  %v5637_v9 = vadd.f32 1.0, %v5123_v0  ;;  %v5639_v11 = vpop.eup %5124  ;;  %v4698_v24 = vmul.f32 -1.442695, %v2825_v10  ;;  %vm3170_vm14 = vmor %vm3168_vm13, %vm3169_vm11 }
 0x441   :  { %v3283_v14 = vpack.c.bf16 %v3041_v7, %v3026_v1  ;;  %v3165_v13 = vsub.f32 1.0, %v3164_v4  ;;  %v3044_v16 = vmul.f32 %v5639_v11, %v5606_v43  ;;  %v5127_v21 = vpop.eup %5126  ;;  %v3156_v28 = vsel %vm5659_vm12, %v5604_v48, %v3152_v12 }
 0x442   :  { %5128 = vrcp.f32 %v5637_v9  ;;  %v5667_v30 = vadd.f32 1.0, %v5127_v21  ;;  %v3161_v41 = vsel %vm5650_vm10, %v3160_v32, %v3156_v28  ;;  %vm3049_vm1 = vweird.f32 %v5639_v11 }
 0x443   :  { %3293 = vst [vmem:[%s5881_s14] sm:$0xff] %v3283_v14  ;;  %v3166_v18 = vmul.f32 %v5121_v61, %v3165_v13  ;;  %v3045_v23 = vsub.f32 1.0, %v3044_v16  ;;  %5130 = vpow2.f32 %v4706_v15  ;;  %v2812_v27 = vpop.f32.mrf.mxu0  ;;  %v2826_v47 = vpop.f32.mrf.mxu1  ;;  %v3069_v3 = vand.u32 2147483648, %v5637_v9  ;;  %vm5698_vm3 = vmor %vm3048_vm0, %vm3049_vm1 }
 0x444   :  { %v2838_v20 = vpop.f32.mrf.mxu2  ;;  %v2852_v26 = vpop.f32.mrf.mxu3  ;;  %5132 = vpow2.f32 %v4698_v24  ;;  %v2813_v31 = vadd.f32 %v2812_v27, %v1939_v37  ;;  %v3052_v37 = vand.u32 2147483647, %v5606_v43  ;;  %vm3063_vm4 = vweird.f32 %v5637_v9 }
 0x445   :  { %v3167_v29 = vadd.f32 %v5121_v61, %v3166_v18  ;;  %v2839_v40 = vadd.f32 %v2838_v20, %v1940_v38  ;;  %v3046_v35 = vmul.f32 %v5639_v11, %v3045_v23  ;;  %5134 = vrcp.f32 %v5667_v30 }
 0x446   :  { %v2827_v52 = vadd.f32 %v2826_v47, %v2813_v31  ;;  %v3055_v43 = vor.u32 1.1754944e-38, %v3054_v50  ;;  %v3070_v5 = vor.u32 1.1754944e-38, %v3069_v3  ;;  %vm3053_vm6 = vcmp.eq.f32.partialorder %v3052_v37, 8.507059e+37 }
 0x447   :  { %v3171_v34 = vsel %vm3170_vm14, %v5121_v61, %v3167_v29  ;;  %v2853_v25 = vadd.f32 %v2852_v26, %v2839_v40  ;;  %v3047_v53 = vadd.f32 %v5639_v11, %v3046_v35  ;;  %v3067_v61 = vand.u32 2147483647, %v5637_v9 }
 0x448   :  { %v5129_v39 = vpop.eup %5128  ;;  %v3176_v48 = vsel %vm3173_vm15, %v3175_v33, %v3171_v34  ;;  %v4707_v57 = vmul.f32 -1.442695, %v2827_v52  ;;  %v3187_v44 = vand.u32 2147483647, %v5667_v30  ;;  %v3189_v18 = vand.u32 2147483648, %v5667_v30 }
 0x449   :  { %v3288_v42 = vpack.c.bf16 %v3176_v48, %v3161_v41  ;;  %v3059_v46 = vmul.f32 %v5129_v39, %v5637_v9  ;;  %v5131_v49 = vpop.eup %5130  ;;  %v4699_v51 = vmul.f32 -1.442695, %v2853_v25  ;;  %vm3064_vm2 = vweird.f32 %v5129_v39 }
 0x44a   :  { %v5687_v55 = vadd.f32 1.0, %v5131_v49  ;;  %v5133_v56 = vpop.eup %5132  ;;  %v3051_v1 = vsel %vm5698_vm3, %v5639_v11, %v3047_v53  ;;  %vm3065_vm5 = vmor %vm3063_vm4, %vm3064_vm2  ;;  %vm3068_vm7 = vcmp.eq.f32.partialorder %v3067_v61, 8.507059e+37  ;;  %v1941_v20 = vperm.slane %v5584_v45, 6 }
 0x44b   :  { %3298 = vst [vmem:[%s5881_s14 + $0x24] sm:$0xff] %v3288_v42  ;;  %v3060_v54 = vsub.f32 1.0, %v3059_v46  ;;  %5136 = vpow2.f32 %v4699_v51  ;;  %v5692_v59 = vpop.eup %5134  ;;  %v3056_v14 = vsel %vm3053_vm6, %v3055_v43, %v3051_v1  ;;  %vm3183_vm9 = vweird.f32 %v5667_v30 }
 0x44c   :  { %v2840_v62 = vpop.f32.mrf.mxu2  ;;  %5138 = vrcp.f32 %v5687_v55  ;;  %v3179_v63 = vmul.f32 %v5692_v59, %v5667_v30  ;;  %v2854_v0 = vpop.f32.mrf.mxu3  ;;  %v3202_v19 = vand.u32 2147483647, %v5687_v55  ;;  %vm3184_vm8 = vweird.f32 %v5692_v59 }
 0x44d   :  { %v2841_v58 = vadd.f32 %v2840_v62, %v1940_v38  ;;  %v3061_v8 = vmul.f32 %v5129_v39, %v3060_v54  ;;  %v5705_v38 = vadd.f32 1.0, %v5133_v56  ;;  %5140 = vpow2.f32 %v4707_v57  ;;  %vm5738_vm12 = vmor %vm3183_vm9, %vm3184_vm8 }
 0x44e   :  { %v3180_v6 = vsub.f32 1.0, %v3179_v63  ;;  %v3204_v26 = vand.u32 2147483648, %v5687_v55  ;;  %vm5733_vm10 = vcmp.eq.f32.partialorder %v3187_v44, 8.507059e+37  ;;  %v3190_v32 = vor.u32 1.1754944e-38, %v3189_v18 }
 0x44f   :  { %v3062_v60 = vadd.f32 %v5129_v39, %v3061_v8  ;;  %v2855_v4 = vadd.f32 %v2854_v0, %v2841_v58  ;;  %5142 = vrcp.f32 %v5705_v38  ;;  %vm3198_vm13 = vweird.f32 %v5687_v55 }
 0x450   :  { %v3181_v13 = vmul.f32 %v5692_v59, %v3180_v6  ;;  %v1942_v34 = vperm.slane %v5584_v45, 7  ;;  %vm3203_vm14 = vcmp.eq.f32.partialorder %v3202_v19, 8.507059e+37  ;;  %v3205_v42 = vor.u32 1.1754944e-38, %v3204_v26 }
 0x451   :  { %v3066_v7 = vsel %vm3065_vm5, %v5129_v39, %v3062_v60  ;;  %v4708_v9 = vmul.f32 -1.442695, %v2855_v4  ;;  %v5137_v10 = vpop.eup %5136  ;;  %v3082_v47 = vand.u32 2147483647, %v5705_v38  ;;  %v3084_v50 = vand.u32 2147483648, %v5705_v38 }
 0x452   :  { %v3071_v12 = vsel %vm3068_vm7, %v3070_v5, %v3066_v7  ;;  %v5139_v15 = vpop.eup %5138  ;;  %v5712_v36 = vadd.f32 1.0, %v5137_v10  ;;  %v3182_v22 = vadd.f32 %v5692_v59, %v3181_v13  ;;  %vm3078_vm1 = vweird.f32 %v5705_v38 }
 0x453   :  { %v3284_v11 = vpack.c.bf16 %v3071_v12, %v3056_v14  ;;  %v3194_v16 = vmul.f32 %v5139_v15, %v5687_v55  ;;  %5144 = vpow2.f32 %v4708_v9  ;;  %v5141_v17 = vpop.eup %5140  ;;  %vm3199_vm11 = vweird.f32 %v5139_v15 }
 0x454   :  { %5146 = vrcp.f32 %v5712_v36  ;;  %v5727_v24 = vadd.f32 1.0, %v5141_v17  ;;  %v3186_v39 = vsel %vm5738_vm12, %v5692_v59, %v3182_v22  ;;  %vm3200_vm15 = vmor %vm3198_vm13, %vm3199_vm11  ;;  %v3097_v55 = vand.u32 2147483647, %v5712_v36 }
 0x455   :  { %3294 = vst [vmem:[%s5881_s14 + $0x8] sm:$0xff] %v3284_v11  ;;  %v5723_v21 = vpop.eup %5142  ;;  %v3195_v23 = vsub.f32 1.0, %v3194_v16  ;;  %v3191_v53 = vsel %vm5733_vm10, %v3190_v32, %v3186_v39  ;;  %v3099_v58 = vand.u32 2147483648, %v5712_v36  ;;  %vm5771_vm2 = vcmp.eq.f32.partialorder %v3082_v47, 8.507059e+37 }
 0x456   :  { %v3074_v27 = vmul.f32 %v5723_v21, %v5705_v38  ;;  %5148 = vrcp.f32 %v5727_v24  ;;  %vm3079_vm0 = vweird.f32 %v5723_v21  ;;  %v3085_v2 = vor.u32 1.1754944e-38, %v3084_v50 }
 0x457   :  { %v3196_v29 = vmul.f32 %v5139_v15, %v3195_v23  ;;  %vm5775_vm4 = vmor %vm3078_vm1, %vm3079_vm0  ;;  %vm3093_vm5 = vweird.f32 %v5712_v36  ;;  %vm3098_vm6 = vcmp.eq.f32.partialorder %v3097_v55, 8.507059e+37  ;;  %v3100_v10 = vor.u32 1.1754944e-38, %v3099_v58 }
 0x458   :  { %v3075_v30 = vsub.f32 1.0, %v3074_v27  ;;  %vm3213_vm8 = vweird.f32 %v5727_v24  ;;  %v3217_v11 = vand.u32 2147483647, %v5727_v24  ;;  %v3219_v26 = vand.u32 2147483648, %v5727_v24 }
 0x459   :  { %v5145_v35 = vpop.eup %5144  ;;  %v3197_v41 = vadd.f32 %v5139_v15, %v3196_v29 }
 0x45a   :  { %v5147_v25 = vpop.eup %5146  ;;  %v3076_v46 = vmul.f32 %v5723_v21, %v3075_v30  ;;  %v5752_v49 = vadd.f32 1.0, %v5145_v35 }
 0x45b   :  { %v2866_v33 = vpop.f32.mrf.mxu0  ;;  %v2880_v31 = vpop.f32.mrf.mxu1  ;;  %v3201_v37 = vsel %vm3200_vm15, %v5139_v15, %v3197_v41  ;;  %v3089_v51 = vmul.f32 %v5147_v25, %v5712_v36  ;;  %vm3094_vm3 = vweird.f32 %v5147_v25  ;;  %v3220_v41 = vor.u32 1.1754944e-38, %v3219_v26 }
 0x45c   :  { %v2867_v48 = vadd.f32 %v2866_v33, %v1941_v20  ;;  %v3206_v54 = vsel %vm3203_vm14, %v3205_v42, %v3201_v37  ;;  %5150 = vrcp.f32 %v5752_v49  ;;  %v5760_v62 = vpop.eup %5148  ;;  %v3077_v3 = vadd.f32 %v5723_v21, %v3076_v46  ;;  %vm3095_vm7 = vmor %vm3093_vm5, %vm3094_vm3 }
 0x45d   :  { %v3289_v56 = vpack.c.bf16 %v3206_v54, %v3191_v53  ;;  %v3090_v57 = vsub.f32 1.0, %v3089_v51  ;;  %v3209_v59 = vmul.f32 %v5760_v62, %v5727_v24  ;;  %vm3214_vm9 = vweird.f32 %v5760_v62 }
 0x45e   :  { %v2881_v52 = vadd.f32 %v2880_v31, %v2867_v48  ;;  %v3081_v5 = vsel %vm5775_vm4, %v5723_v21, %v3077_v3  ;;  %v3232_v27 = vand.u32 2147483647, %v5752_v49  ;;  %v3234_v28 = vand.u32 2147483648, %v5752_v49  ;;  %vm5807_vm11 = vmor %vm3213_vm8, %vm3214_vm9  ;;  %v5075_v3 = vld [vmem:[%s5879_s12 + $0x8] ss:$0 sm:$0xff] }
 0x45f   :  { %3299 = vst [vmem:[%s5881_s14 + $0x2c] sm:$0xff] %v3289_v56  ;;  %v3091_v63 = vmul.f32 %v5147_v25, %v3090_v57  ;;  %v3210_v60 = vsub.f32 1.0, %v3209_v59  ;;  %v3086_v16 = vsel %vm5771_vm2, %v3085_v2, %v3081_v5  ;;  %vm3228_vm12 = vweird.f32 %v5752_v49 }
 0x460   :  { %v4700_v8 = vmul.f32 -1.442695, %v2881_v52  ;;  %v3235_v24 = vor.u32 1.1754944e-38, %v3234_v28  ;;  %vm3218_vm14 = vcmp.eq.f32.partialorder %v3217_v11, 8.507059e+37  ;;  %vm3233_vm15 = vcmp.eq.f32.partialorder %v3232_v27, 8.507059e+37 }
 0x461   :  { %v3092_v6 = vadd.f32 %v5147_v25, %v3091_v63  ;;  %v3211_v14 = vmul.f32 %v5760_v62, %v3210_v60 }
 0x462   :  { %5152 = vpow2.f32 %v4700_v8  ;;  %v5151_v9 = vpop.eup %5150 }
 0x463   :  { %v2894_v0 = vpop.f32.mrf.mxu2  ;;  %v2908_v1 = vpop.f32.mrf.mxu3  ;;  %v3096_v15 = vsel %vm3095_vm7, %v5147_v25, %v3092_v6  ;;  %v3224_v36 = vmul.f32 %v5151_v9, %v5752_v49  ;;  %vm3229_vm10 = vweird.f32 %v5151_v9 }
 0x464   :  { %v2895_v4 = vadd.f32 %v2894_v0, %v1942_v34  ;;  %v2868_v43 = vpop.f32.mrf.mxu0  ;;  %v2882_v13 = vpop.f32.mrf.mxu1  ;;  %v3101_v17 = vsel %vm3098_vm6, %v3100_v10, %v3096_v15  ;;  %vm3230_vm13 = vmor %vm3228_vm12, %vm3229_vm10 }
 0x465   :  { %v2869_v7 = vadd.f32 %v2868_v43, %v1941_v20  ;;  %v3285_v19 = vpack.c.bf16 %v3101_v17, %v3086_v16  ;;  %v3212_v20 = vadd.f32 %v5760_v62, %v3211_v14  ;;  %v3225_v21 = vsub.f32 1.0, %v3224_v36 }
 0x466   :  { %v2909_v12 = vadd.f32 %v2908_v1, %v2895_v4 }
 0x467   :  { %v2883_v44 = vadd.f32 %v2882_v13, %v2869_v7  ;;  %3295 = vst [vmem:[%s5881_s14 + $0x10] sm:$0xff] %v3285_v19  ;;  %v3226_v29 = vmul.f32 %v5151_v9, %v3225_v21  ;;  %v3216_v31 = vsel %vm5807_vm11, %v5760_v62, %v3212_v20 }
 0x468   :  { %v4701_v18 = vmul.f32 -1.442695, %v2909_v12  ;;  %v5153_v23 = vpop.eup %5152  ;;  %v3221_v45 = vsel %vm3218_vm14, %v3220_v41, %v3216_v31 }
 0x469   :  { %v4709_v22 = vmul.f32 -1.442695, %v2883_v44  ;;  %v5801_v40 = vadd.f32 1.0, %v5153_v23  ;;  %v3227_v35 = vadd.f32 %v5151_v9, %v3226_v29 }
 0x46a   :  { %5154 = vpow2.f32 %v4701_v18 }
 0x46b   :  { %5156 = vpow2.f32 %v4709_v22  ;;  %v2896_v32 = vpop.f32.mrf.mxu2  ;;  %v2910_v39 = vpop.f32.mrf.mxu3  ;;  %v3231_v25 = vsel %vm3230_vm13, %v5151_v9, %v3227_v35  ;;  %vm3108_vm0 = vweird.f32 %v5801_v40  ;;  %v3114_v0 = vand.u32 2147483648, %v5801_v40 }
 0x46c   :  { %v2897_v33 = vadd.f32 %v2896_v32, %v1942_v34  ;;  %5158 = vrcp.f32 %v5801_v40  ;;  %v3236_v34 = vsel %vm3233_vm15, %v3235_v24, %v3231_v25  ;;  %v3112_v4 = vand.u32 2147483647, %v5801_v40 }
 0x46d   :  { %v3290_v37 = vpack.c.bf16 %v3236_v34, %v3221_v45  ;;  %v3115_v13 = vor.u32 1.1754944e-38, %v3114_v0 }
 0x46e   :  { %v2911_v48 = vadd.f32 %v2910_v39, %v2897_v33  ;;  %vm3113_vm6 = vcmp.eq.f32.partialorder %v3112_v4, 8.507059e+37 }
 0x46f   :  { %3300 = vst [vmem:[%s5881_s14 + $0x34] sm:$0xff] %v3290_v37 }
 0x470   :  { %v5155_v42 = vpop.eup %5154  ;;  %v4710_v46 = vmul.f32 -1.442695, %v2911_v48 }
 0x471   :  { %v5157_v47 = vpop.eup %5156  ;;  %v3002_v50 = vadd.f32 1.0, %v5155_v42 }
 0x472   :  { %v5818_v51 = vadd.f32 1.0, %v5157_v47  ;;  %5160 = vpow2.f32 %v4710_v46  ;;  %v5159_v49 = vpop.eup %5158 }
 0x473   :  { %5162 = vrcp.f32 %v3002_v50  ;;  %v3104_v52 = vmul.f32 %v5159_v49, %v5801_v40  ;;  %vm3109_vm1 = vweird.f32 %v5159_v49  ;;  %v3129_v1 = vand.u32 2147483648, %v3002_v50 }
 0x474   :  { %5164 = vrcp.f32 %v5818_v51  ;;  %v3127_v5 = vand.u32 2147483647, %v3002_v50  ;;  %vm5838_vm3 = vmor %vm3108_vm0, %vm3109_vm1  ;;  %vm3123_vm4 = vweird.f32 %v3002_v50  ;;  %vm3243_vm9 = vweird.f32 %v5818_v51 }
 0x475   :  { %v3105_v53 = vsub.f32 1.0, %v3104_v52  ;;  %v3130_v15 = vor.u32 1.1754944e-38, %v3129_v1  ;;  %v3249_v26 = vand.u32 2147483648, %v5818_v51  ;;  %v3247_v29 = vand.u32 2147483647, %v5818_v51 }
 0x476   :  { %vm3128_vm7 = vcmp.eq.f32.partialorder %v3127_v5, 8.507059e+37 }
 0x477   :  { %v3106_v55 = vmul.f32 %v5159_v49, %v3105_v53  ;;  %v3250_v39 = vor.u32 1.1754944e-38, %v3249_v26  ;;  %vm3248_vm14 = vcmp.eq.f32.partialorder %v3247_v29, 8.507059e+37 }
 0x478   :  { %v5161_v54 = vpop.eup %5160 }
 0x479   :  { %v5163_v62 = vpop.eup %5162  ;;  %v5825_v56 = vadd.f32 1.0, %v5161_v54  ;;  %v3107_v2 = vadd.f32 %v5159_v49, %v3106_v55 }
 0x47a   :  { %v5830_v57 = vpop.eup %5164  ;;  %v3119_v58 = vmul.f32 %v5163_v62, %v3002_v50  ;;  %vm3124_vm2 = vweird.f32 %v5163_v62 }
 0x47b   :  { %v2922_v59 = vpop.f32.mrf.mxu0  ;;  %v2936_v8 = vpop.f32.mrf.mxu1  ;;  %v3239_v61 = vmul.f32 %v5830_v57, %v5818_v51  ;;  %5166 = vrcp.f32 %v5825_v56  ;;  %v3111_v9 = vsel %vm5838_vm3, %v5159_v49, %v3107_v2  ;;  %vm3125_vm5 = vmor %vm3123_vm4, %vm3124_vm2  ;;  %vm3244_vm8 = vweird.f32 %v5830_v57 }
 0x47c   :  { %v3120_v63 = vsub.f32 1.0, %v3119_v58  ;;  %v2923_v60 = vadd.f32 %v5075_v3, %v2922_v59  ;;  %v3116_v17 = vsel %vm3113_vm6, %v3115_v13, %v3111_v9  ;;  %v3264_v27 = vand.u32 2147483648, %v5825_v56  ;;  %vm3245_vm11 = vmor %vm3243_vm9, %vm3244_vm8 }
 0x47d   :  { %v3240_v38 = vsub.f32 1.0, %v3239_v61  ;;  %v3262_v32 = vand.u32 2147483647, %v5825_v56  ;;  %vm3258_vm12 = vweird.f32 %v5825_v56 }
 0x47e   :  { %v3121_v43 = vmul.f32 %v5163_v62, %v3120_v63  ;;  %v2937_v7 = vadd.f32 %v2936_v8, %v2923_v60  ;;  %v3265_v41 = vor.u32 1.1754944e-38, %v3264_v27 }
 0x47f   :  { %v3241_v14 = vmul.f32 %v5830_v57, %v3240_v38  ;;  %vm3263_vm15 = vcmp.eq.f32.partialorder %v3262_v32, 8.507059e+37 }
 0x480   :  { %v3122_v10 = vadd.f32 %v5163_v62, %v3121_v43  ;;  %v4702_v11 = vmul.f32 -1.442695, %v2937_v7 }
 0x481   :  { %v5167_v12 = vpop.eup %5166  ;;  %v3242_v21 = vadd.f32 %v5830_v57, %v3241_v14 }
 0x482   :  { %v3126_v36 = vsel %vm3125_vm5, %v5163_v62, %v3122_v10  ;;  %v3254_v44 = vmul.f32 %v5167_v12, %v5825_v56  ;;  %5168 = vpow2.f32 %v4702_v11  ;;  %vm3259_vm10 = vweird.f32 %v5167_v12 }
 0x483   :  { %v2924_v16 = vpop.f32.mrf.mxu0  ;;  %v3131_v18 = vsel %vm3128_vm7, %v3130_v15, %v3126_v36  ;;  %v2938_v23 = vpop.f32.mrf.mxu1  ;;  %v3246_v33 = vsel %vm3245_vm11, %v5830_v57, %v3242_v21  ;;  %vm3260_vm13 = vmor %vm3258_vm12, %vm3259_vm10 }
 0x484   :  { %v2925_v19 = vadd.f32 %v5075_v3, %v2924_v16  ;;  %v3286_v20 = vpack.c.bf16 %v3131_v18, %v3116_v17  ;;  %v3255_v22 = vsub.f32 1.0, %v3254_v44  ;;  %v3251_v25 = vsel %vm3248_vm14, %v3250_v39, %v3246_v33 }
 0x486   :  { %v2939_v28 = vadd.f32 %v2938_v23, %v2925_v19  ;;  %3296 = vst [vmem:[%s5881_s14 + $0x18] sm:$0xff] %v3286_v20  ;;  %v3256_v40 = vmul.f32 %v5167_v12, %v3255_v22 }
 0x488   :  { %v4711_v30 = vmul.f32 -1.442695, %v2939_v28  ;;  %v3257_v31 = vadd.f32 %v5167_v12, %v3256_v40  ;;  %v5169_v35 = vpop.eup %5168 }
 0x489   :  { %v3003_v48 = vadd.f32 1.0, %v5169_v35 }
 0x48a   :  { %5170 = vpow2.f32 %v4711_v30  ;;  %v3261_v24 = vsel %vm3260_vm13, %v5167_v12, %v3257_v31 }
 0x48b   :  { %v3266_v42 = vsel %vm3263_vm15, %v3265_v41, %v3261_v24  ;;  %5172 = vrcp.f32 %v3003_v48  ;;  %v3144_v51 = vand.u32 2147483648, %v3003_v48  ;;  %v3142_v52 = vand.u32 2147483647, %v3003_v48 }
 0x48c   :  { %v3291_v45 = vpack.c.bf16 %v3266_v42, %v3251_v25  ;;  %vm3138_vm1 = vweird.f32 %v3003_v48 }
 0x48d   :  { %v3145_v62 = vor.u32 1.1754944e-38, %v3144_v51  ;;  %vm3143_vm3 = vcmp.eq.f32.partialorder %v3142_v52, 8.507059e+37 }
 0x48e   :  { %3301 = vst [vmem:[%s5881_s14 + $0x3c] sm:$0xff] %v3291_v45 }
 0x490   :  { %v5171_v34 = vpop.eup %5170 }
 0x491   :  { %v3012_v46 = vadd.f32 1.0, %v5171_v34  ;;  %v5173_v47 = vpop.eup %5172 }
 0x492   :  { %v3134_v37 = vmul.f32 %v5173_v47, %v3003_v48  ;;  %vm3139_vm0 = vweird.f32 %v5173_v47 }
 0x493   :  { %5174 = vrcp.f32 %v3012_v46  ;;  %vm3140_vm2 = vmor %vm3138_vm1, %vm3139_vm0  ;;  %v3279_v58 = vand.u32 2147483648, %v3012_v46  ;;  %v3277_v61 = vand.u32 2147483647, %v3012_v46  ;;  %vm3273_vm5 = vweird.f32 %v3012_v46 }
 0x494   :  { %v3135_v50 = vsub.f32 1.0, %v3134_v37 }
 0x495   :  { %v3280_v63 = vor.u32 1.1754944e-38, %v3279_v58  ;;  %vm3278_vm7 = vcmp.eq.f32.partialorder %v3277_v61, 8.507059e+37 }
 0x496   :  { %v3136_v49 = vmul.f32 %v5173_v47, %v3135_v50 }
 0x498   :  { %v3137_v54 = vadd.f32 %v5173_v47, %v3136_v49 }
 0x499   :  { %v5175_v53 = vpop.eup %5174 }
 0x49a   :  { %v3269_v55 = vmul.f32 %v5175_v53, %v3012_v46  ;;  %v3141_v56 = vsel %vm3140_vm2, %v5173_v47, %v3137_v54  ;;  %vm3274_vm4 = vweird.f32 %v5175_v53 }
 0x49b   :  { %v3146_v57 = vsel %vm3143_vm3, %v3145_v62, %v3141_v56  ;;  %vm3275_vm6 = vmor %vm3273_vm5, %vm3274_vm4 }
 0x49c   :  { %v3270_v3 = vsub.f32 1.0, %v3269_v55  ;;  %v3287_v59 = vpack.c.bf16 %v3146_v57, %v3146_v57 }
 0x49e   :  { %v3271_v8 = vmul.f32 %v5175_v53, %v3270_v3  ;;  %3297 = vst [vmem:[%s5881_s14 + $0x20] sm:$0xf] %v3287_v59 }
 0x4a0   :  { %v3272_v2 = vadd.f32 %v5175_v53, %v3271_v8 }
 0x4a2   :  { %v3276_v0 = vsel %vm3275_vm6, %v5175_v53, %v3272_v2 }
 0x4a3   :  { %v3281_v1 = vsel %vm3278_vm7, %v3280_v63, %v3276_v0 }
 0x4a4   :  { %v3292_v38 = vpack.c.bf16 %v3281_v1, %v3281_v1 }
 0x4a6   :  { %3302 = vst [vmem:[%s5881_s14 + $0x44] sm:$0xf] %v3292_v38 }
 0x4a7   :  { %3311 = vsyncpa [#allocation3], 1 }
 0x4a8   :  { %3312 = vsyncpa [#allocation5], 1 }
 0x4a9   :  { %3313 = vsyncpa [#allocation8], 1 }

</bundles_post_ra>
